<compile_context>
chip_gen: v7x
topology: tpu7x:2x2x1
jax: 0.10.0
libtpu: 0.0.40
codegen_flags: <defaults>
</compile_context>

<pallas_src>
import math

import jax
import jax.numpy as jnp
from jax import lax
from jax.experimental import pallas as pl
from jax.experimental.pallas import tpu as pltpu

FEATURE_MAPS = 32      # feature_maps (small test size)
OUTPUT_BITS = 4        # output_bits
PASS_STEPS = 2         # pass_steps
NUM_WARMUP = PASS_STEPS * 4
LEAKY_SLOPE = 0.01     # nn.LeakyReLU default
PN_EPS = 1e-6
CONT_SCALE = 0.1       # continuous_var_scale
LOGISTIC_EPS = 1e-5


# ----------------------------------------------------------------------------
# in-kernel helpers
# ----------------------------------------------------------------------------
def _pairnorm(x):
    # PairNorm(subtract_mean=False): per-row RMS normalization over features.
    # TODO(synk): exact PairNorm definition not in the reference source; this
    # is the scale-individually variant without mean removal.
    return x * lax.rsqrt(jnp.mean(jnp.square(x), axis=-1, keepdims=True) + PN_EPS)


def _leaky_relu(x):
    return jnp.where(x >= 0, x, LEAKY_SLOPE * x)


def _dot(a, b):
    return jnp.dot(a, b, preferred_element_type=jnp.float32)


# ----------------------------------------------------------------------------
# Pallas kernel: whole message-passing schedule + fused output head, grid=()
# ----------------------------------------------------------------------------
def mip_fused_kernel(*refs):
    F = FEATURE_MAPS
    (A_ref, At_ref, Aeq_ref, Aeqt_ref,
     vg_bias_ref, cu_bias_ref, ecu_bias_ref, vu_bias_ref,
     int_mask_ref, inv_vscal_ref, noise_ref,
     vg_w1_ref, vg_w2_ref, vg_b2_ref,
     mq_w1_ref, mq_b1_ref, mq_w2_ref, mq_b2_ref,
     cu_w1_ref, cu_w2a_ref, cu_b2a_ref, cu_w2b_ref, cu_b2b_ref,
     mq2_w1_ref, mq2_b1_ref, mq2_w2_ref, mq2_b2_ref,
     ecu_w1_ref, ecu_w2a_ref, ecu_b2a_ref, ecu_w2b_ref, ecu_b2b_ref,
     vu_w1_ref, vu_w2_ref, vu_b2_ref,
     ow1_ref, ob1_ref, ow2_ref, ob2_ref,
     out_ref) = refs

    # VMEM-resident operands shared by every step.
    A = A_ref[...]            # (V, C)
    At = At_ref[...]          # (C, V)
    Aeq = Aeq_ref[...]        # (V, E)
    Aeqt = Aeqt_ref[...]      # (E, V)
    vg_bias = vg_bias_ref[...]
    cu_bias = cu_bias_ref[...]
    ecu_bias = ecu_bias_ref[...]
    vu_bias = vu_bias_ref[...]
    int_mask = int_mask_ref[...]
    inv_vscal = inv_vscal_ref[...]

    V, C = A.shape
    E = Aeq.shape[1]

    def step(variables, constraints, eq_constraints):
        # Weight refs are read at their point of use (short live ranges).
        # c2g = A @ constraints ; c2ge = A_eq @ eq_constraints
        c2g = _dot(A, constraints)
        c2ge = _dot(Aeq, eq_constraints)

        # guess = sigmoid(variables_guess([variables, c2g, c2ge, int_mask, relaxed]))
        vg_w1 = vg_w1_ref[...]
        h = (_dot(variables, vg_w1[0:F]) + _dot(c2g, vg_w1[F:2 * F])
             + _dot(c2ge, vg_w1[2 * F:3 * F]) + vg_bias)
        h = _leaky_relu(_pairnorm(h))
        guess = jax.nn.sigmoid(_dot(h, vg_w2_ref[...]) + vg_b2_ref[...])

        # v2m = make_query(A.T @ [variables, guess])  (split-K, no concat)
        at_v = _dot(At, variables)
        at_g = _dot(At, guess)
        mq_w1 = mq_w1_ref[...]
        h = _dot(at_v, mq_w1[0:F]) + _dot(at_g, mq_w1[F:2 * F]) + mq_b1_ref[...]
        h = _leaky_relu(_pairnorm(h))
        v2m = _dot(h, mq_w2_ref[...]) + mq_b2_ref[...]

        # constraint_update([constraints, v2m, const_values])
        cu_w1 = cu_w1_ref[...]
        h = _dot(constraints, cu_w1[0:F]) + _dot(v2m, cu_w1[F:2 * F]) + cu_bias
        h = _leaky_relu(_pairnorm(h))
        new_constraints = (_dot(h, cu_w2a_ref[...]) + cu_b2a_ref[...]
                           + 0.5 * constraints)
        constr_features = _dot(h, cu_w2b_ref[...]) + cu_b2b_ref[...]

        # c2v = (A @ constr_features) / vars_scaler  (reciprocal multiply)
        c2v = _dot(A, constr_features) * inv_vscal

        # v2c_eq = make_query_2(A_eq.T @ [variables, guess])
        aet_v = _dot(Aeqt, variables)
        aet_g = _dot(Aeqt, guess)
        mq2_w1 = mq2_w1_ref[...]
        h = (_dot(aet_v, mq2_w1[0:F]) + _dot(aet_g, mq2_w1[F:2 * F])
             + mq2_b1_ref[...])
        h = _leaky_relu(_pairnorm(h))
        v2c_eq = _dot(h, mq2_w2_ref[...]) + mq2_b2_ref[...]

        # eq_constraint_update([eq_constraints, v2c_eq, eq_const_values])
        ecu_w1 = ecu_w1_ref[...]
        h = (_dot(eq_constraints, ecu_w1[0:F]) + _dot(v2c_eq, ecu_w1[F:2 * F])
             + ecu_bias)
        h = _leaky_relu(_pairnorm(h))
        new_eq_constraints = (_dot(h, ecu_w2a_ref[...]) + ecu_b2a_ref[...]
                              + 0.5 * eq_constraints)
        eq_feats = _dot(h, ecu_w2b_ref[...]) + ecu_b2b_ref[...]

        eq_c2v = _dot(Aeq, eq_feats)

        # variable_update([variables, eq_c2v, c2v, obj, int_mask, relaxed])
        vu_w1 = vu_w1_ref[...]
        h = (_dot(variables, vu_w1[0:F]) + _dot(eq_c2v, vu_w1[F:2 * F])
             + _dot(c2v, vu_w1[2 * F:3 * F]) + vu_bias)
        h = _leaky_relu(_pairnorm(h))
        new_variables = _dot(h, vu_w2_ref[...]) + vu_b2_ref[...] + 0.5 * variables
        return new_variables, new_constraints, new_eq_constraints

    variables = jnp.ones((V, F), jnp.float32)
    constraints = jnp.ones((C, F), jnp.float32)
    eq_constraints = jnp.ones((E, F), jnp.float32)

    # Warm-up: torch.no_grad() loop of pass_steps*4 steps, no output head.
    # TODO(synk): training-mode random.randint step count not replicated.
    variables, constraints, eq_constraints = lax.fori_loop(
        0, NUM_WARMUP, lambda _, c: step(*c),
        (variables, constraints, eq_constraints))

    # Output steps: the head (MLP + noise + sigmoid mix) only runs here.
    for i in range(PASS_STEPS):
        variables, constraints, eq_constraints = step(
            variables, constraints, eq_constraints)

        h = _dot(variables, ow1_ref[...]) + ob1_ref[...]
        h = _leaky_relu(_pairnorm(h))
        out_vars = _dot(h, ow2_ref[...]) + ob2_ref[...]
        out_vars = out_vars + noise_ref[i] * int_mask
        out = (jax.nn.sigmoid(out_vars) * int_mask
               + out_vars * (1.0 - int_mask) * CONT_SCALE)
        # Lane-pack both per-step outputs into a single store.
        # TODO(synk): for very large V, store transposed (bits, V) for fully
        # lane-dense writes and untranspose on the host.
        out_ref[i] = jnp.concatenate([out, out_vars], axis=-1)


# ----------------------------------------------------------------------------
# glue: parameters and forward wrapper
# ----------------------------------------------------------------------------
def init_params(key):
    F = FEATURE_MAPS
    ks = jax.random.split(key, 14)

    def lin(k, din, dout):
        k1, k2 = jax.random.split(k)
        bound = 1.0 / math.sqrt(din)
        w = jax.random.uniform(k1, (din, dout), jnp.float32, -bound, bound)
        b = jax.random.uniform(k2, (1, dout), jnp.float32, -bound, bound)
        return w, b

    vg_w1, vg_b1 = lin(ks[0], 3 * F + 2, F)
    vg_w2, vg_b2 = lin(ks[1], F, F)
    mq_w1, mq_b1 = lin(ks[2], 2 * F, F)
    mq_w2, mq_b2 = lin(ks[3], F, F)
    cu_w1, cu_b1 = lin(ks[4], 2 * F + 1, F)
    cu_w2, cu_b2 = lin(ks[5], F, 2 * F)
    mq2_w1, mq2_b1 = lin(ks[6], 2 * F, F)
    mq2_w2, mq2_b2 = lin(ks[7], F, F)
    ecu_w1, ecu_b1 = lin(ks[8], 2 * F + 1, F)
    ecu_w2, ecu_b2 = lin(ks[9], F, 2 * F)
    vu_w1, vu_b1 = lin(ks[10], 3 * F + 3, F)
    vu_w2, vu_b2 = lin(ks[11], F, F)
    out_w1, out_b1 = lin(ks[12], F, F)
    out_w2, out_b2 = lin(ks[13], F, OUTPUT_BITS)

    return (vg_w1, vg_b1, vg_w2, vg_b2,
            mq_w1, mq_b1, mq_w2, mq_b2,
            cu_w1, cu_b1, cu_w2, cu_b2,
            mq2_w1, mq2_b1, mq2_w2, mq2_b2,
            ecu_w1, ecu_b1, ecu_w2, ecu_b2,
            vu_w1, vu_b1, vu_w2, vu_b2,
            out_w1, out_b1, out_w2, out_b2)


def _vmem_capacity_bytes():
    try:
        cap = getattr(pltpu.get_tpu_info(), "vmem_capacity_bytes", None)
        if cap:
            return int(cap)
    except Exception:
        pass
    return 128 << 20   # v5e / v6e physical VMEM (v7x reports 64 MiB itself)


@jax.jit
def mip_forward(A, Aeq, const_values, eq_const_values, relaxed_solution,
                objective_multipliers, integer_mask, weights, seed):
    F = FEATURE_MAPS
    V, C = A.shape
    _, E = Aeq.shape

    (vg_w1, vg_b1, vg_w2, vg_b2,
     mq_w1, mq_b1, mq_w2, mq_b2,
     cu_w1, cu_b1, cu_w2, cu_b2,
     mq2_w1, mq2_b1, mq2_w2, mq2_b2,
     ecu_w1, ecu_b1, ecu_w2, ecu_b2,
     vu_w1, vu_b1, vu_w2, vu_b2,
     out_w1, out_b1, out_w2, out_b2) = weights

    A = A.astype(jnp.float32)
    Aeq = Aeq.astype(jnp.float32)
    relaxed = relaxed_solution[:, None].astype(jnp.float32)
    int_mask = integer_mask[:, None].astype(jnp.float32)
    cval = const_values[:, None].astype(jnp.float32)
    eqval = eq_const_values[:, None].astype(jnp.float32)

    obj = objective_multipliers[:, None].astype(jnp.float32)
    obj = obj / (jnp.sqrt(jnp.mean(jnp.square(obj))) + 1e-6)

    # vars_scaler = sqrt(sum(A**2, axis=-1) + 1e-6); kernel multiplies by 1/x.
    inv_vscal = 1.0 / jnp.sqrt(jnp.sum(jnp.square(A), axis=-1, keepdims=True) + 1e-6)
    # const_scaler / eq_const_scaler only feed use_preconditioning=True (off).

    # Step-invariant rank-1 bias folds for the four first layers.
    vg_bias = (int_mask * vg_w1[3 * F:3 * F + 1]
               + relaxed * vg_w1[3 * F + 1:3 * F + 2] + vg_b1)            # (V,F)
    cu_bias = cval * cu_w1[2 * F:2 * F + 1] + cu_b1                       # (C,F)
    ecu_bias = eqval * ecu_w1[2 * F:2 * F + 1] + ecu_b1                   # (E,F)
    vu_bias = (obj * vu_w1[3 * F:3 * F + 1]
               + int_mask * vu_w1[3 * F + 1:3 * F + 2]
               + relaxed * vu_w1[3 * F + 2:3 * F + 3] + vu_b1)            # (V,F)

    # Logistic noise (sample_logistic), one draw per output step, host-side.
    key = jax.random.PRNGKey(seed)
    u = jax.random.uniform(key, (PASS_STEPS, V, OUTPUT_BITS), jnp.float32)
    sample = (LOGISTIC_EPS - (1.0 - LOGISTIC_EPS)) * u + (1.0 - LOGISTIC_EPS)
    noise = jnp.log(sample / (1.0 - sample))

    inputs = (
        A, A.T, Aeq, Aeq.T,
        vg_bias, cu_bias, ecu_bias, vu_bias,
        int_mask, inv_vscal, noise,
        vg_w1[:3 * F], vg_w2, vg_b2,
        mq_w1, mq_b1, mq_w2, mq_b2,
        cu_w1[:2 * F], cu_w2[:, :F], cu_b2[:, :F], cu_w2[:, F:], cu_b2[:, F:],
        mq2_w1, mq2_b1, mq2_w2, mq2_b2,
        ecu_w1[:2 * F], ecu_w2[:, :F], ecu_b2[:, :F], ecu_w2[:, F:], ecu_b2[:, F:],
        vu_w1[:3 * F], vu_w2, vu_b2,
        out_w1, out_b1, out_w2, out_b2,
    )

    out_shape = jax.ShapeDtypeStruct((PASS_STEPS, V, 2 * OUTPUT_BITS), jnp.float32)

    # VMEM budget: all inputs are resident exactly once (grid=(), no double
    # buffering) plus an activation working-set margin; capped per-chip.
    resident = sum(math.prod(x.shape) * jnp.dtype(x.dtype).itemsize for x in inputs)
    activ = 24 * (V + C + E) * F * 4
    out_bytes = math.prod(out_shape.shape) * 4
    cap = _vmem_capacity_bytes()
    vmem_limit = int(min(max(resident + activ + out_bytes + (8 << 20), 32 << 20),
                         int(cap * 0.85)))

    outs = pl.pallas_call(
        mip_fused_kernel,
        out_shape=out_shape,
        compiler_params=pltpu.CompilerParams(vmem_limit_bytes=vmem_limit),
    )(*inputs)

    outputs = [outs[i, :, :OUTPUT_BITS] for i in range(PASS_STEPS)]
    out_vars = outs[PASS_STEPS - 1, :, OUTPUT_BITS:]
    return outputs, out_vars


# ----------------------------------------------------------------------------
if __name__ == "__main__":
    key = jax.random.PRNGKey(0)
    V, C, E = 24, 16, 8   # var_count, const_count, eq_const_count

    ks = jax.random.split(key, 9)
    A = jnp.where(jax.random.uniform(ks[1], (V, C)) < 0.3,
                  jax.random.normal(ks[0], (V, C)), 0.0)      # vars_const_graph
    Aeq = jnp.where(jax.random.uniform(ks[3], (V, E)) < 0.3,
                    jax.random.normal(ks[2], (V, E)), 0.0)    # vars_eq_const_graph
    const_values = jax.random.normal(ks[4], (C,))
    eq_const_values = jax.random.normal(ks[5], (E,))
    relaxed_solution = jax.random.uniform(ks[6], (V,))
    objective_multipliers = jax.random.normal(ks[7], (V,))
    integer_mask = (jax.random.uniform(ks[8], (V,)) < 0.5).astype(jnp.float32)

    weights = init_params(jax.random.PRNGKey(42))

    outputs, out_vars = mip_forward(A, Aeq, const_values, eq_const_values,
                                    relaxed_solution, objective_multipliers,
                                    integer_mask, weights, 1234)
    jax.block_until_ready((outputs, out_vars))
    assert len(outputs) == PASS_STEPS
    assert outputs[0].shape == (V, OUTPUT_BITS)
    assert out_vars.shape == (V, OUTPUT_BITS)
    assert all(bool(jnp.all(jnp.isfinite(o))) for o in outputs)
    assert bool(jnp.all(jnp.isfinite(out_vars)))
    print("KERNEL_OK")
</pallas_src>

<mosaic_0001>
module attributes {stable_mosaic.version = 11 : i64} {
  func.func @mip_fused_kernel(%arg0: memref<24x16xf32, #tpu.memory_space<vmem>>, %arg1: memref<16x24xf32, #tpu.memory_space<vmem>>, %arg2: memref<24x8xf32, #tpu.memory_space<vmem>>, %arg3: memref<8x24xf32, #tpu.memory_space<vmem>>, %arg4: memref<24x32xf32, #tpu.memory_space<vmem>>, %arg5: memref<16x32xf32, #tpu.memory_space<vmem>>, %arg6: memref<8x32xf32, #tpu.memory_space<vmem>>, %arg7: memref<24x32xf32, #tpu.memory_space<vmem>>, %arg8: memref<24x1xf32, #tpu.memory_space<vmem>>, %arg9: memref<24x1xf32, #tpu.memory_space<vmem>>, %arg10: memref<2x24x4xf32, #tpu.memory_space<vmem>>, %arg11: memref<96x32xf32, #tpu.memory_space<vmem>>, %arg12: memref<32x32xf32, #tpu.memory_space<vmem>>, %arg13: memref<1x32xf32, #tpu.memory_space<vmem>>, %arg14: memref<64x32xf32, #tpu.memory_space<vmem>>, %arg15: memref<1x32xf32, #tpu.memory_space<vmem>>, %arg16: memref<32x32xf32, #tpu.memory_space<vmem>>, %arg17: memref<1x32xf32, #tpu.memory_space<vmem>>, %arg18: memref<64x32xf32, #tpu.memory_space<vmem>>, %arg19: memref<32x32xf32, #tpu.memory_space<vmem>>, %arg20: memref<1x32xf32, #tpu.memory_space<vmem>>, %arg21: memref<32x32xf32, #tpu.memory_space<vmem>>, %arg22: memref<1x32xf32, #tpu.memory_space<vmem>>, %arg23: memref<64x32xf32, #tpu.memory_space<vmem>>, %arg24: memref<1x32xf32, #tpu.memory_space<vmem>>, %arg25: memref<32x32xf32, #tpu.memory_space<vmem>>, %arg26: memref<1x32xf32, #tpu.memory_space<vmem>>, %arg27: memref<64x32xf32, #tpu.memory_space<vmem>>, %arg28: memref<32x32xf32, #tpu.memory_space<vmem>>, %arg29: memref<1x32xf32, #tpu.memory_space<vmem>>, %arg30: memref<32x32xf32, #tpu.memory_space<vmem>>, %arg31: memref<1x32xf32, #tpu.memory_space<vmem>>, %arg32: memref<96x32xf32, #tpu.memory_space<vmem>>, %arg33: memref<32x32xf32, #tpu.memory_space<vmem>>, %arg34: memref<1x32xf32, #tpu.memory_space<vmem>>, %arg35: memref<32x32xf32, #tpu.memory_space<vmem>>, %arg36: memref<1x32xf32, #tpu.memory_space<vmem>>, %arg37: memref<32x4xf32, #tpu.memory_space<vmem>>, %arg38: memref<1x4xf32, #tpu.memory_space<vmem>>, %arg39: memref<2x24x8xf32, #tpu.memory_space<vmem>>) attributes {dimension_semantics = [], scalar_prefetch = 0 : i64, scratch_operands = 0 : i64, tpu.core_type = #tpu.core_type<tc>} {
    %c0 = arith.constant 0 : index
    %c0_0 = arith.constant 0 : index
    %0 = vector.load %arg0[%c0, %c0_0] : memref<24x16xf32, #tpu.memory_space<vmem>>, vector<24x16xf32>
    %c0_1 = arith.constant 0 : index
    %c0_2 = arith.constant 0 : index
    %1 = vector.load %arg1[%c0_1, %c0_2] : memref<16x24xf32, #tpu.memory_space<vmem>>, vector<16x24xf32>
    %c0_3 = arith.constant 0 : index
    %c0_4 = arith.constant 0 : index
    %2 = vector.load %arg2[%c0_3, %c0_4] : memref<24x8xf32, #tpu.memory_space<vmem>>, vector<24x8xf32>
    %c0_5 = arith.constant 0 : index
    %c0_6 = arith.constant 0 : index
    %3 = vector.load %arg3[%c0_5, %c0_6] : memref<8x24xf32, #tpu.memory_space<vmem>>, vector<8x24xf32>
    %c0_7 = arith.constant 0 : index
    %c0_8 = arith.constant 0 : index
    %4 = vector.load %arg4[%c0_7, %c0_8] : memref<24x32xf32, #tpu.memory_space<vmem>>, vector<24x32xf32>
    %c0_9 = arith.constant 0 : index
    %c0_10 = arith.constant 0 : index
    %5 = vector.load %arg5[%c0_9, %c0_10] : memref<16x32xf32, #tpu.memory_space<vmem>>, vector<16x32xf32>
    %c0_11 = arith.constant 0 : index
    %c0_12 = arith.constant 0 : index
    %6 = vector.load %arg6[%c0_11, %c0_12] : memref<8x32xf32, #tpu.memory_space<vmem>>, vector<8x32xf32>
    %c0_13 = arith.constant 0 : index
    %c0_14 = arith.constant 0 : index
    %7 = vector.load %arg7[%c0_13, %c0_14] : memref<24x32xf32, #tpu.memory_space<vmem>>, vector<24x32xf32>
    %c0_15 = arith.constant 0 : index
    %c0_16 = arith.constant 0 : index
    %8 = vector.load %arg8[%c0_15, %c0_16] : memref<24x1xf32, #tpu.memory_space<vmem>>, vector<24x1xf32>
    %c0_17 = arith.constant 0 : index
    %c0_18 = arith.constant 0 : index
    %9 = vector.load %arg9[%c0_17, %c0_18] : memref<24x1xf32, #tpu.memory_space<vmem>>, vector<24x1xf32>
    %cst = arith.constant 1.000000e+00 : f32
    %10 = vector.broadcast %cst : f32 to vector<24x32xf32>
    %cst_19 = arith.constant 1.000000e+00 : f32
    %11 = vector.broadcast %cst_19 : f32 to vector<16x32xf32>
    %cst_20 = arith.constant 1.000000e+00 : f32
    %12 = vector.broadcast %cst_20 : f32 to vector<8x32xf32>
    %c0_i32 = arith.constant 0 : i32
    %c8_i32 = arith.constant 8 : i32
    %13 = arith.addi %c0_i32, %c8_i32 : i32
    %c1_i32 = arith.constant 1 : i32
    %14:3 = scf.for %arg40 = %c0_i32 to %13 step %c1_i32 iter_args(%arg41 = %10, %arg42 = %11, %arg43 = %12) -> (vector<24x32xf32>, vector<16x32xf32>, vector<8x32xf32>)  : i32 {
      %cst_280 = arith.constant dense<0.000000e+00> : vector<24x32xf32>
      %507 = tpu.matmul %0, %arg42, %cst_280 {dimension_numbers = #tpu.dot_dimension_numbers<[1], [0], [0], [1], [0, 0, 1, 1], [], []>} : vector<24x16xf32>, vector<16x32xf32>, vector<24x32xf32> -> vector<24x32xf32>
      %cst_281 = arith.constant dense<0.000000e+00> : vector<24x32xf32>
      %508 = tpu.matmul %2, %arg43, %cst_281 {dimension_numbers = #tpu.dot_dimension_numbers<[1], [0], [0], [1], [0, 0, 1, 1], [], []>} : vector<24x8xf32>, vector<8x32xf32>, vector<24x32xf32> -> vector<24x32xf32>
      %c0_282 = arith.constant 0 : index
      %c0_283 = arith.constant 0 : index
      %509 = vector.load %arg11[%c0_282, %c0_283] : memref<96x32xf32, #tpu.memory_space<vmem>>, vector<96x32xf32>
      %510 = vector.extract_strided_slice %509 {offsets = [0, 0], sizes = [32, 32], strides = [1, 1]} : vector<96x32xf32> to vector<32x32xf32>
      %cst_284 = arith.constant dense<0.000000e+00> : vector<24x32xf32>
      %511 = tpu.matmul %arg41, %510, %cst_284 {dimension_numbers = #tpu.dot_dimension_numbers<[1], [0], [0], [1], [0, 0, 1, 1], [], []>} : vector<24x32xf32>, vector<32x32xf32>, vector<24x32xf32> -> vector<24x32xf32>
      %512 = vector.extract_strided_slice %509 {offsets = [32, 0], sizes = [32, 32], strides = [1, 1]} : vector<96x32xf32> to vector<32x32xf32>
      %cst_285 = arith.constant dense<0.000000e+00> : vector<24x32xf32>
      %513 = tpu.matmul %507, %512, %cst_285 {dimension_numbers = #tpu.dot_dimension_numbers<[1], [0], [0], [1], [0, 0, 1, 1], [], []>} : vector<24x32xf32>, vector<32x32xf32>, vector<24x32xf32> -> vector<24x32xf32>
      %514 = arith.addf %511, %513 : vector<24x32xf32>
      %515 = vector.extract_strided_slice %509 {offsets = [64, 0], sizes = [32, 32], strides = [1, 1]} : vector<96x32xf32> to vector<32x32xf32>
      %cst_286 = arith.constant dense<0.000000e+00> : vector<24x32xf32>
      %516 = tpu.matmul %508, %515, %cst_286 {dimension_numbers = #tpu.dot_dimension_numbers<[1], [0], [0], [1], [0, 0, 1, 1], [], []>} : vector<24x32xf32>, vector<32x32xf32>, vector<24x32xf32> -> vector<24x32xf32>
      %517 = arith.addf %514, %516 : vector<24x32xf32>
      %518 = arith.addf %517, %4 : vector<24x32xf32>
      %519 = arith.mulf %518, %518 : vector<24x32xf32>
      %cst_287 = arith.constant dense<0.000000e+00> : vector<24xf32>
      %520 = vector.multi_reduction <add>, %519, %cst_287 [1] : vector<24x32xf32> to vector<24xf32>
      %521 = vector.shape_cast %520 : vector<24xf32> to vector<24x1xf32>
      %cst_288 = arith.constant 3.200000e+01 : f32
      %522 = vector.broadcast %cst_288 : f32 to vector<24x1xf32>
      %523 = arith.divf %521, %522 : vector<24x1xf32>
      %cst_289 = arith.constant 9.99999997E-7 : f32
      %524 = vector.broadcast %cst_289 : f32 to vector<24x1xf32>
      %525 = arith.addf %523, %524 : vector<24x1xf32>
      %526 = math.rsqrt %525 : vector<24x1xf32>
      %527 = vector.broadcast %526 : vector<24x1xf32> to vector<24x32xf32>
      %528 = arith.mulf %518, %527 : vector<24x32xf32>
      %cst_290 = arith.constant 0.000000e+00 : f32
      %529 = vector.broadcast %cst_290 : f32 to vector<24x32xf32>
      %530 = arith.cmpf oge, %528, %529 : vector<24x32xf32>
      %cst_291 = arith.constant 0.00999999977 : f32
      %531 = vector.broadcast %cst_291 : f32 to vector<24x32xf32>
      %532 = arith.mulf %531, %528 : vector<24x32xf32>
      %533 = arith.select %530, %528, %532 : vector<24x32xi1>, vector<24x32xf32>
      %c0_292 = arith.constant 0 : index
      %c0_293 = arith.constant 0 : index
      %534 = vector.load %arg12[%c0_292, %c0_293] : memref<32x32xf32, #tpu.memory_space<vmem>>, vector<32x32xf32>
      %cst_294 = arith.constant dense<0.000000e+00> : vector<24x32xf32>
      %535 = tpu.matmul %533, %534, %cst_294 {dimension_numbers = #tpu.dot_dimension_numbers<[1], [0], [0], [1], [0, 0, 1, 1], [], []>} : vector<24x32xf32>, vector<32x32xf32>, vector<24x32xf32> -> vector<24x32xf32>
      %c0_295 = arith.constant 0 : index
      %c0_296 = arith.constant 0 : index
      %536 = vector.load %arg13[%c0_295, %c0_296] : memref<1x32xf32, #tpu.memory_space<vmem>>, vector<1x32xf32>
      %537 = vector.broadcast %536 : vector<1x32xf32> to vector<24x32xf32>
      %538 = arith.addf %535, %537 : vector<24x32xf32>
      %539 = arith.negf %538 : vector<24x32xf32>
      %540 = math.exp %539 : vector<24x32xf32>
      %cst_297 = arith.constant 1.000000e+00 : f32
      %541 = vector.broadcast %cst_297 : f32 to vector<24x32xf32>
      %542 = arith.addf %541, %540 : vector<24x32xf32>
      %543 = arith.divf %541, %542 : vector<24x32xf32>
      %cst_298 = arith.constant dense<0.000000e+00> : vector<16x32xf32>
      %544 = tpu.matmul %1, %arg41, %cst_298 {dimension_numbers = #tpu.dot_dimension_numbers<[1], [0], [0], [1], [0, 0, 1, 1], [], []>} : vector<16x24xf32>, vector<24x32xf32>, vector<16x32xf32> -> vector<16x32xf32>
      %cst_299 = arith.constant dense<0.000000e+00> : vector<16x32xf32>
      %545 = tpu.matmul %1, %543, %cst_299 {dimension_numbers = #tpu.dot_dimension_numbers<[1], [0], [0], [1], [0, 0, 1, 1], [], []>} : vector<16x24xf32>, vector<24x32xf32>, vector<16x32xf32> -> vector<16x32xf32>
      %c0_300 = arith.constant 0 : index
      %c0_301 = arith.constant 0 : index
      %546 = vector.load %arg14[%c0_300, %c0_301] : memref<64x32xf32, #tpu.memory_space<vmem>>, vector<64x32xf32>
      %547 = vector.extract_strided_slice %546 {offsets = [0, 0], sizes = [32, 32], strides = [1, 1]} : vector<64x32xf32> to vector<32x32xf32>
      %cst_302 = arith.constant dense<0.000000e+00> : vector<16x32xf32>
      %548 = tpu.matmul %544, %547, %cst_302 {dimension_numbers = #tpu.dot_dimension_numbers<[1], [0], [0], [1], [0, 0, 1, 1], [], []>} : vector<16x32xf32>, vector<32x32xf32>, vector<16x32xf32> -> vector<16x32xf32>
      %549 = vector.extract_strided_slice %546 {offsets = [32, 0], sizes = [32, 32], strides = [1, 1]} : vector<64x32xf32> to vector<32x32xf32>
      %cst_303 = arith.constant dense<0.000000e+00> : vector<16x32xf32>
      %550 = tpu.matmul %545, %549, %cst_303 {dimension_numbers = #tpu.dot_dimension_numbers<[1], [0], [0], [1], [0, 0, 1, 1], [], []>} : vector<16x32xf32>, vector<32x32xf32>, vector<16x32xf32> -> vector<16x32xf32>
      %551 = arith.addf %548, %550 : vector<16x32xf32>
      %c0_304 = arith.constant 0 : index
      %c0_305 = arith.constant 0 : index
      %552 = vector.load %arg15[%c0_304, %c0_305] : memref<1x32xf32, #tpu.memory_space<vmem>>, vector<1x32xf32>
      %553 = vector.broadcast %552 : vector<1x32xf32> to vector<16x32xf32>
      %554 = arith.addf %551, %553 : vector<16x32xf32>
      %555 = arith.mulf %554, %554 : vector<16x32xf32>
      %cst_306 = arith.constant dense<0.000000e+00> : vector<16xf32>
      %556 = vector.multi_reduction <add>, %555, %cst_306 [1] : vector<16x32xf32> to vector<16xf32>
      %557 = vector.shape_cast %556 : vector<16xf32> to vector<16x1xf32>
      %cst_307 = arith.constant 3.200000e+01 : f32
      %558 = vector.broadcast %cst_307 : f32 to vector<16x1xf32>
      %559 = arith.divf %557, %558 : vector<16x1xf32>
      %cst_308 = arith.constant 9.99999997E-7 : f32
      %560 = vector.broadcast %cst_308 : f32 to vector<16x1xf32>
      %561 = arith.addf %559, %560 : vector<16x1xf32>
      %562 = math.rsqrt %561 : vector<16x1xf32>
      %563 = vector.broadcast %562 : vector<16x1xf32> to vector<16x32xf32>
      %564 = arith.mulf %554, %563 : vector<16x32xf32>
      %cst_309 = arith.constant 0.000000e+00 : f32
      %565 = vector.broadcast %cst_309 : f32 to vector<16x32xf32>
      %566 = arith.cmpf oge, %564, %565 : vector<16x32xf32>
      %cst_310 = arith.constant 0.00999999977 : f32
      %567 = vector.broadcast %cst_310 : f32 to vector<16x32xf32>
      %568 = arith.mulf %567, %564 : vector<16x32xf32>
      %569 = arith.select %566, %564, %568 : vector<16x32xi1>, vector<16x32xf32>
      %c0_311 = arith.constant 0 : index
      %c0_312 = arith.constant 0 : index
      %570 = vector.load %arg16[%c0_311, %c0_312] : memref<32x32xf32, #tpu.memory_space<vmem>>, vector<32x32xf32>
      %cst_313 = arith.constant dense<0.000000e+00> : vector<16x32xf32>
      %571 = tpu.matmul %569, %570, %cst_313 {dimension_numbers = #tpu.dot_dimension_numbers<[1], [0], [0], [1], [0, 0, 1, 1], [], []>} : vector<16x32xf32>, vector<32x32xf32>, vector<16x32xf32> -> vector<16x32xf32>
      %c0_314 = arith.constant 0 : index
      %c0_315 = arith.constant 0 : index
      %572 = vector.load %arg17[%c0_314, %c0_315] : memref<1x32xf32, #tpu.memory_space<vmem>>, vector<1x32xf32>
      %573 = vector.broadcast %572 : vector<1x32xf32> to vector<16x32xf32>
      %574 = arith.addf %571, %573 : vector<16x32xf32>
      %c0_316 = arith.constant 0 : index
      %c0_317 = arith.constant 0 : index
      %575 = vector.load %arg18[%c0_316, %c0_317] : memref<64x32xf32, #tpu.memory_space<vmem>>, vector<64x32xf32>
      %576 = vector.extract_strided_slice %575 {offsets = [0, 0], sizes = [32, 32], strides = [1, 1]} : vector<64x32xf32> to vector<32x32xf32>
      %cst_318 = arith.constant dense<0.000000e+00> : vector<16x32xf32>
      %577 = tpu.matmul %arg42, %576, %cst_318 {dimension_numbers = #tpu.dot_dimension_numbers<[1], [0], [0], [1], [0, 0, 1, 1], [], []>} : vector<16x32xf32>, vector<32x32xf32>, vector<16x32xf32> -> vector<16x32xf32>
      %578 = vector.extract_strided_slice %575 {offsets = [32, 0], sizes = [32, 32], strides = [1, 1]} : vector<64x32xf32> to vector<32x32xf32>
      %cst_319 = arith.constant dense<0.000000e+00> : vector<16x32xf32>
      %579 = tpu.matmul %574, %578, %cst_319 {dimension_numbers = #tpu.dot_dimension_numbers<[1], [0], [0], [1], [0, 0, 1, 1], [], []>} : vector<16x32xf32>, vector<32x32xf32>, vector<16x32xf32> -> vector<16x32xf32>
      %580 = arith.addf %577, %579 : vector<16x32xf32>
      %581 = arith.addf %580, %5 : vector<16x32xf32>
      %582 = arith.mulf %581, %581 : vector<16x32xf32>
      %cst_320 = arith.constant dense<0.000000e+00> : vector<16xf32>
      %583 = vector.multi_reduction <add>, %582, %cst_320 [1] : vector<16x32xf32> to vector<16xf32>
      %584 = vector.shape_cast %583 : vector<16xf32> to vector<16x1xf32>
      %cst_321 = arith.constant 3.200000e+01 : f32
      %585 = vector.broadcast %cst_321 : f32 to vector<16x1xf32>
      %586 = arith.divf %584, %585 : vector<16x1xf32>
      %cst_322 = arith.constant 9.99999997E-7 : f32
      %587 = vector.broadcast %cst_322 : f32 to vector<16x1xf32>
      %588 = arith.addf %586, %587 : vector<16x1xf32>
      %589 = math.rsqrt %588 : vector<16x1xf32>
      %590 = vector.broadcast %589 : vector<16x1xf32> to vector<16x32xf32>
      %591 = arith.mulf %581, %590 : vector<16x32xf32>
      %cst_323 = arith.constant 0.000000e+00 : f32
      %592 = vector.broadcast %cst_323 : f32 to vector<16x32xf32>
      %593 = arith.cmpf oge, %591, %592 : vector<16x32xf32>
      %cst_324 = arith.constant 0.00999999977 : f32
      %594 = vector.broadcast %cst_324 : f32 to vector<16x32xf32>
      %595 = arith.mulf %594, %591 : vector<16x32xf32>
      %596 = arith.select %593, %591, %595 : vector<16x32xi1>, vector<16x32xf32>
      %c0_325 = arith.constant 0 : index
      %c0_326 = arith.constant 0 : index
      %597 = vector.load %arg19[%c0_325, %c0_326] : memref<32x32xf32, #tpu.memory_space<vmem>>, vector<32x32xf32>
      %cst_327 = arith.constant dense<0.000000e+00> : vector<16x32xf32>
      %598 = tpu.matmul %596, %597, %cst_327 {dimension_numbers = #tpu.dot_dimension_numbers<[1], [0], [0], [1], [0, 0, 1, 1], [], []>} : vector<16x32xf32>, vector<32x32xf32>, vector<16x32xf32> -> vector<16x32xf32>
      %c0_328 = arith.constant 0 : index
      %c0_329 = arith.constant 0 : index
      %599 = vector.load %arg20[%c0_328, %c0_329] : memref<1x32xf32, #tpu.memory_space<vmem>>, vector<1x32xf32>
      %600 = vector.broadcast %599 : vector<1x32xf32> to vector<16x32xf32>
      %601 = arith.addf %598, %600 : vector<16x32xf32>
      %cst_330 = arith.constant 5.000000e-01 : f32
      %602 = vector.broadcast %cst_330 : f32 to vector<16x32xf32>
      %603 = arith.mulf %602, %arg42 : vector<16x32xf32>
      %604 = arith.addf %601, %603 : vector<16x32xf32>
      %c0_331 = arith.constant 0 : index
      %c0_332 = arith.constant 0 : index
      %605 = vector.load %arg21[%c0_331, %c0_332] : memref<32x32xf32, #tpu.memory_space<vmem>>, vector<32x32xf32>
      %cst_333 = arith.constant dense<0.000000e+00> : vector<16x32xf32>
      %606 = tpu.matmul %596, %605, %cst_333 {dimension_numbers = #tpu.dot_dimension_numbers<[1], [0], [0], [1], [0, 0, 1, 1], [], []>} : vector<16x32xf32>, vector<32x32xf32>, vector<16x32xf32> -> vector<16x32xf32>
      %c0_334 = arith.constant 0 : index
      %c0_335 = arith.constant 0 : index
      %607 = vector.load %arg22[%c0_334, %c0_335] : memref<1x32xf32, #tpu.memory_space<vmem>>, vector<1x32xf32>
      %608 = vector.broadcast %607 : vector<1x32xf32> to vector<16x32xf32>
      %609 = arith.addf %606, %608 : vector<16x32xf32>
      %cst_336 = arith.constant dense<0.000000e+00> : vector<24x32xf32>
      %610 = tpu.matmul %0, %609, %cst_336 {dimension_numbers = #tpu.dot_dimension_numbers<[1], [0], [0], [1], [0, 0, 1, 1], [], []>} : vector<24x16xf32>, vector<16x32xf32>, vector<24x32xf32> -> vector<24x32xf32>
      %611 = vector.broadcast %9 : vector<24x1xf32> to vector<24x32xf32>
      %612 = arith.mulf %610, %611 : vector<24x32xf32>
      %cst_337 = arith.constant dense<0.000000e+00> : vector<8x32xf32>
      %613 = tpu.matmul %3, %arg41, %cst_337 {dimension_numbers = #tpu.dot_dimension_numbers<[1], [0], [0], [1], [0, 0, 1, 1], [], []>} : vector<8x24xf32>, vector<24x32xf32>, vector<8x32xf32> -> vector<8x32xf32>
      %cst_338 = arith.constant dense<0.000000e+00> : vector<8x32xf32>
      %614 = tpu.matmul %3, %543, %cst_338 {dimension_numbers = #tpu.dot_dimension_numbers<[1], [0], [0], [1], [0, 0, 1, 1], [], []>} : vector<8x24xf32>, vector<24x32xf32>, vector<8x32xf32> -> vector<8x32xf32>
      %c0_339 = arith.constant 0 : index
      %c0_340 = arith.constant 0 : index
      %615 = vector.load %arg23[%c0_339, %c0_340] : memref<64x32xf32, #tpu.memory_space<vmem>>, vector<64x32xf32>
      %616 = vector.extract_strided_slice %615 {offsets = [0, 0], sizes = [32, 32], strides = [1, 1]} : vector<64x32xf32> to vector<32x32xf32>
      %cst_341 = arith.constant dense<0.000000e+00> : vector<8x32xf32>
      %617 = tpu.matmul %613, %616, %cst_341 {dimension_numbers = #tpu.dot_dimension_numbers<[1], [0], [0], [1], [0, 0, 1, 1], [], []>} : vector<8x32xf32>, vector<32x32xf32>, vector<8x32xf32> -> vector<8x32xf32>
      %618 = vector.extract_strided_slice %615 {offsets = [32, 0], sizes = [32, 32], strides = [1, 1]} : vector<64x32xf32> to vector<32x32xf32>
      %cst_342 = arith.constant dense<0.000000e+00> : vector<8x32xf32>
      %619 = tpu.matmul %614, %618, %cst_342 {dimension_numbers = #tpu.dot_dimension_numbers<[1], [0], [0], [1], [0, 0, 1, 1], [], []>} : vector<8x32xf32>, vector<32x32xf32>, vector<8x32xf32> -> vector<8x32xf32>
      %620 = arith.addf %617, %619 : vector<8x32xf32>
      %c0_343 = arith.constant 0 : index
      %c0_344 = arith.constant 0 : index
      %621 = vector.load %arg24[%c0_343, %c0_344] : memref<1x32xf32, #tpu.memory_space<vmem>>, vector<1x32xf32>
      %622 = vector.broadcast %621 : vector<1x32xf32> to vector<8x32xf32>
      %623 = arith.addf %620, %622 : vector<8x32xf32>
      %624 = arith.mulf %623, %623 : vector<8x32xf32>
      %cst_345 = arith.constant dense<0.000000e+00> : vector<8xf32>
      %625 = vector.multi_reduction <add>, %624, %cst_345 [1] : vector<8x32xf32> to vector<8xf32>
      %626 = vector.shape_cast %625 : vector<8xf32> to vector<8x1xf32>
      %cst_346 = arith.constant 3.200000e+01 : f32
      %627 = vector.broadcast %cst_346 : f32 to vector<8x1xf32>
      %628 = arith.divf %626, %627 : vector<8x1xf32>
      %cst_347 = arith.constant 9.99999997E-7 : f32
      %629 = vector.broadcast %cst_347 : f32 to vector<8x1xf32>
      %630 = arith.addf %628, %629 : vector<8x1xf32>
      %631 = math.rsqrt %630 : vector<8x1xf32>
      %632 = vector.broadcast %631 : vector<8x1xf32> to vector<8x32xf32>
      %633 = arith.mulf %623, %632 : vector<8x32xf32>
      %cst_348 = arith.constant 0.000000e+00 : f32
      %634 = vector.broadcast %cst_348 : f32 to vector<8x32xf32>
      %635 = arith.cmpf oge, %633, %634 : vector<8x32xf32>
      %cst_349 = arith.constant 0.00999999977 : f32
      %636 = vector.broadcast %cst_349 : f32 to vector<8x32xf32>
      %637 = arith.mulf %636, %633 : vector<8x32xf32>
      %638 = arith.select %635, %633, %637 : vector<8x32xi1>, vector<8x32xf32>
      %c0_350 = arith.constant 0 : index
      %c0_351 = arith.constant 0 : index
      %639 = vector.load %arg25[%c0_350, %c0_351] : memref<32x32xf32, #tpu.memory_space<vmem>>, vector<32x32xf32>
      %cst_352 = arith.constant dense<0.000000e+00> : vector<8x32xf32>
      %640 = tpu.matmul %638, %639, %cst_352 {dimension_numbers = #tpu.dot_dimension_numbers<[1], [0], [0], [1], [0, 0, 1, 1], [], []>} : vector<8x32xf32>, vector<32x32xf32>, vector<8x32xf32> -> vector<8x32xf32>
      %c0_353 = arith.constant 0 : index
      %c0_354 = arith.constant 0 : index
      %641 = vector.load %arg26[%c0_353, %c0_354] : memref<1x32xf32, #tpu.memory_space<vmem>>, vector<1x32xf32>
      %642 = vector.broadcast %641 : vector<1x32xf32> to vector<8x32xf32>
      %643 = arith.addf %640, %642 : vector<8x32xf32>
      %c0_355 = arith.constant 0 : index
      %c0_356 = arith.constant 0 : index
      %644 = vector.load %arg27[%c0_355, %c0_356] : memref<64x32xf32, #tpu.memory_space<vmem>>, vector<64x32xf32>
      %645 = vector.extract_strided_slice %644 {offsets = [0, 0], sizes = [32, 32], strides = [1, 1]} : vector<64x32xf32> to vector<32x32xf32>
      %cst_357 = arith.constant dense<0.000000e+00> : vector<8x32xf32>
      %646 = tpu.matmul %arg43, %645, %cst_357 {dimension_numbers = #tpu.dot_dimension_numbers<[1], [0], [0], [1], [0, 0, 1, 1], [], []>} : vector<8x32xf32>, vector<32x32xf32>, vector<8x32xf32> -> vector<8x32xf32>
      %647 = vector.extract_strided_slice %644 {offsets = [32, 0], sizes = [32, 32], strides = [1, 1]} : vector<64x32xf32> to vector<32x32xf32>
      %cst_358 = arith.constant dense<0.000000e+00> : vector<8x32xf32>
      %648 = tpu.matmul %643, %647, %cst_358 {dimension_numbers = #tpu.dot_dimension_numbers<[1], [0], [0], [1], [0, 0, 1, 1], [], []>} : vector<8x32xf32>, vector<32x32xf32>, vector<8x32xf32> -> vector<8x32xf32>
      %649 = arith.addf %646, %648 : vector<8x32xf32>
      %650 = arith.addf %649, %6 : vector<8x32xf32>
      %651 = arith.mulf %650, %650 : vector<8x32xf32>
      %cst_359 = arith.constant dense<0.000000e+00> : vector<8xf32>
      %652 = vector.multi_reduction <add>, %651, %cst_359 [1] : vector<8x32xf32> to vector<8xf32>
      %653 = vector.shape_cast %652 : vector<8xf32> to vector<8x1xf32>
      %cst_360 = arith.constant 3.200000e+01 : f32
      %654 = vector.broadcast %cst_360 : f32 to vector<8x1xf32>
      %655 = arith.divf %653, %654 : vector<8x1xf32>
      %cst_361 = arith.constant 9.99999997E-7 : f32
      %656 = vector.broadcast %cst_361 : f32 to vector<8x1xf32>
      %657 = arith.addf %655, %656 : vector<8x1xf32>
      %658 = math.rsqrt %657 : vector<8x1xf32>
      %659 = vector.broadcast %658 : vector<8x1xf32> to vector<8x32xf32>
      %660 = arith.mulf %650, %659 : vector<8x32xf32>
      %cst_362 = arith.constant 0.000000e+00 : f32
      %661 = vector.broadcast %cst_362 : f32 to vector<8x32xf32>
      %662 = arith.cmpf oge, %660, %661 : vector<8x32xf32>
      %cst_363 = arith.constant 0.00999999977 : f32
      %663 = vector.broadcast %cst_363 : f32 to vector<8x32xf32>
      %664 = arith.mulf %663, %660 : vector<8x32xf32>
      %665 = arith.select %662, %660, %664 : vector<8x32xi1>, vector<8x32xf32>
      %c0_364 = arith.constant 0 : index
      %c0_365 = arith.constant 0 : index
      %666 = vector.load %arg28[%c0_364, %c0_365] : memref<32x32xf32, #tpu.memory_space<vmem>>, vector<32x32xf32>
      %cst_366 = arith.constant dense<0.000000e+00> : vector<8x32xf32>
      %667 = tpu.matmul %665, %666, %cst_366 {dimension_numbers = #tpu.dot_dimension_numbers<[1], [0], [0], [1], [0, 0, 1, 1], [], []>} : vector<8x32xf32>, vector<32x32xf32>, vector<8x32xf32> -> vector<8x32xf32>
      %c0_367 = arith.constant 0 : index
      %c0_368 = arith.constant 0 : index
      %668 = vector.load %arg29[%c0_367, %c0_368] : memref<1x32xf32, #tpu.memory_space<vmem>>, vector<1x32xf32>
      %669 = vector.broadcast %668 : vector<1x32xf32> to vector<8x32xf32>
      %670 = arith.addf %667, %669 : vector<8x32xf32>
      %cst_369 = arith.constant 5.000000e-01 : f32
      %671 = vector.broadcast %cst_369 : f32 to vector<8x32xf32>
      %672 = arith.mulf %671, %arg43 : vector<8x32xf32>
      %673 = arith.addf %670, %672 : vector<8x32xf32>
      %c0_370 = arith.constant 0 : index
      %c0_371 = arith.constant 0 : index
      %674 = vector.load %arg30[%c0_370, %c0_371] : memref<32x32xf32, #tpu.memory_space<vmem>>, vector<32x32xf32>
      %cst_372 = arith.constant dense<0.000000e+00> : vector<8x32xf32>
      %675 = tpu.matmul %665, %674, %cst_372 {dimension_numbers = #tpu.dot_dimension_numbers<[1], [0], [0], [1], [0, 0, 1, 1], [], []>} : vector<8x32xf32>, vector<32x32xf32>, vector<8x32xf32> -> vector<8x32xf32>
      %c0_373 = arith.constant 0 : index
      %c0_374 = arith.constant 0 : index
      %676 = vector.load %arg31[%c0_373, %c0_374] : memref<1x32xf32, #tpu.memory_space<vmem>>, vector<1x32xf32>
      %677 = vector.broadcast %676 : vector<1x32xf32> to vector<8x32xf32>
      %678 = arith.addf %675, %677 : vector<8x32xf32>
      %cst_375 = arith.constant dense<0.000000e+00> : vector<24x32xf32>
      %679 = tpu.matmul %2, %678, %cst_375 {dimension_numbers = #tpu.dot_dimension_numbers<[1], [0], [0], [1], [0, 0, 1, 1], [], []>} : vector<24x8xf32>, vector<8x32xf32>, vector<24x32xf32> -> vector<24x32xf32>
      %c0_376 = arith.constant 0 : index
      %c0_377 = arith.constant 0 : index
      %680 = vector.load %arg32[%c0_376, %c0_377] : memref<96x32xf32, #tpu.memory_space<vmem>>, vector<96x32xf32>
      %681 = vector.extract_strided_slice %680 {offsets = [0, 0], sizes = [32, 32], strides = [1, 1]} : vector<96x32xf32> to vector<32x32xf32>
      %cst_378 = arith.constant dense<0.000000e+00> : vector<24x32xf32>
      %682 = tpu.matmul %arg41, %681, %cst_378 {dimension_numbers = #tpu.dot_dimension_numbers<[1], [0], [0], [1], [0, 0, 1, 1], [], []>} : vector<24x32xf32>, vector<32x32xf32>, vector<24x32xf32> -> vector<24x32xf32>
      %683 = vector.extract_strided_slice %680 {offsets = [32, 0], sizes = [32, 32], strides = [1, 1]} : vector<96x32xf32> to vector<32x32xf32>
      %cst_379 = arith.constant dense<0.000000e+00> : vector<24x32xf32>
      %684 = tpu.matmul %679, %683, %cst_379 {dimension_numbers = #tpu.dot_dimension_numbers<[1], [0], [0], [1], [0, 0, 1, 1], [], []>} : vector<24x32xf32>, vector<32x32xf32>, vector<24x32xf32> -> vector<24x32xf32>
      %685 = arith.addf %682, %684 : vector<24x32xf32>
      %686 = vector.extract_strided_slice %680 {offsets = [64, 0], sizes = [32, 32], strides = [1, 1]} : vector<96x32xf32> to vector<32x32xf32>
      %cst_380 = arith.constant dense<0.000000e+00> : vector<24x32xf32>
      %687 = tpu.matmul %612, %686, %cst_380 {dimension_numbers = #tpu.dot_dimension_numbers<[1], [0], [0], [1], [0, 0, 1, 1], [], []>} : vector<24x32xf32>, vector<32x32xf32>, vector<24x32xf32> -> vector<24x32xf32>
      %688 = arith.addf %685, %687 : vector<24x32xf32>
      %689 = arith.addf %688, %7 : vector<24x32xf32>
      %690 = arith.mulf %689, %689 : vector<24x32xf32>
      %cst_381 = arith.constant dense<0.000000e+00> : vector<24xf32>
      %691 = vector.multi_reduction <add>, %690, %cst_381 [1] : vector<24x32xf32> to vector<24xf32>
      %692 = vector.shape_cast %691 : vector<24xf32> to vector<24x1xf32>
      %cst_382 = arith.constant 3.200000e+01 : f32
      %693 = vector.broadcast %cst_382 : f32 to vector<24x1xf32>
      %694 = arith.divf %692, %693 : vector<24x1xf32>
      %cst_383 = arith.constant 9.99999997E-7 : f32
      %695 = vector.broadcast %cst_383 : f32 to vector<24x1xf32>
      %696 = arith.addf %694, %695 : vector<24x1xf32>
      %697 = math.rsqrt %696 : vector<24x1xf32>
      %698 = vector.broadcast %697 : vector<24x1xf32> to vector<24x32xf32>
      %699 = arith.mulf %689, %698 : vector<24x32xf32>
      %cst_384 = arith.constant 0.000000e+00 : f32
      %700 = vector.broadcast %cst_384 : f32 to vector<24x32xf32>
      %701 = arith.cmpf oge, %699, %700 : vector<24x32xf32>
      %cst_385 = arith.constant 0.00999999977 : f32
      %702 = vector.broadcast %cst_385 : f32 to vector<24x32xf32>
      %703 = arith.mulf %702, %699 : vector<24x32xf32>
      %704 = arith.select %701, %699, %703 : vector<24x32xi1>, vector<24x32xf32>
      %c0_386 = arith.constant 0 : index
      %c0_387 = arith.constant 0 : index
      %705 = vector.load %arg33[%c0_386, %c0_387] : memref<32x32xf32, #tpu.memory_space<vmem>>, vector<32x32xf32>
      %cst_388 = arith.constant dense<0.000000e+00> : vector<24x32xf32>
      %706 = tpu.matmul %704, %705, %cst_388 {dimension_numbers = #tpu.dot_dimension_numbers<[1], [0], [0], [1], [0, 0, 1, 1], [], []>} : vector<24x32xf32>, vector<32x32xf32>, vector<24x32xf32> -> vector<24x32xf32>
      %c0_389 = arith.constant 0 : index
      %c0_390 = arith.constant 0 : index
      %707 = vector.load %arg34[%c0_389, %c0_390] : memref<1x32xf32, #tpu.memory_space<vmem>>, vector<1x32xf32>
      %708 = vector.broadcast %707 : vector<1x32xf32> to vector<24x32xf32>
      %709 = arith.addf %706, %708 : vector<24x32xf32>
      %cst_391 = arith.constant 5.000000e-01 : f32
      %710 = vector.broadcast %cst_391 : f32 to vector<24x32xf32>
      %711 = arith.mulf %710, %arg41 : vector<24x32xf32>
      %712 = arith.addf %709, %711 : vector<24x32xf32>
      scf.yield %712, %604, %673 : vector<24x32xf32>, vector<16x32xf32>, vector<8x32xf32>
    }
    %cst_21 = arith.constant dense<0.000000e+00> : vector<24x32xf32>
    %15 = tpu.matmul %0, %14#1, %cst_21 {dimension_numbers = #tpu.dot_dimension_numbers<[1], [0], [0], [1], [0, 0, 1, 1], [], []>} : vector<24x16xf32>, vector<16x32xf32>, vector<24x32xf32> -> vector<24x32xf32>
    %cst_22 = arith.constant dense<0.000000e+00> : vector<24x32xf32>
    %16 = tpu.matmul %2, %14#2, %cst_22 {dimension_numbers = #tpu.dot_dimension_numbers<[1], [0], [0], [1], [0, 0, 1, 1], [], []>} : vector<24x8xf32>, vector<8x32xf32>, vector<24x32xf32> -> vector<24x32xf32>
    %c0_23 = arith.constant 0 : index
    %c0_24 = arith.constant 0 : index
    %17 = vector.load %arg11[%c0_23, %c0_24] : memref<96x32xf32, #tpu.memory_space<vmem>>, vector<96x32xf32>
    %18 = vector.extract_strided_slice %17 {offsets = [0, 0], sizes = [32, 32], strides = [1, 1]} : vector<96x32xf32> to vector<32x32xf32>
    %cst_25 = arith.constant dense<0.000000e+00> : vector<24x32xf32>
    %19 = tpu.matmul %14#0, %18, %cst_25 {dimension_numbers = #tpu.dot_dimension_numbers<[1], [0], [0], [1], [0, 0, 1, 1], [], []>} : vector<24x32xf32>, vector<32x32xf32>, vector<24x32xf32> -> vector<24x32xf32>
    %20 = vector.extract_strided_slice %17 {offsets = [32, 0], sizes = [32, 32], strides = [1, 1]} : vector<96x32xf32> to vector<32x32xf32>
    %cst_26 = arith.constant dense<0.000000e+00> : vector<24x32xf32>
    %21 = tpu.matmul %15, %20, %cst_26 {dimension_numbers = #tpu.dot_dimension_numbers<[1], [0], [0], [1], [0, 0, 1, 1], [], []>} : vector<24x32xf32>, vector<32x32xf32>, vector<24x32xf32> -> vector<24x32xf32>
    %22 = arith.addf %19, %21 : vector<24x32xf32>
    %23 = vector.extract_strided_slice %17 {offsets = [64, 0], sizes = [32, 32], strides = [1, 1]} : vector<96x32xf32> to vector<32x32xf32>
    %cst_27 = arith.constant dense<0.000000e+00> : vector<24x32xf32>
    %24 = tpu.matmul %16, %23, %cst_27 {dimension_numbers = #tpu.dot_dimension_numbers<[1], [0], [0], [1], [0, 0, 1, 1], [], []>} : vector<24x32xf32>, vector<32x32xf32>, vector<24x32xf32> -> vector<24x32xf32>
    %25 = arith.addf %22, %24 : vector<24x32xf32>
    %26 = arith.addf %25, %4 : vector<24x32xf32>
    %27 = arith.mulf %26, %26 : vector<24x32xf32>
    %cst_28 = arith.constant dense<0.000000e+00> : vector<24xf32>
    %28 = vector.multi_reduction <add>, %27, %cst_28 [1] : vector<24x32xf32> to vector<24xf32>
    %29 = vector.shape_cast %28 : vector<24xf32> to vector<24x1xf32>
    %cst_29 = arith.constant 3.200000e+01 : f32
    %30 = vector.broadcast %cst_29 : f32 to vector<24x1xf32>
    %31 = arith.divf %29, %30 : vector<24x1xf32>
    %cst_30 = arith.constant 9.99999997E-7 : f32
    %32 = vector.broadcast %cst_30 : f32 to vector<24x1xf32>
    %33 = arith.addf %31, %32 : vector<24x1xf32>
    %34 = math.rsqrt %33 : vector<24x1xf32>
    %35 = vector.broadcast %34 : vector<24x1xf32> to vector<24x32xf32>
    %36 = arith.mulf %26, %35 : vector<24x32xf32>
    %cst_31 = arith.constant 0.000000e+00 : f32
    %37 = vector.broadcast %cst_31 : f32 to vector<24x32xf32>
    %38 = arith.cmpf oge, %36, %37 : vector<24x32xf32>
    %cst_32 = arith.constant 0.00999999977 : f32
    %39 = vector.broadcast %cst_32 : f32 to vector<24x32xf32>
    %40 = arith.mulf %39, %36 : vector<24x32xf32>
    %41 = arith.select %38, %36, %40 : vector<24x32xi1>, vector<24x32xf32>
    %c0_33 = arith.constant 0 : index
    %c0_34 = arith.constant 0 : index
    %42 = vector.load %arg12[%c0_33, %c0_34] : memref<32x32xf32, #tpu.memory_space<vmem>>, vector<32x32xf32>
    %cst_35 = arith.constant dense<0.000000e+00> : vector<24x32xf32>
    %43 = tpu.matmul %41, %42, %cst_35 {dimension_numbers = #tpu.dot_dimension_numbers<[1], [0], [0], [1], [0, 0, 1, 1], [], []>} : vector<24x32xf32>, vector<32x32xf32>, vector<24x32xf32> -> vector<24x32xf32>
    %c0_36 = arith.constant 0 : index
    %c0_37 = arith.constant 0 : index
    %44 = vector.load %arg13[%c0_36, %c0_37] : memref<1x32xf32, #tpu.memory_space<vmem>>, vector<1x32xf32>
    %45 = vector.broadcast %44 : vector<1x32xf32> to vector<24x32xf32>
    %46 = arith.addf %43, %45 : vector<24x32xf32>
    %47 = arith.negf %46 : vector<24x32xf32>
    %48 = math.exp %47 : vector<24x32xf32>
    %cst_38 = arith.constant 1.000000e+00 : f32
    %49 = vector.broadcast %cst_38 : f32 to vector<24x32xf32>
    %50 = arith.addf %49, %48 : vector<24x32xf32>
    %51 = arith.divf %49, %50 : vector<24x32xf32>
    %cst_39 = arith.constant dense<0.000000e+00> : vector<16x32xf32>
    %52 = tpu.matmul %1, %14#0, %cst_39 {dimension_numbers = #tpu.dot_dimension_numbers<[1], [0], [0], [1], [0, 0, 1, 1], [], []>} : vector<16x24xf32>, vector<24x32xf32>, vector<16x32xf32> -> vector<16x32xf32>
    %cst_40 = arith.constant dense<0.000000e+00> : vector<16x32xf32>
    %53 = tpu.matmul %1, %51, %cst_40 {dimension_numbers = #tpu.dot_dimension_numbers<[1], [0], [0], [1], [0, 0, 1, 1], [], []>} : vector<16x24xf32>, vector<24x32xf32>, vector<16x32xf32> -> vector<16x32xf32>
    %c0_41 = arith.constant 0 : index
    %c0_42 = arith.constant 0 : index
    %54 = vector.load %arg14[%c0_41, %c0_42] : memref<64x32xf32, #tpu.memory_space<vmem>>, vector<64x32xf32>
    %55 = vector.extract_strided_slice %54 {offsets = [0, 0], sizes = [32, 32], strides = [1, 1]} : vector<64x32xf32> to vector<32x32xf32>
    %cst_43 = arith.constant dense<0.000000e+00> : vector<16x32xf32>
    %56 = tpu.matmul %52, %55, %cst_43 {dimension_numbers = #tpu.dot_dimension_numbers<[1], [0], [0], [1], [0, 0, 1, 1], [], []>} : vector<16x32xf32>, vector<32x32xf32>, vector<16x32xf32> -> vector<16x32xf32>
    %57 = vector.extract_strided_slice %54 {offsets = [32, 0], sizes = [32, 32], strides = [1, 1]} : vector<64x32xf32> to vector<32x32xf32>
    %cst_44 = arith.constant dense<0.000000e+00> : vector<16x32xf32>
    %58 = tpu.matmul %53, %57, %cst_44 {dimension_numbers = #tpu.dot_dimension_numbers<[1], [0], [0], [1], [0, 0, 1, 1], [], []>} : vector<16x32xf32>, vector<32x32xf32>, vector<16x32xf32> -> vector<16x32xf32>
    %59 = arith.addf %56, %58 : vector<16x32xf32>
    %c0_45 = arith.constant 0 : index
    %c0_46 = arith.constant 0 : index
    %60 = vector.load %arg15[%c0_45, %c0_46] : memref<1x32xf32, #tpu.memory_space<vmem>>, vector<1x32xf32>
    %61 = vector.broadcast %60 : vector<1x32xf32> to vector<16x32xf32>
    %62 = arith.addf %59, %61 : vector<16x32xf32>
    %63 = arith.mulf %62, %62 : vector<16x32xf32>
    %cst_47 = arith.constant dense<0.000000e+00> : vector<16xf32>
    %64 = vector.multi_reduction <add>, %63, %cst_47 [1] : vector<16x32xf32> to vector<16xf32>
    %65 = vector.shape_cast %64 : vector<16xf32> to vector<16x1xf32>
    %cst_48 = arith.constant 3.200000e+01 : f32
    %66 = vector.broadcast %cst_48 : f32 to vector<16x1xf32>
    %67 = arith.divf %65, %66 : vector<16x1xf32>
    %cst_49 = arith.constant 9.99999997E-7 : f32
    %68 = vector.broadcast %cst_49 : f32 to vector<16x1xf32>
    %69 = arith.addf %67, %68 : vector<16x1xf32>
    %70 = math.rsqrt %69 : vector<16x1xf32>
    %71 = vector.broadcast %70 : vector<16x1xf32> to vector<16x32xf32>
    %72 = arith.mulf %62, %71 : vector<16x32xf32>
    %cst_50 = arith.constant 0.000000e+00 : f32
    %73 = vector.broadcast %cst_50 : f32 to vector<16x32xf32>
    %74 = arith.cmpf oge, %72, %73 : vector<16x32xf32>
    %cst_51 = arith.constant 0.00999999977 : f32
    %75 = vector.broadcast %cst_51 : f32 to vector<16x32xf32>
    %76 = arith.mulf %75, %72 : vector<16x32xf32>
    %77 = arith.select %74, %72, %76 : vector<16x32xi1>, vector<16x32xf32>
    %c0_52 = arith.constant 0 : index
    %c0_53 = arith.constant 0 : index
    %78 = vector.load %arg16[%c0_52, %c0_53] : memref<32x32xf32, #tpu.memory_space<vmem>>, vector<32x32xf32>
    %cst_54 = arith.constant dense<0.000000e+00> : vector<16x32xf32>
    %79 = tpu.matmul %77, %78, %cst_54 {dimension_numbers = #tpu.dot_dimension_numbers<[1], [0], [0], [1], [0, 0, 1, 1], [], []>} : vector<16x32xf32>, vector<32x32xf32>, vector<16x32xf32> -> vector<16x32xf32>
    %c0_55 = arith.constant 0 : index
    %c0_56 = arith.constant 0 : index
    %80 = vector.load %arg17[%c0_55, %c0_56] : memref<1x32xf32, #tpu.memory_space<vmem>>, vector<1x32xf32>
    %81 = vector.broadcast %80 : vector<1x32xf32> to vector<16x32xf32>
    %82 = arith.addf %79, %81 : vector<16x32xf32>
    %c0_57 = arith.constant 0 : index
    %c0_58 = arith.constant 0 : index
    %83 = vector.load %arg18[%c0_57, %c0_58] : memref<64x32xf32, #tpu.memory_space<vmem>>, vector<64x32xf32>
    %84 = vector.extract_strided_slice %83 {offsets = [0, 0], sizes = [32, 32], strides = [1, 1]} : vector<64x32xf32> to vector<32x32xf32>
    %cst_59 = arith.constant dense<0.000000e+00> : vector<16x32xf32>
    %85 = tpu.matmul %14#1, %84, %cst_59 {dimension_numbers = #tpu.dot_dimension_numbers<[1], [0], [0], [1], [0, 0, 1, 1], [], []>} : vector<16x32xf32>, vector<32x32xf32>, vector<16x32xf32> -> vector<16x32xf32>
    %86 = vector.extract_strided_slice %83 {offsets = [32, 0], sizes = [32, 32], strides = [1, 1]} : vector<64x32xf32> to vector<32x32xf32>
    %cst_60 = arith.constant dense<0.000000e+00> : vector<16x32xf32>
    %87 = tpu.matmul %82, %86, %cst_60 {dimension_numbers = #tpu.dot_dimension_numbers<[1], [0], [0], [1], [0, 0, 1, 1], [], []>} : vector<16x32xf32>, vector<32x32xf32>, vector<16x32xf32> -> vector<16x32xf32>
    %88 = arith.addf %85, %87 : vector<16x32xf32>
    %89 = arith.addf %88, %5 : vector<16x32xf32>
    %90 = arith.mulf %89, %89 : vector<16x32xf32>
    %cst_61 = arith.constant dense<0.000000e+00> : vector<16xf32>
    %91 = vector.multi_reduction <add>, %90, %cst_61 [1] : vector<16x32xf32> to vector<16xf32>
    %92 = vector.shape_cast %91 : vector<16xf32> to vector<16x1xf32>
    %cst_62 = arith.constant 3.200000e+01 : f32
    %93 = vector.broadcast %cst_62 : f32 to vector<16x1xf32>
    %94 = arith.divf %92, %93 : vector<16x1xf32>
    %cst_63 = arith.constant 9.99999997E-7 : f32
    %95 = vector.broadcast %cst_63 : f32 to vector<16x1xf32>
    %96 = arith.addf %94, %95 : vector<16x1xf32>
    %97 = math.rsqrt %96 : vector<16x1xf32>
    %98 = vector.broadcast %97 : vector<16x1xf32> to vector<16x32xf32>
    %99 = arith.mulf %89, %98 : vector<16x32xf32>
    %cst_64 = arith.constant 0.000000e+00 : f32
    %100 = vector.broadcast %cst_64 : f32 to vector<16x32xf32>
    %101 = arith.cmpf oge, %99, %100 : vector<16x32xf32>
    %cst_65 = arith.constant 0.00999999977 : f32
    %102 = vector.broadcast %cst_65 : f32 to vector<16x32xf32>
    %103 = arith.mulf %102, %99 : vector<16x32xf32>
    %104 = arith.select %101, %99, %103 : vector<16x32xi1>, vector<16x32xf32>
    %c0_66 = arith.constant 0 : index
    %c0_67 = arith.constant 0 : index
    %105 = vector.load %arg19[%c0_66, %c0_67] : memref<32x32xf32, #tpu.memory_space<vmem>>, vector<32x32xf32>
    %cst_68 = arith.constant dense<0.000000e+00> : vector<16x32xf32>
    %106 = tpu.matmul %104, %105, %cst_68 {dimension_numbers = #tpu.dot_dimension_numbers<[1], [0], [0], [1], [0, 0, 1, 1], [], []>} : vector<16x32xf32>, vector<32x32xf32>, vector<16x32xf32> -> vector<16x32xf32>
    %c0_69 = arith.constant 0 : index
    %c0_70 = arith.constant 0 : index
    %107 = vector.load %arg20[%c0_69, %c0_70] : memref<1x32xf32, #tpu.memory_space<vmem>>, vector<1x32xf32>
    %108 = vector.broadcast %107 : vector<1x32xf32> to vector<16x32xf32>
    %109 = arith.addf %106, %108 : vector<16x32xf32>
    %cst_71 = arith.constant 5.000000e-01 : f32
    %110 = vector.broadcast %cst_71 : f32 to vector<16x32xf32>
    %111 = arith.mulf %110, %14#1 : vector<16x32xf32>
    %112 = arith.addf %109, %111 : vector<16x32xf32>
    %c0_72 = arith.constant 0 : index
    %c0_73 = arith.constant 0 : index
    %113 = vector.load %arg21[%c0_72, %c0_73] : memref<32x32xf32, #tpu.memory_space<vmem>>, vector<32x32xf32>
    %cst_74 = arith.constant dense<0.000000e+00> : vector<16x32xf32>
    %114 = tpu.matmul %104, %113, %cst_74 {dimension_numbers = #tpu.dot_dimension_numbers<[1], [0], [0], [1], [0, 0, 1, 1], [], []>} : vector<16x32xf32>, vector<32x32xf32>, vector<16x32xf32> -> vector<16x32xf32>
    %c0_75 = arith.constant 0 : index
    %c0_76 = arith.constant 0 : index
    %115 = vector.load %arg22[%c0_75, %c0_76] : memref<1x32xf32, #tpu.memory_space<vmem>>, vector<1x32xf32>
    %116 = vector.broadcast %115 : vector<1x32xf32> to vector<16x32xf32>
    %117 = arith.addf %114, %116 : vector<16x32xf32>
    %cst_77 = arith.constant dense<0.000000e+00> : vector<24x32xf32>
    %118 = tpu.matmul %0, %117, %cst_77 {dimension_numbers = #tpu.dot_dimension_numbers<[1], [0], [0], [1], [0, 0, 1, 1], [], []>} : vector<24x16xf32>, vector<16x32xf32>, vector<24x32xf32> -> vector<24x32xf32>
    %119 = vector.broadcast %9 : vector<24x1xf32> to vector<24x32xf32>
    %120 = arith.mulf %118, %119 : vector<24x32xf32>
    %cst_78 = arith.constant dense<0.000000e+00> : vector<8x32xf32>
    %121 = tpu.matmul %3, %14#0, %cst_78 {dimension_numbers = #tpu.dot_dimension_numbers<[1], [0], [0], [1], [0, 0, 1, 1], [], []>} : vector<8x24xf32>, vector<24x32xf32>, vector<8x32xf32> -> vector<8x32xf32>
    %cst_79 = arith.constant dense<0.000000e+00> : vector<8x32xf32>
    %122 = tpu.matmul %3, %51, %cst_79 {dimension_numbers = #tpu.dot_dimension_numbers<[1], [0], [0], [1], [0, 0, 1, 1], [], []>} : vector<8x24xf32>, vector<24x32xf32>, vector<8x32xf32> -> vector<8x32xf32>
    %c0_80 = arith.constant 0 : index
    %c0_81 = arith.constant 0 : index
    %123 = vector.load %arg23[%c0_80, %c0_81] : memref<64x32xf32, #tpu.memory_space<vmem>>, vector<64x32xf32>
    %124 = vector.extract_strided_slice %123 {offsets = [0, 0], sizes = [32, 32], strides = [1, 1]} : vector<64x32xf32> to vector<32x32xf32>
    %cst_82 = arith.constant dense<0.000000e+00> : vector<8x32xf32>
    %125 = tpu.matmul %121, %124, %cst_82 {dimension_numbers = #tpu.dot_dimension_numbers<[1], [0], [0], [1], [0, 0, 1, 1], [], []>} : vector<8x32xf32>, vector<32x32xf32>, vector<8x32xf32> -> vector<8x32xf32>
    %126 = vector.extract_strided_slice %123 {offsets = [32, 0], sizes = [32, 32], strides = [1, 1]} : vector<64x32xf32> to vector<32x32xf32>
    %cst_83 = arith.constant dense<0.000000e+00> : vector<8x32xf32>
    %127 = tpu.matmul %122, %126, %cst_83 {dimension_numbers = #tpu.dot_dimension_numbers<[1], [0], [0], [1], [0, 0, 1, 1], [], []>} : vector<8x32xf32>, vector<32x32xf32>, vector<8x32xf32> -> vector<8x32xf32>
    %128 = arith.addf %125, %127 : vector<8x32xf32>
    %c0_84 = arith.constant 0 : index
    %c0_85 = arith.constant 0 : index
    %129 = vector.load %arg24[%c0_84, %c0_85] : memref<1x32xf32, #tpu.memory_space<vmem>>, vector<1x32xf32>
    %130 = vector.broadcast %129 : vector<1x32xf32> to vector<8x32xf32>
    %131 = arith.addf %128, %130 : vector<8x32xf32>
    %132 = arith.mulf %131, %131 : vector<8x32xf32>
    %cst_86 = arith.constant dense<0.000000e+00> : vector<8xf32>
    %133 = vector.multi_reduction <add>, %132, %cst_86 [1] : vector<8x32xf32> to vector<8xf32>
    %134 = vector.shape_cast %133 : vector<8xf32> to vector<8x1xf32>
    %cst_87 = arith.constant 3.200000e+01 : f32
    %135 = vector.broadcast %cst_87 : f32 to vector<8x1xf32>
    %136 = arith.divf %134, %135 : vector<8x1xf32>
    %cst_88 = arith.constant 9.99999997E-7 : f32
    %137 = vector.broadcast %cst_88 : f32 to vector<8x1xf32>
    %138 = arith.addf %136, %137 : vector<8x1xf32>
    %139 = math.rsqrt %138 : vector<8x1xf32>
    %140 = vector.broadcast %139 : vector<8x1xf32> to vector<8x32xf32>
    %141 = arith.mulf %131, %140 : vector<8x32xf32>
    %cst_89 = arith.constant 0.000000e+00 : f32
    %142 = vector.broadcast %cst_89 : f32 to vector<8x32xf32>
    %143 = arith.cmpf oge, %141, %142 : vector<8x32xf32>
    %cst_90 = arith.constant 0.00999999977 : f32
    %144 = vector.broadcast %cst_90 : f32 to vector<8x32xf32>
    %145 = arith.mulf %144, %141 : vector<8x32xf32>
    %146 = arith.select %143, %141, %145 : vector<8x32xi1>, vector<8x32xf32>
    %c0_91 = arith.constant 0 : index
    %c0_92 = arith.constant 0 : index
    %147 = vector.load %arg25[%c0_91, %c0_92] : memref<32x32xf32, #tpu.memory_space<vmem>>, vector<32x32xf32>
    %cst_93 = arith.constant dense<0.000000e+00> : vector<8x32xf32>
    %148 = tpu.matmul %146, %147, %cst_93 {dimension_numbers = #tpu.dot_dimension_numbers<[1], [0], [0], [1], [0, 0, 1, 1], [], []>} : vector<8x32xf32>, vector<32x32xf32>, vector<8x32xf32> -> vector<8x32xf32>
    %c0_94 = arith.constant 0 : index
    %c0_95 = arith.constant 0 : index
    %149 = vector.load %arg26[%c0_94, %c0_95] : memref<1x32xf32, #tpu.memory_space<vmem>>, vector<1x32xf32>
    %150 = vector.broadcast %149 : vector<1x32xf32> to vector<8x32xf32>
    %151 = arith.addf %148, %150 : vector<8x32xf32>
    %c0_96 = arith.constant 0 : index
    %c0_97 = arith.constant 0 : index
    %152 = vector.load %arg27[%c0_96, %c0_97] : memref<64x32xf32, #tpu.memory_space<vmem>>, vector<64x32xf32>
    %153 = vector.extract_strided_slice %152 {offsets = [0, 0], sizes = [32, 32], strides = [1, 1]} : vector<64x32xf32> to vector<32x32xf32>
    %cst_98 = arith.constant dense<0.000000e+00> : vector<8x32xf32>
    %154 = tpu.matmul %14#2, %153, %cst_98 {dimension_numbers = #tpu.dot_dimension_numbers<[1], [0], [0], [1], [0, 0, 1, 1], [], []>} : vector<8x32xf32>, vector<32x32xf32>, vector<8x32xf32> -> vector<8x32xf32>
    %155 = vector.extract_strided_slice %152 {offsets = [32, 0], sizes = [32, 32], strides = [1, 1]} : vector<64x32xf32> to vector<32x32xf32>
    %cst_99 = arith.constant dense<0.000000e+00> : vector<8x32xf32>
    %156 = tpu.matmul %151, %155, %cst_99 {dimension_numbers = #tpu.dot_dimension_numbers<[1], [0], [0], [1], [0, 0, 1, 1], [], []>} : vector<8x32xf32>, vector<32x32xf32>, vector<8x32xf32> -> vector<8x32xf32>
    %157 = arith.addf %154, %156 : vector<8x32xf32>
    %158 = arith.addf %157, %6 : vector<8x32xf32>
    %159 = arith.mulf %158, %158 : vector<8x32xf32>
    %cst_100 = arith.constant dense<0.000000e+00> : vector<8xf32>
    %160 = vector.multi_reduction <add>, %159, %cst_100 [1] : vector<8x32xf32> to vector<8xf32>
    %161 = vector.shape_cast %160 : vector<8xf32> to vector<8x1xf32>
    %cst_101 = arith.constant 3.200000e+01 : f32
    %162 = vector.broadcast %cst_101 : f32 to vector<8x1xf32>
    %163 = arith.divf %161, %162 : vector<8x1xf32>
    %cst_102 = arith.constant 9.99999997E-7 : f32
    %164 = vector.broadcast %cst_102 : f32 to vector<8x1xf32>
    %165 = arith.addf %163, %164 : vector<8x1xf32>
    %166 = math.rsqrt %165 : vector<8x1xf32>
    %167 = vector.broadcast %166 : vector<8x1xf32> to vector<8x32xf32>
    %168 = arith.mulf %158, %167 : vector<8x32xf32>
    %cst_103 = arith.constant 0.000000e+00 : f32
    %169 = vector.broadcast %cst_103 : f32 to vector<8x32xf32>
    %170 = arith.cmpf oge, %168, %169 : vector<8x32xf32>
    %cst_104 = arith.constant 0.00999999977 : f32
    %171 = vector.broadcast %cst_104 : f32 to vector<8x32xf32>
    %172 = arith.mulf %171, %168 : vector<8x32xf32>
    %173 = arith.select %170, %168, %172 : vector<8x32xi1>, vector<8x32xf32>
    %c0_105 = arith.constant 0 : index
    %c0_106 = arith.constant 0 : index
    %174 = vector.load %arg28[%c0_105, %c0_106] : memref<32x32xf32, #tpu.memory_space<vmem>>, vector<32x32xf32>
    %cst_107 = arith.constant dense<0.000000e+00> : vector<8x32xf32>
    %175 = tpu.matmul %173, %174, %cst_107 {dimension_numbers = #tpu.dot_dimension_numbers<[1], [0], [0], [1], [0, 0, 1, 1], [], []>} : vector<8x32xf32>, vector<32x32xf32>, vector<8x32xf32> -> vector<8x32xf32>
    %c0_108 = arith.constant 0 : index
    %c0_109 = arith.constant 0 : index
    %176 = vector.load %arg29[%c0_108, %c0_109] : memref<1x32xf32, #tpu.memory_space<vmem>>, vector<1x32xf32>
    %177 = vector.broadcast %176 : vector<1x32xf32> to vector<8x32xf32>
    %178 = arith.addf %175, %177 : vector<8x32xf32>
    %cst_110 = arith.constant 5.000000e-01 : f32
    %179 = vector.broadcast %cst_110 : f32 to vector<8x32xf32>
    %180 = arith.mulf %179, %14#2 : vector<8x32xf32>
    %181 = arith.addf %178, %180 : vector<8x32xf32>
    %c0_111 = arith.constant 0 : index
    %c0_112 = arith.constant 0 : index
    %182 = vector.load %arg30[%c0_111, %c0_112] : memref<32x32xf32, #tpu.memory_space<vmem>>, vector<32x32xf32>
    %cst_113 = arith.constant dense<0.000000e+00> : vector<8x32xf32>
    %183 = tpu.matmul %173, %182, %cst_113 {dimension_numbers = #tpu.dot_dimension_numbers<[1], [0], [0], [1], [0, 0, 1, 1], [], []>} : vector<8x32xf32>, vector<32x32xf32>, vector<8x32xf32> -> vector<8x32xf32>
    %c0_114 = arith.constant 0 : index
    %c0_115 = arith.constant 0 : index
    %184 = vector.load %arg31[%c0_114, %c0_115] : memref<1x32xf32, #tpu.memory_space<vmem>>, vector<1x32xf32>
    %185 = vector.broadcast %184 : vector<1x32xf32> to vector<8x32xf32>
    %186 = arith.addf %183, %185 : vector<8x32xf32>
    %cst_116 = arith.constant dense<0.000000e+00> : vector<24x32xf32>
    %187 = tpu.matmul %2, %186, %cst_116 {dimension_numbers = #tpu.dot_dimension_numbers<[1], [0], [0], [1], [0, 0, 1, 1], [], []>} : vector<24x8xf32>, vector<8x32xf32>, vector<24x32xf32> -> vector<24x32xf32>
    %c0_117 = arith.constant 0 : index
    %c0_118 = arith.constant 0 : index
    %188 = vector.load %arg32[%c0_117, %c0_118] : memref<96x32xf32, #tpu.memory_space<vmem>>, vector<96x32xf32>
    %189 = vector.extract_strided_slice %188 {offsets = [0, 0], sizes = [32, 32], strides = [1, 1]} : vector<96x32xf32> to vector<32x32xf32>
    %cst_119 = arith.constant dense<0.000000e+00> : vector<24x32xf32>
    %190 = tpu.matmul %14#0, %189, %cst_119 {dimension_numbers = #tpu.dot_dimension_numbers<[1], [0], [0], [1], [0, 0, 1, 1], [], []>} : vector<24x32xf32>, vector<32x32xf32>, vector<24x32xf32> -> vector<24x32xf32>
    %191 = vector.extract_strided_slice %188 {offsets = [32, 0], sizes = [32, 32], strides = [1, 1]} : vector<96x32xf32> to vector<32x32xf32>
    %cst_120 = arith.constant dense<0.000000e+00> : vector<24x32xf32>
    %192 = tpu.matmul %187, %191, %cst_120 {dimension_numbers = #tpu.dot_dimension_numbers<[1], [0], [0], [1], [0, 0, 1, 1], [], []>} : vector<24x32xf32>, vector<32x32xf32>, vector<24x32xf32> -> vector<24x32xf32>
    %193 = arith.addf %190, %192 : vector<24x32xf32>
    %194 = vector.extract_strided_slice %188 {offsets = [64, 0], sizes = [32, 32], strides = [1, 1]} : vector<96x32xf32> to vector<32x32xf32>
    %cst_121 = arith.constant dense<0.000000e+00> : vector<24x32xf32>
    %195 = tpu.matmul %120, %194, %cst_121 {dimension_numbers = #tpu.dot_dimension_numbers<[1], [0], [0], [1], [0, 0, 1, 1], [], []>} : vector<24x32xf32>, vector<32x32xf32>, vector<24x32xf32> -> vector<24x32xf32>
    %196 = arith.addf %193, %195 : vector<24x32xf32>
    %197 = arith.addf %196, %7 : vector<24x32xf32>
    %198 = arith.mulf %197, %197 : vector<24x32xf32>
    %cst_122 = arith.constant dense<0.000000e+00> : vector<24xf32>
    %199 = vector.multi_reduction <add>, %198, %cst_122 [1] : vector<24x32xf32> to vector<24xf32>
    %200 = vector.shape_cast %199 : vector<24xf32> to vector<24x1xf32>
    %cst_123 = arith.constant 3.200000e+01 : f32
    %201 = vector.broadcast %cst_123 : f32 to vector<24x1xf32>
    %202 = arith.divf %200, %201 : vector<24x1xf32>
    %cst_124 = arith.constant 9.99999997E-7 : f32
    %203 = vector.broadcast %cst_124 : f32 to vector<24x1xf32>
    %204 = arith.addf %202, %203 : vector<24x1xf32>
    %205 = math.rsqrt %204 : vector<24x1xf32>
    %206 = vector.broadcast %205 : vector<24x1xf32> to vector<24x32xf32>
    %207 = arith.mulf %197, %206 : vector<24x32xf32>
    %cst_125 = arith.constant 0.000000e+00 : f32
    %208 = vector.broadcast %cst_125 : f32 to vector<24x32xf32>
    %209 = arith.cmpf oge, %207, %208 : vector<24x32xf32>
    %cst_126 = arith.constant 0.00999999977 : f32
    %210 = vector.broadcast %cst_126 : f32 to vector<24x32xf32>
    %211 = arith.mulf %210, %207 : vector<24x32xf32>
    %212 = arith.select %209, %207, %211 : vector<24x32xi1>, vector<24x32xf32>
    %c0_127 = arith.constant 0 : index
    %c0_128 = arith.constant 0 : index
    %213 = vector.load %arg33[%c0_127, %c0_128] : memref<32x32xf32, #tpu.memory_space<vmem>>, vector<32x32xf32>
    %cst_129 = arith.constant dense<0.000000e+00> : vector<24x32xf32>
    %214 = tpu.matmul %212, %213, %cst_129 {dimension_numbers = #tpu.dot_dimension_numbers<[1], [0], [0], [1], [0, 0, 1, 1], [], []>} : vector<24x32xf32>, vector<32x32xf32>, vector<24x32xf32> -> vector<24x32xf32>
    %c0_130 = arith.constant 0 : index
    %c0_131 = arith.constant 0 : index
    %215 = vector.load %arg34[%c0_130, %c0_131] : memref<1x32xf32, #tpu.memory_space<vmem>>, vector<1x32xf32>
    %216 = vector.broadcast %215 : vector<1x32xf32> to vector<24x32xf32>
    %217 = arith.addf %214, %216 : vector<24x32xf32>
    %cst_132 = arith.constant 5.000000e-01 : f32
    %218 = vector.broadcast %cst_132 : f32 to vector<24x32xf32>
    %219 = arith.mulf %218, %14#0 : vector<24x32xf32>
    %220 = arith.addf %217, %219 : vector<24x32xf32>
    %c0_133 = arith.constant 0 : index
    %c0_134 = arith.constant 0 : index
    %221 = vector.load %arg35[%c0_133, %c0_134] : memref<32x32xf32, #tpu.memory_space<vmem>>, vector<32x32xf32>
    %cst_135 = arith.constant dense<0.000000e+00> : vector<24x32xf32>
    %222 = tpu.matmul %220, %221, %cst_135 {dimension_numbers = #tpu.dot_dimension_numbers<[1], [0], [0], [1], [0, 0, 1, 1], [], []>} : vector<24x32xf32>, vector<32x32xf32>, vector<24x32xf32> -> vector<24x32xf32>
    %c0_136 = arith.constant 0 : index
    %c0_137 = arith.constant 0 : index
    %223 = vector.load %arg36[%c0_136, %c0_137] : memref<1x32xf32, #tpu.memory_space<vmem>>, vector<1x32xf32>
    %224 = vector.broadcast %223 : vector<1x32xf32> to vector<24x32xf32>
    %225 = arith.addf %222, %224 : vector<24x32xf32>
    %226 = arith.mulf %225, %225 : vector<24x32xf32>
    %cst_138 = arith.constant dense<0.000000e+00> : vector<24xf32>
    %227 = vector.multi_reduction <add>, %226, %cst_138 [1] : vector<24x32xf32> to vector<24xf32>
    %228 = vector.shape_cast %227 : vector<24xf32> to vector<24x1xf32>
    %cst_139 = arith.constant 3.200000e+01 : f32
    %229 = vector.broadcast %cst_139 : f32 to vector<24x1xf32>
    %230 = arith.divf %228, %229 : vector<24x1xf32>
    %cst_140 = arith.constant 9.99999997E-7 : f32
    %231 = vector.broadcast %cst_140 : f32 to vector<24x1xf32>
    %232 = arith.addf %230, %231 : vector<24x1xf32>
    %233 = math.rsqrt %232 : vector<24x1xf32>
    %234 = vector.broadcast %233 : vector<24x1xf32> to vector<24x32xf32>
    %235 = arith.mulf %225, %234 : vector<24x32xf32>
    %cst_141 = arith.constant 0.000000e+00 : f32
    %236 = vector.broadcast %cst_141 : f32 to vector<24x32xf32>
    %237 = arith.cmpf oge, %235, %236 : vector<24x32xf32>
    %cst_142 = arith.constant 0.00999999977 : f32
    %238 = vector.broadcast %cst_142 : f32 to vector<24x32xf32>
    %239 = arith.mulf %238, %235 : vector<24x32xf32>
    %240 = arith.select %237, %235, %239 : vector<24x32xi1>, vector<24x32xf32>
    %c0_143 = arith.constant 0 : index
    %c0_144 = arith.constant 0 : index
    %241 = vector.load %arg37[%c0_143, %c0_144] : memref<32x4xf32, #tpu.memory_space<vmem>>, vector<32x4xf32>
    %cst_145 = arith.constant dense<0.000000e+00> : vector<24x4xf32>
    %242 = tpu.matmul %240, %241, %cst_145 {dimension_numbers = #tpu.dot_dimension_numbers<[1], [0], [0], [1], [0, 0, 1, 1], [], []>} : vector<24x32xf32>, vector<32x4xf32>, vector<24x4xf32> -> vector<24x4xf32>
    %c0_146 = arith.constant 0 : index
    %c0_147 = arith.constant 0 : index
    %243 = vector.load %arg38[%c0_146, %c0_147] : memref<1x4xf32, #tpu.memory_space<vmem>>, vector<1x4xf32>
    %244 = vector.broadcast %243 : vector<1x4xf32> to vector<24x4xf32>
    %245 = arith.addf %242, %244 : vector<24x4xf32>
    %c0_148 = arith.constant 0 : index
    %c0_149 = arith.constant 0 : index
    %c0_150 = arith.constant 0 : index
    %246 = vector.load %arg10[%c0_148, %c0_149, %c0_150] : memref<2x24x4xf32, #tpu.memory_space<vmem>>, vector<1x24x4xf32>
    %247 = vector.shape_cast %246 : vector<1x24x4xf32> to vector<24x4xf32>
    %248 = vector.broadcast %8 : vector<24x1xf32> to vector<24x4xf32>
    %249 = arith.mulf %247, %248 : vector<24x4xf32>
    %250 = arith.addf %245, %249 : vector<24x4xf32>
    %251 = arith.negf %250 : vector<24x4xf32>
    %252 = math.exp %251 : vector<24x4xf32>
    %cst_151 = arith.constant 1.000000e+00 : f32
    %253 = vector.broadcast %cst_151 : f32 to vector<24x4xf32>
    %254 = arith.addf %253, %252 : vector<24x4xf32>
    %255 = arith.divf %253, %254 : vector<24x4xf32>
    %256 = vector.broadcast %8 : vector<24x1xf32> to vector<24x4xf32>
    %257 = arith.mulf %255, %256 : vector<24x4xf32>
    %cst_152 = arith.constant 1.000000e+00 : f32
    %258 = vector.broadcast %cst_152 : f32 to vector<24x1xf32>
    %259 = arith.subf %258, %8 : vector<24x1xf32>
    %260 = vector.broadcast %259 : vector<24x1xf32> to vector<24x4xf32>
    %261 = arith.mulf %250, %260 : vector<24x4xf32>
    %cst_153 = arith.constant 1.000000e-01 : f32
    %262 = vector.broadcast %cst_153 : f32 to vector<24x4xf32>
    %263 = arith.mulf %261, %262 : vector<24x4xf32>
    %264 = arith.addf %257, %263 : vector<24x4xf32>
    %265 = tpu.concatenate %264, %250 in 1 : vector<24x4xf32>, vector<24x4xf32> -> vector<24x8xf32>
    %c0_154 = arith.constant 0 : index
    %c0_155 = arith.constant 0 : index
    %c0_156 = arith.constant 0 : index
    %266 = vector.load %arg39[%c0_154, %c0_155, %c0_156] : memref<2x24x8xf32, #tpu.memory_space<vmem>>, vector<1x24x8xf32>
    %267 = vector.shape_cast %266 : vector<1x24x8xf32> to vector<24x8xf32>
    %268 = vector.shape_cast %265 : vector<24x8xf32> to vector<1x24x8xf32>
    tpu.vector_store %arg39[%c0_154, %c0_155, %c0_156], %268 {strides = array<i32>} : memref<2x24x8xf32, #tpu.memory_space<vmem>>, vector<1x24x8xf32>,
    %cst_157 = arith.constant dense<0.000000e+00> : vector<24x32xf32>
    %269 = tpu.matmul %0, %112, %cst_157 {dimension_numbers = #tpu.dot_dimension_numbers<[1], [0], [0], [1], [0, 0, 1, 1], [], []>} : vector<24x16xf32>, vector<16x32xf32>, vector<24x32xf32> -> vector<24x32xf32>
    %cst_158 = arith.constant dense<0.000000e+00> : vector<24x32xf32>
    %270 = tpu.matmul %2, %181, %cst_158 {dimension_numbers = #tpu.dot_dimension_numbers<[1], [0], [0], [1], [0, 0, 1, 1], [], []>} : vector<24x8xf32>, vector<8x32xf32>, vector<24x32xf32> -> vector<24x32xf32>
    %c0_159 = arith.constant 0 : index
    %c0_160 = arith.constant 0 : index
    %271 = vector.load %arg11[%c0_159, %c0_160] : memref<96x32xf32, #tpu.memory_space<vmem>>, vector<96x32xf32>
    %272 = vector.extract_strided_slice %271 {offsets = [0, 0], sizes = [32, 32], strides = [1, 1]} : vector<96x32xf32> to vector<32x32xf32>
    %cst_161 = arith.constant dense<0.000000e+00> : vector<24x32xf32>
    %273 = tpu.matmul %220, %272, %cst_161 {dimension_numbers = #tpu.dot_dimension_numbers<[1], [0], [0], [1], [0, 0, 1, 1], [], []>} : vector<24x32xf32>, vector<32x32xf32>, vector<24x32xf32> -> vector<24x32xf32>
    %274 = vector.extract_strided_slice %271 {offsets = [32, 0], sizes = [32, 32], strides = [1, 1]} : vector<96x32xf32> to vector<32x32xf32>
    %cst_162 = arith.constant dense<0.000000e+00> : vector<24x32xf32>
    %275 = tpu.matmul %269, %274, %cst_162 {dimension_numbers = #tpu.dot_dimension_numbers<[1], [0], [0], [1], [0, 0, 1, 1], [], []>} : vector<24x32xf32>, vector<32x32xf32>, vector<24x32xf32> -> vector<24x32xf32>
    %276 = arith.addf %273, %275 : vector<24x32xf32>
    %277 = vector.extract_strided_slice %271 {offsets = [64, 0], sizes = [32, 32], strides = [1, 1]} : vector<96x32xf32> to vector<32x32xf32>
    %cst_163 = arith.constant dense<0.000000e+00> : vector<24x32xf32>
    %278 = tpu.matmul %270, %277, %cst_163 {dimension_numbers = #tpu.dot_dimension_numbers<[1], [0], [0], [1], [0, 0, 1, 1], [], []>} : vector<24x32xf32>, vector<32x32xf32>, vector<24x32xf32> -> vector<24x32xf32>
    %279 = arith.addf %276, %278 : vector<24x32xf32>
    %280 = arith.addf %279, %4 : vector<24x32xf32>
    %281 = arith.mulf %280, %280 : vector<24x32xf32>
    %cst_164 = arith.constant dense<0.000000e+00> : vector<24xf32>
    %282 = vector.multi_reduction <add>, %281, %cst_164 [1] : vector<24x32xf32> to vector<24xf32>
    %283 = vector.shape_cast %282 : vector<24xf32> to vector<24x1xf32>
    %cst_165 = arith.constant 3.200000e+01 : f32
    %284 = vector.broadcast %cst_165 : f32 to vector<24x1xf32>
    %285 = arith.divf %283, %284 : vector<24x1xf32>
    %cst_166 = arith.constant 9.99999997E-7 : f32
    %286 = vector.broadcast %cst_166 : f32 to vector<24x1xf32>
    %287 = arith.addf %285, %286 : vector<24x1xf32>
    %288 = math.rsqrt %287 : vector<24x1xf32>
    %289 = vector.broadcast %288 : vector<24x1xf32> to vector<24x32xf32>
    %290 = arith.mulf %280, %289 : vector<24x32xf32>
    %cst_167 = arith.constant 0.000000e+00 : f32
    %291 = vector.broadcast %cst_167 : f32 to vector<24x32xf32>
    %292 = arith.cmpf oge, %290, %291 : vector<24x32xf32>
    %cst_168 = arith.constant 0.00999999977 : f32
    %293 = vector.broadcast %cst_168 : f32 to vector<24x32xf32>
    %294 = arith.mulf %293, %290 : vector<24x32xf32>
    %295 = arith.select %292, %290, %294 : vector<24x32xi1>, vector<24x32xf32>
    %c0_169 = arith.constant 0 : index
    %c0_170 = arith.constant 0 : index
    %296 = vector.load %arg12[%c0_169, %c0_170] : memref<32x32xf32, #tpu.memory_space<vmem>>, vector<32x32xf32>
    %cst_171 = arith.constant dense<0.000000e+00> : vector<24x32xf32>
    %297 = tpu.matmul %295, %296, %cst_171 {dimension_numbers = #tpu.dot_dimension_numbers<[1], [0], [0], [1], [0, 0, 1, 1], [], []>} : vector<24x32xf32>, vector<32x32xf32>, vector<24x32xf32> -> vector<24x32xf32>
    %c0_172 = arith.constant 0 : index
    %c0_173 = arith.constant 0 : index
    %298 = vector.load %arg13[%c0_172, %c0_173] : memref<1x32xf32, #tpu.memory_space<vmem>>, vector<1x32xf32>
    %299 = vector.broadcast %298 : vector<1x32xf32> to vector<24x32xf32>
    %300 = arith.addf %297, %299 : vector<24x32xf32>
    %301 = arith.negf %300 : vector<24x32xf32>
    %302 = math.exp %301 : vector<24x32xf32>
    %cst_174 = arith.constant 1.000000e+00 : f32
    %303 = vector.broadcast %cst_174 : f32 to vector<24x32xf32>
    %304 = arith.addf %303, %302 : vector<24x32xf32>
    %305 = arith.divf %303, %304 : vector<24x32xf32>
    %cst_175 = arith.constant dense<0.000000e+00> : vector<16x32xf32>
    %306 = tpu.matmul %1, %220, %cst_175 {dimension_numbers = #tpu.dot_dimension_numbers<[1], [0], [0], [1], [0, 0, 1, 1], [], []>} : vector<16x24xf32>, vector<24x32xf32>, vector<16x32xf32> -> vector<16x32xf32>
    %cst_176 = arith.constant dense<0.000000e+00> : vector<16x32xf32>
    %307 = tpu.matmul %1, %305, %cst_176 {dimension_numbers = #tpu.dot_dimension_numbers<[1], [0], [0], [1], [0, 0, 1, 1], [], []>} : vector<16x24xf32>, vector<24x32xf32>, vector<16x32xf32> -> vector<16x32xf32>
    %c0_177 = arith.constant 0 : index
    %c0_178 = arith.constant 0 : index
    %308 = vector.load %arg14[%c0_177, %c0_178] : memref<64x32xf32, #tpu.memory_space<vmem>>, vector<64x32xf32>
    %309 = vector.extract_strided_slice %308 {offsets = [0, 0], sizes = [32, 32], strides = [1, 1]} : vector<64x32xf32> to vector<32x32xf32>
    %cst_179 = arith.constant dense<0.000000e+00> : vector<16x32xf32>
    %310 = tpu.matmul %306, %309, %cst_179 {dimension_numbers = #tpu.dot_dimension_numbers<[1], [0], [0], [1], [0, 0, 1, 1], [], []>} : vector<16x32xf32>, vector<32x32xf32>, vector<16x32xf32> -> vector<16x32xf32>
    %311 = vector.extract_strided_slice %308 {offsets = [32, 0], sizes = [32, 32], strides = [1, 1]} : vector<64x32xf32> to vector<32x32xf32>
    %cst_180 = arith.constant dense<0.000000e+00> : vector<16x32xf32>
    %312 = tpu.matmul %307, %311, %cst_180 {dimension_numbers = #tpu.dot_dimension_numbers<[1], [0], [0], [1], [0, 0, 1, 1], [], []>} : vector<16x32xf32>, vector<32x32xf32>, vector<16x32xf32> -> vector<16x32xf32>
    %313 = arith.addf %310, %312 : vector<16x32xf32>
    %c0_181 = arith.constant 0 : index
    %c0_182 = arith.constant 0 : index
    %314 = vector.load %arg15[%c0_181, %c0_182] : memref<1x32xf32, #tpu.memory_space<vmem>>, vector<1x32xf32>
    %315 = vector.broadcast %314 : vector<1x32xf32> to vector<16x32xf32>
    %316 = arith.addf %313, %315 : vector<16x32xf32>
    %317 = arith.mulf %316, %316 : vector<16x32xf32>
    %cst_183 = arith.constant dense<0.000000e+00> : vector<16xf32>
    %318 = vector.multi_reduction <add>, %317, %cst_183 [1] : vector<16x32xf32> to vector<16xf32>
    %319 = vector.shape_cast %318 : vector<16xf32> to vector<16x1xf32>
    %cst_184 = arith.constant 3.200000e+01 : f32
    %320 = vector.broadcast %cst_184 : f32 to vector<16x1xf32>
    %321 = arith.divf %319, %320 : vector<16x1xf32>
    %cst_185 = arith.constant 9.99999997E-7 : f32
    %322 = vector.broadcast %cst_185 : f32 to vector<16x1xf32>
    %323 = arith.addf %321, %322 : vector<16x1xf32>
    %324 = math.rsqrt %323 : vector<16x1xf32>
    %325 = vector.broadcast %324 : vector<16x1xf32> to vector<16x32xf32>
    %326 = arith.mulf %316, %325 : vector<16x32xf32>
    %cst_186 = arith.constant 0.000000e+00 : f32
    %327 = vector.broadcast %cst_186 : f32 to vector<16x32xf32>
    %328 = arith.cmpf oge, %326, %327 : vector<16x32xf32>
    %cst_187 = arith.constant 0.00999999977 : f32
    %329 = vector.broadcast %cst_187 : f32 to vector<16x32xf32>
    %330 = arith.mulf %329, %326 : vector<16x32xf32>
    %331 = arith.select %328, %326, %330 : vector<16x32xi1>, vector<16x32xf32>
    %c0_188 = arith.constant 0 : index
    %c0_189 = arith.constant 0 : index
    %332 = vector.load %arg16[%c0_188, %c0_189] : memref<32x32xf32, #tpu.memory_space<vmem>>, vector<32x32xf32>
    %cst_190 = arith.constant dense<0.000000e+00> : vector<16x32xf32>
    %333 = tpu.matmul %331, %332, %cst_190 {dimension_numbers = #tpu.dot_dimension_numbers<[1], [0], [0], [1], [0, 0, 1, 1], [], []>} : vector<16x32xf32>, vector<32x32xf32>, vector<16x32xf32> -> vector<16x32xf32>
    %c0_191 = arith.constant 0 : index
    %c0_192 = arith.constant 0 : index
    %334 = vector.load %arg17[%c0_191, %c0_192] : memref<1x32xf32, #tpu.memory_space<vmem>>, vector<1x32xf32>
    %335 = vector.broadcast %334 : vector<1x32xf32> to vector<16x32xf32>
    %336 = arith.addf %333, %335 : vector<16x32xf32>
    %c0_193 = arith.constant 0 : index
    %c0_194 = arith.constant 0 : index
    %337 = vector.load %arg18[%c0_193, %c0_194] : memref<64x32xf32, #tpu.memory_space<vmem>>, vector<64x32xf32>
    %338 = vector.extract_strided_slice %337 {offsets = [0, 0], sizes = [32, 32], strides = [1, 1]} : vector<64x32xf32> to vector<32x32xf32>
    %cst_195 = arith.constant dense<0.000000e+00> : vector<16x32xf32>
    %339 = tpu.matmul %112, %338, %cst_195 {dimension_numbers = #tpu.dot_dimension_numbers<[1], [0], [0], [1], [0, 0, 1, 1], [], []>} : vector<16x32xf32>, vector<32x32xf32>, vector<16x32xf32> -> vector<16x32xf32>
    %340 = vector.extract_strided_slice %337 {offsets = [32, 0], sizes = [32, 32], strides = [1, 1]} : vector<64x32xf32> to vector<32x32xf32>
    %cst_196 = arith.constant dense<0.000000e+00> : vector<16x32xf32>
    %341 = tpu.matmul %336, %340, %cst_196 {dimension_numbers = #tpu.dot_dimension_numbers<[1], [0], [0], [1], [0, 0, 1, 1], [], []>} : vector<16x32xf32>, vector<32x32xf32>, vector<16x32xf32> -> vector<16x32xf32>
    %342 = arith.addf %339, %341 : vector<16x32xf32>
    %343 = arith.addf %342, %5 : vector<16x32xf32>
    %344 = arith.mulf %343, %343 : vector<16x32xf32>
    %cst_197 = arith.constant dense<0.000000e+00> : vector<16xf32>
    %345 = vector.multi_reduction <add>, %344, %cst_197 [1] : vector<16x32xf32> to vector<16xf32>
    %346 = vector.shape_cast %345 : vector<16xf32> to vector<16x1xf32>
    %cst_198 = arith.constant 3.200000e+01 : f32
    %347 = vector.broadcast %cst_198 : f32 to vector<16x1xf32>
    %348 = arith.divf %346, %347 : vector<16x1xf32>
    %cst_199 = arith.constant 9.99999997E-7 : f32
    %349 = vector.broadcast %cst_199 : f32 to vector<16x1xf32>
    %350 = arith.addf %348, %349 : vector<16x1xf32>
    %351 = math.rsqrt %350 : vector<16x1xf32>
    %352 = vector.broadcast %351 : vector<16x1xf32> to vector<16x32xf32>
    %353 = arith.mulf %343, %352 : vector<16x32xf32>
    %cst_200 = arith.constant 0.000000e+00 : f32
    %354 = vector.broadcast %cst_200 : f32 to vector<16x32xf32>
    %355 = arith.cmpf oge, %353, %354 : vector<16x32xf32>
    %cst_201 = arith.constant 0.00999999977 : f32
    %356 = vector.broadcast %cst_201 : f32 to vector<16x32xf32>
    %357 = arith.mulf %356, %353 : vector<16x32xf32>
    %358 = arith.select %355, %353, %357 : vector<16x32xi1>, vector<16x32xf32>
    %c0_202 = arith.constant 0 : index
    %c0_203 = arith.constant 0 : index
    %359 = vector.load %arg21[%c0_202, %c0_203] : memref<32x32xf32, #tpu.memory_space<vmem>>, vector<32x32xf32>
    %cst_204 = arith.constant dense<0.000000e+00> : vector<16x32xf32>
    %360 = tpu.matmul %358, %359, %cst_204 {dimension_numbers = #tpu.dot_dimension_numbers<[1], [0], [0], [1], [0, 0, 1, 1], [], []>} : vector<16x32xf32>, vector<32x32xf32>, vector<16x32xf32> -> vector<16x32xf32>
    %c0_205 = arith.constant 0 : index
    %c0_206 = arith.constant 0 : index
    %361 = vector.load %arg22[%c0_205, %c0_206] : memref<1x32xf32, #tpu.memory_space<vmem>>, vector<1x32xf32>
    %362 = vector.broadcast %361 : vector<1x32xf32> to vector<16x32xf32>
    %363 = arith.addf %360, %362 : vector<16x32xf32>
    %cst_207 = arith.constant dense<0.000000e+00> : vector<24x32xf32>
    %364 = tpu.matmul %0, %363, %cst_207 {dimension_numbers = #tpu.dot_dimension_numbers<[1], [0], [0], [1], [0, 0, 1, 1], [], []>} : vector<24x16xf32>, vector<16x32xf32>, vector<24x32xf32> -> vector<24x32xf32>
    %365 = vector.broadcast %9 : vector<24x1xf32> to vector<24x32xf32>
    %366 = arith.mulf %364, %365 : vector<24x32xf32>
    %cst_208 = arith.constant dense<0.000000e+00> : vector<8x32xf32>
    %367 = tpu.matmul %3, %220, %cst_208 {dimension_numbers = #tpu.dot_dimension_numbers<[1], [0], [0], [1], [0, 0, 1, 1], [], []>} : vector<8x24xf32>, vector<24x32xf32>, vector<8x32xf32> -> vector<8x32xf32>
    %cst_209 = arith.constant dense<0.000000e+00> : vector<8x32xf32>
    %368 = tpu.matmul %3, %305, %cst_209 {dimension_numbers = #tpu.dot_dimension_numbers<[1], [0], [0], [1], [0, 0, 1, 1], [], []>} : vector<8x24xf32>, vector<24x32xf32>, vector<8x32xf32> -> vector<8x32xf32>
    %c0_210 = arith.constant 0 : index
    %c0_211 = arith.constant 0 : index
    %369 = vector.load %arg23[%c0_210, %c0_211] : memref<64x32xf32, #tpu.memory_space<vmem>>, vector<64x32xf32>
    %370 = vector.extract_strided_slice %369 {offsets = [0, 0], sizes = [32, 32], strides = [1, 1]} : vector<64x32xf32> to vector<32x32xf32>
    %cst_212 = arith.constant dense<0.000000e+00> : vector<8x32xf32>
    %371 = tpu.matmul %367, %370, %cst_212 {dimension_numbers = #tpu.dot_dimension_numbers<[1], [0], [0], [1], [0, 0, 1, 1], [], []>} : vector<8x32xf32>, vector<32x32xf32>, vector<8x32xf32> -> vector<8x32xf32>
    %372 = vector.extract_strided_slice %369 {offsets = [32, 0], sizes = [32, 32], strides = [1, 1]} : vector<64x32xf32> to vector<32x32xf32>
    %cst_213 = arith.constant dense<0.000000e+00> : vector<8x32xf32>
    %373 = tpu.matmul %368, %372, %cst_213 {dimension_numbers = #tpu.dot_dimension_numbers<[1], [0], [0], [1], [0, 0, 1, 1], [], []>} : vector<8x32xf32>, vector<32x32xf32>, vector<8x32xf32> -> vector<8x32xf32>
    %374 = arith.addf %371, %373 : vector<8x32xf32>
    %c0_214 = arith.constant 0 : index
    %c0_215 = arith.constant 0 : index
    %375 = vector.load %arg24[%c0_214, %c0_215] : memref<1x32xf32, #tpu.memory_space<vmem>>, vector<1x32xf32>
    %376 = vector.broadcast %375 : vector<1x32xf32> to vector<8x32xf32>
    %377 = arith.addf %374, %376 : vector<8x32xf32>
    %378 = arith.mulf %377, %377 : vector<8x32xf32>
    %cst_216 = arith.constant dense<0.000000e+00> : vector<8xf32>
    %379 = vector.multi_reduction <add>, %378, %cst_216 [1] : vector<8x32xf32> to vector<8xf32>
    %380 = vector.shape_cast %379 : vector<8xf32> to vector<8x1xf32>
    %cst_217 = arith.constant 3.200000e+01 : f32
    %381 = vector.broadcast %cst_217 : f32 to vector<8x1xf32>
    %382 = arith.divf %380, %381 : vector<8x1xf32>
    %cst_218 = arith.constant 9.99999997E-7 : f32
    %383 = vector.broadcast %cst_218 : f32 to vector<8x1xf32>
    %384 = arith.addf %382, %383 : vector<8x1xf32>
    %385 = math.rsqrt %384 : vector<8x1xf32>
    %386 = vector.broadcast %385 : vector<8x1xf32> to vector<8x32xf32>
    %387 = arith.mulf %377, %386 : vector<8x32xf32>
    %cst_219 = arith.constant 0.000000e+00 : f32
    %388 = vector.broadcast %cst_219 : f32 to vector<8x32xf32>
    %389 = arith.cmpf oge, %387, %388 : vector<8x32xf32>
    %cst_220 = arith.constant 0.00999999977 : f32
    %390 = vector.broadcast %cst_220 : f32 to vector<8x32xf32>
    %391 = arith.mulf %390, %387 : vector<8x32xf32>
    %392 = arith.select %389, %387, %391 : vector<8x32xi1>, vector<8x32xf32>
    %c0_221 = arith.constant 0 : index
    %c0_222 = arith.constant 0 : index
    %393 = vector.load %arg25[%c0_221, %c0_222] : memref<32x32xf32, #tpu.memory_space<vmem>>, vector<32x32xf32>
    %cst_223 = arith.constant dense<0.000000e+00> : vector<8x32xf32>
    %394 = tpu.matmul %392, %393, %cst_223 {dimension_numbers = #tpu.dot_dimension_numbers<[1], [0], [0], [1], [0, 0, 1, 1], [], []>} : vector<8x32xf32>, vector<32x32xf32>, vector<8x32xf32> -> vector<8x32xf32>
    %c0_224 = arith.constant 0 : index
    %c0_225 = arith.constant 0 : index
    %395 = vector.load %arg26[%c0_224, %c0_225] : memref<1x32xf32, #tpu.memory_space<vmem>>, vector<1x32xf32>
    %396 = vector.broadcast %395 : vector<1x32xf32> to vector<8x32xf32>
    %397 = arith.addf %394, %396 : vector<8x32xf32>
    %c0_226 = arith.constant 0 : index
    %c0_227 = arith.constant 0 : index
    %398 = vector.load %arg27[%c0_226, %c0_227] : memref<64x32xf32, #tpu.memory_space<vmem>>, vector<64x32xf32>
    %399 = vector.extract_strided_slice %398 {offsets = [0, 0], sizes = [32, 32], strides = [1, 1]} : vector<64x32xf32> to vector<32x32xf32>
    %cst_228 = arith.constant dense<0.000000e+00> : vector<8x32xf32>
    %400 = tpu.matmul %181, %399, %cst_228 {dimension_numbers = #tpu.dot_dimension_numbers<[1], [0], [0], [1], [0, 0, 1, 1], [], []>} : vector<8x32xf32>, vector<32x32xf32>, vector<8x32xf32> -> vector<8x32xf32>
    %401 = vector.extract_strided_slice %398 {offsets = [32, 0], sizes = [32, 32], strides = [1, 1]} : vector<64x32xf32> to vector<32x32xf32>
    %cst_229 = arith.constant dense<0.000000e+00> : vector<8x32xf32>
    %402 = tpu.matmul %397, %401, %cst_229 {dimension_numbers = #tpu.dot_dimension_numbers<[1], [0], [0], [1], [0, 0, 1, 1], [], []>} : vector<8x32xf32>, vector<32x32xf32>, vector<8x32xf32> -> vector<8x32xf32>
    %403 = arith.addf %400, %402 : vector<8x32xf32>
    %404 = arith.addf %403, %6 : vector<8x32xf32>
    %405 = arith.mulf %404, %404 : vector<8x32xf32>
    %cst_230 = arith.constant dense<0.000000e+00> : vector<8xf32>
    %406 = vector.multi_reduction <add>, %405, %cst_230 [1] : vector<8x32xf32> to vector<8xf32>
    %407 = vector.shape_cast %406 : vector<8xf32> to vector<8x1xf32>
    %cst_231 = arith.constant 3.200000e+01 : f32
    %408 = vector.broadcast %cst_231 : f32 to vector<8x1xf32>
    %409 = arith.divf %407, %408 : vector<8x1xf32>
    %cst_232 = arith.constant 9.99999997E-7 : f32
    %410 = vector.broadcast %cst_232 : f32 to vector<8x1xf32>
    %411 = arith.addf %409, %410 : vector<8x1xf32>
    %412 = math.rsqrt %411 : vector<8x1xf32>
    %413 = vector.broadcast %412 : vector<8x1xf32> to vector<8x32xf32>
    %414 = arith.mulf %404, %413 : vector<8x32xf32>
    %cst_233 = arith.constant 0.000000e+00 : f32
    %415 = vector.broadcast %cst_233 : f32 to vector<8x32xf32>
    %416 = arith.cmpf oge, %414, %415 : vector<8x32xf32>
    %cst_234 = arith.constant 0.00999999977 : f32
    %417 = vector.broadcast %cst_234 : f32 to vector<8x32xf32>
    %418 = arith.mulf %417, %414 : vector<8x32xf32>
    %419 = arith.select %416, %414, %418 : vector<8x32xi1>, vector<8x32xf32>
    %c0_235 = arith.constant 0 : index
    %c0_236 = arith.constant 0 : index
    %420 = vector.load %arg30[%c0_235, %c0_236] : memref<32x32xf32, #tpu.memory_space<vmem>>, vector<32x32xf32>
    %cst_237 = arith.constant dense<0.000000e+00> : vector<8x32xf32>
    %421 = tpu.matmul %419, %420, %cst_237 {dimension_numbers = #tpu.dot_dimension_numbers<[1], [0], [0], [1], [0, 0, 1, 1], [], []>} : vector<8x32xf32>, vector<32x32xf32>, vector<8x32xf32> -> vector<8x32xf32>
    %c0_238 = arith.constant 0 : index
    %c0_239 = arith.constant 0 : index
    %422 = vector.load %arg31[%c0_238, %c0_239] : memref<1x32xf32, #tpu.memory_space<vmem>>, vector<1x32xf32>
    %423 = vector.broadcast %422 : vector<1x32xf32> to vector<8x32xf32>
    %424 = arith.addf %421, %423 : vector<8x32xf32>
    %cst_240 = arith.constant dense<0.000000e+00> : vector<24x32xf32>
    %425 = tpu.matmul %2, %424, %cst_240 {dimension_numbers = #tpu.dot_dimension_numbers<[1], [0], [0], [1], [0, 0, 1, 1], [], []>} : vector<24x8xf32>, vector<8x32xf32>, vector<24x32xf32> -> vector<24x32xf32>
    %c0_241 = arith.constant 0 : index
    %c0_242 = arith.constant 0 : index
    %426 = vector.load %arg32[%c0_241, %c0_242] : memref<96x32xf32, #tpu.memory_space<vmem>>, vector<96x32xf32>
    %427 = vector.extract_strided_slice %426 {offsets = [0, 0], sizes = [32, 32], strides = [1, 1]} : vector<96x32xf32> to vector<32x32xf32>
    %cst_243 = arith.constant dense<0.000000e+00> : vector<24x32xf32>
    %428 = tpu.matmul %220, %427, %cst_243 {dimension_numbers = #tpu.dot_dimension_numbers<[1], [0], [0], [1], [0, 0, 1, 1], [], []>} : vector<24x32xf32>, vector<32x32xf32>, vector<24x32xf32> -> vector<24x32xf32>
    %429 = vector.extract_strided_slice %426 {offsets = [32, 0], sizes = [32, 32], strides = [1, 1]} : vector<96x32xf32> to vector<32x32xf32>
    %cst_244 = arith.constant dense<0.000000e+00> : vector<24x32xf32>
    %430 = tpu.matmul %425, %429, %cst_244 {dimension_numbers = #tpu.dot_dimension_numbers<[1], [0], [0], [1], [0, 0, 1, 1], [], []>} : vector<24x32xf32>, vector<32x32xf32>, vector<24x32xf32> -> vector<24x32xf32>
    %431 = arith.addf %428, %430 : vector<24x32xf32>
    %432 = vector.extract_strided_slice %426 {offsets = [64, 0], sizes = [32, 32], strides = [1, 1]} : vector<96x32xf32> to vector<32x32xf32>
    %cst_245 = arith.constant dense<0.000000e+00> : vector<24x32xf32>
    %433 = tpu.matmul %366, %432, %cst_245 {dimension_numbers = #tpu.dot_dimension_numbers<[1], [0], [0], [1], [0, 0, 1, 1], [], []>} : vector<24x32xf32>, vector<32x32xf32>, vector<24x32xf32> -> vector<24x32xf32>
    %434 = arith.addf %431, %433 : vector<24x32xf32>
    %435 = arith.addf %434, %7 : vector<24x32xf32>
    %436 = arith.mulf %435, %435 : vector<24x32xf32>
    %cst_246 = arith.constant dense<0.000000e+00> : vector<24xf32>
    %437 = vector.multi_reduction <add>, %436, %cst_246 [1] : vector<24x32xf32> to vector<24xf32>
    %438 = vector.shape_cast %437 : vector<24xf32> to vector<24x1xf32>
    %cst_247 = arith.constant 3.200000e+01 : f32
    %439 = vector.broadcast %cst_247 : f32 to vector<24x1xf32>
    %440 = arith.divf %438, %439 : vector<24x1xf32>
    %cst_248 = arith.constant 9.99999997E-7 : f32
    %441 = vector.broadcast %cst_248 : f32 to vector<24x1xf32>
    %442 = arith.addf %440, %441 : vector<24x1xf32>
    %443 = math.rsqrt %442 : vector<24x1xf32>
    %444 = vector.broadcast %443 : vector<24x1xf32> to vector<24x32xf32>
    %445 = arith.mulf %435, %444 : vector<24x32xf32>
    %cst_249 = arith.constant 0.000000e+00 : f32
    %446 = vector.broadcast %cst_249 : f32 to vector<24x32xf32>
    %447 = arith.cmpf oge, %445, %446 : vector<24x32xf32>
    %cst_250 = arith.constant 0.00999999977 : f32
    %448 = vector.broadcast %cst_250 : f32 to vector<24x32xf32>
    %449 = arith.mulf %448, %445 : vector<24x32xf32>
    %450 = arith.select %447, %445, %449 : vector<24x32xi1>, vector<24x32xf32>
    %c0_251 = arith.constant 0 : index
    %c0_252 = arith.constant 0 : index
    %451 = vector.load %arg33[%c0_251, %c0_252] : memref<32x32xf32, #tpu.memory_space<vmem>>, vector<32x32xf32>
    %cst_253 = arith.constant dense<0.000000e+00> : vector<24x32xf32>
    %452 = tpu.matmul %450, %451, %cst_253 {dimension_numbers = #tpu.dot_dimension_numbers<[1], [0], [0], [1], [0, 0, 1, 1], [], []>} : vector<24x32xf32>, vector<32x32xf32>, vector<24x32xf32> -> vector<24x32xf32>
    %c0_254 = arith.constant 0 : index
    %c0_255 = arith.constant 0 : index
    %453 = vector.load %arg34[%c0_254, %c0_255] : memref<1x32xf32, #tpu.memory_space<vmem>>, vector<1x32xf32>
    %454 = vector.broadcast %453 : vector<1x32xf32> to vector<24x32xf32>
    %455 = arith.addf %452, %454 : vector<24x32xf32>
    %cst_256 = arith.constant 5.000000e-01 : f32
    %456 = vector.broadcast %cst_256 : f32 to vector<24x32xf32>
    %457 = arith.mulf %456, %220 : vector<24x32xf32>
    %458 = arith.addf %455, %457 : vector<24x32xf32>
    %c0_257 = arith.constant 0 : index
    %c0_258 = arith.constant 0 : index
    %459 = vector.load %arg35[%c0_257, %c0_258] : memref<32x32xf32, #tpu.memory_space<vmem>>, vector<32x32xf32>
    %cst_259 = arith.constant dense<0.000000e+00> : vector<24x32xf32>
    %460 = tpu.matmul %458, %459, %cst_259 {dimension_numbers = #tpu.dot_dimension_numbers<[1], [0], [0], [1], [0, 0, 1, 1], [], []>} : vector<24x32xf32>, vector<32x32xf32>, vector<24x32xf32> -> vector<24x32xf32>
    %c0_260 = arith.constant 0 : index
    %c0_261 = arith.constant 0 : index
    %461 = vector.load %arg36[%c0_260, %c0_261] : memref<1x32xf32, #tpu.memory_space<vmem>>, vector<1x32xf32>
    %462 = vector.broadcast %461 : vector<1x32xf32> to vector<24x32xf32>
    %463 = arith.addf %460, %462 : vector<24x32xf32>
    %464 = arith.mulf %463, %463 : vector<24x32xf32>
    %cst_262 = arith.constant dense<0.000000e+00> : vector<24xf32>
    %465 = vector.multi_reduction <add>, %464, %cst_262 [1] : vector<24x32xf32> to vector<24xf32>
    %466 = vector.shape_cast %465 : vector<24xf32> to vector<24x1xf32>
    %cst_263 = arith.constant 3.200000e+01 : f32
    %467 = vector.broadcast %cst_263 : f32 to vector<24x1xf32>
    %468 = arith.divf %466, %467 : vector<24x1xf32>
    %cst_264 = arith.constant 9.99999997E-7 : f32
    %469 = vector.broadcast %cst_264 : f32 to vector<24x1xf32>
    %470 = arith.addf %468, %469 : vector<24x1xf32>
    %471 = math.rsqrt %470 : vector<24x1xf32>
    %472 = vector.broadcast %471 : vector<24x1xf32> to vector<24x32xf32>
    %473 = arith.mulf %463, %472 : vector<24x32xf32>
    %cst_265 = arith.constant 0.000000e+00 : f32
    %474 = vector.broadcast %cst_265 : f32 to vector<24x32xf32>
    %475 = arith.cmpf oge, %473, %474 : vector<24x32xf32>
    %cst_266 = arith.constant 0.00999999977 : f32
    %476 = vector.broadcast %cst_266 : f32 to vector<24x32xf32>
    %477 = arith.mulf %476, %473 : vector<24x32xf32>
    %478 = arith.select %475, %473, %477 : vector<24x32xi1>, vector<24x32xf32>
    %c0_267 = arith.constant 0 : index
    %c0_268 = arith.constant 0 : index
    %479 = vector.load %arg37[%c0_267, %c0_268] : memref<32x4xf32, #tpu.memory_space<vmem>>, vector<32x4xf32>
    %cst_269 = arith.constant dense<0.000000e+00> : vector<24x4xf32>
    %480 = tpu.matmul %478, %479, %cst_269 {dimension_numbers = #tpu.dot_dimension_numbers<[1], [0], [0], [1], [0, 0, 1, 1], [], []>} : vector<24x32xf32>, vector<32x4xf32>, vector<24x4xf32> -> vector<24x4xf32>
    %c0_270 = arith.constant 0 : index
    %c0_271 = arith.constant 0 : index
    %481 = vector.load %arg38[%c0_270, %c0_271] : memref<1x4xf32, #tpu.memory_space<vmem>>, vector<1x4xf32>
    %482 = vector.broadcast %481 : vector<1x4xf32> to vector<24x4xf32>
    %483 = arith.addf %480, %482 : vector<24x4xf32>
    %c1 = arith.constant 1 : index
    %c0_272 = arith.constant 0 : index
    %c0_273 = arith.constant 0 : index
    %484 = vector.load %arg10[%c1, %c0_272, %c0_273] : memref<2x24x4xf32, #tpu.memory_space<vmem>>, vector<1x24x4xf32>
    %485 = vector.shape_cast %484 : vector<1x24x4xf32> to vector<24x4xf32>
    %486 = vector.broadcast %8 : vector<24x1xf32> to vector<24x4xf32>
    %487 = arith.mulf %485, %486 : vector<24x4xf32>
    %488 = arith.addf %483, %487 : vector<24x4xf32>
    %489 = arith.negf %488 : vector<24x4xf32>
    %490 = math.exp %489 : vector<24x4xf32>
    %cst_274 = arith.constant 1.000000e+00 : f32
    %491 = vector.broadcast %cst_274 : f32 to vector<24x4xf32>
    %492 = arith.addf %491, %490 : vector<24x4xf32>
    %493 = arith.divf %491, %492 : vector<24x4xf32>
    %494 = vector.broadcast %8 : vector<24x1xf32> to vector<24x4xf32>
    %495 = arith.mulf %493, %494 : vector<24x4xf32>
    %cst_275 = arith.constant 1.000000e+00 : f32
    %496 = vector.broadcast %cst_275 : f32 to vector<24x1xf32>
    %497 = arith.subf %496, %8 : vector<24x1xf32>
    %498 = vector.broadcast %497 : vector<24x1xf32> to vector<24x4xf32>
    %499 = arith.mulf %488, %498 : vector<24x4xf32>
    %cst_276 = arith.constant 1.000000e-01 : f32
    %500 = vector.broadcast %cst_276 : f32 to vector<24x4xf32>
    %501 = arith.mulf %499, %500 : vector<24x4xf32>
    %502 = arith.addf %495, %501 : vector<24x4xf32>
    %503 = tpu.concatenate %502, %488 in 1 : vector<24x4xf32>, vector<24x4xf32> -> vector<24x8xf32>
    %c1_277 = arith.constant 1 : index
    %c0_278 = arith.constant 0 : index
    %c0_279 = arith.constant 0 : index
    %504 = vector.load %arg39[%c1_277, %c0_278, %c0_279] : memref<2x24x8xf32, #tpu.memory_space<vmem>>, vector<1x24x8xf32>
    %505 = vector.shape_cast %504 : vector<1x24x8xf32> to vector<24x8xf32>
    %506 = vector.shape_cast %503 : vector<24x8xf32> to vector<1x24x8xf32>
    tpu.vector_store %arg39[%c1_277, %c0_278, %c0_279], %506 {strides = array<i32>} : memref<2x24x8xf32, #tpu.memory_space<vmem>>, vector<1x24x8xf32>,
    return
  }
}

</mosaic_0001>

<bundles_post_ra>
// kernel: mip_forward.1
= control target key start
LH: loop header
LB: loop body
LE: loop exit
PB: predicated region body
PF: predicated region fallthrough
CT: control target
= control target key end

     0   :  { %s11731_s6 = smov 1   ;;  %s11732_s10 = smov 2   ;;  %v12012_v24 = vmov 1.0   ;;  %v12014_v25 = vmov 1.0   ;;  %v12016_v26 = vmov 1.0   ;;  %v12018_v27 = vmov 1.0   ;;  %s13397_s0 = inlined_call_operand.smem [shape: u32[40], index: -1, kind: input, shape index: {}] }
   0x1   :  { %s1_s5 = sld [smem:[%s13397_s0]]   ;;  %s11733_s14 = smov 3   ;;  %v12020_v28 = vmov 1.0   ;;  %v12022_v29 = vmov 1.0  }
   0x2   :  { %s8922_s9 = sld [smem:[%s13397_s0 + %s11731_s6]]   ;;  %s13398_s18 = smov 4  }
   0x3   :  { %s8923_s13 = sld [smem:[%s13397_s0 + %s11732_s10]]   ;;  %s11735_s22 = smov 5  }
   0x4   :  { %s8924_s17 = sld [smem:[%s13397_s0 + %s11733_s14]]   ;;  %s11736_s26 = smov 6  }
   0x5   :  { %s8925_s21 = sld [smem:[%s13397_s0 + %s13398_s18]]   ;;  %s11737_s30 = smov 7  }
   0x6   :  { %s8926_s25 = sld [smem:[%s13397_s0 + %s11735_s22]]   ;;  %s11738_s4 = smov 8  }
   0x7   :  { %s8927_s29 = sld [smem:[%s13397_s0 + %s11736_s26]]   ;;  %v11808_v0 = vld [vmem:[%s1_s5] sm:$0xff]  ;;  %v11810_v1 = vld [vmem:[%s1_s5 + $0x8] sm:$0xff]  ;;  %v11812_v2 = vld [vmem:[%s1_s5 + $0x10] sm:$0xff]  ;;  %s11739_s10 = smov 9  }
   0x8   :  { %s8928_s3 = sld [smem:[%s13397_s0 + %s11737_s30]]   ;;  %v11817_v3 = vld [vmem:[%s8922_s9] sm:$0xff]  ;;  %v11819_v4 = vld [vmem:[%s8922_s9 + $0x8] sm:$0xff]  ;;  %s11740_s5 = smov 10  }
   0x9   :  { %s8929_s8 = sld [smem:[%s13397_s0 + %s11738_s4]]   ;;  %v11821_v5 = vld [vmem:[%s8923_s13] sm:$0xff]  ;;  %v11826_v6 = vld [vmem:[%s8923_s13 + $0x8] sm:$0xff]  ;;  %v11828_v7 = vld [vmem:[%s8923_s13 + $0x10] sm:$0xff]  ;;  %s11741_s9 = smov 11  }
   0xa   :  { %s8930_s14 = sld [smem:[%s13397_s0 + %s11739_s10]]   ;;  %v11830_v8 = vld [vmem:[%s8924_s17] sm:$0xff]  ;;  %s11742_s17 = smov 12  }
   0xb   :  { %s11835_s19 = sld [smem:[%s13397_s0 + %s11740_s5]]   ;;  %v11837_v9 = vld [vmem:[%s8925_s21] sm:$0xff]  ;;  %v11839_v10 = vld [vmem:[%s8925_s21 + $0x8] sm:$0xff]  ;;  %v11841_v11 = vld [vmem:[%s8925_s21 + $0x10] sm:$0xff]  ;;  %s11743_s21 = smov 13  }
   0xc   :  { %s11846_s13 = sld [smem:[%s13397_s0 + %s11741_s9]]   ;;  %v11848_v12 = vld [vmem:[%s8926_s25] sm:$0xff]  ;;  %v11850_v13 = vld [vmem:[%s8926_s25 + $0x8] sm:$0xff]  ;;  %s11744_s25 = smov 14  }
   0xd   :  { %s11855_s26 = sld [smem:[%s13397_s0 + %s11742_s17]]   ;;  %v11857_v14 = vld [vmem:[%s8927_s29] sm:$0xff]  ;;  %s11745_s29 = smov 15  }
   0xe   :  { %s11862_s30 = sld [smem:[%s13397_s0 + %s11743_s21]]   ;;  %v11864_v15 = vld [vmem:[%s8928_s3] sm:$0xff]  ;;  %v11866_v16 = vld [vmem:[%s8928_s3 + $0x8] sm:$0xff]  ;;  %v11868_v17 = vld [vmem:[%s8928_s3 + $0x10] sm:$0xff]  ;;  %s11746_s3 = smov 16  }
   0xf   :  { %s11873_s4 = sld [smem:[%s13397_s0 + %s11744_s25]]   ;;  %v11875_v18 = vld [vmem:[%s8929_s8] sm:$0xff]  ;;  %v11877_v19 = vld [vmem:[%s8929_s8 + $0x8] sm:$0xff]  ;;  %v11879_v20 = vld [vmem:[%s8929_s8 + $0x10] sm:$0xff]  ;;  %s11747_s8 = smov 17  }
  0x10   :  { %s11884_s10 = sld [smem:[%s13397_s0 + %s11745_s29]]   ;;  %v11886_v21 = vld [vmem:[%s8930_s14] sm:$0xff]  ;;  %v11888_v22 = vld [vmem:[%s8930_s14 + $0x8] sm:$0xff]  ;;  %v11890_v23 = vld [vmem:[%s8930_s14 + $0x10] sm:$0xff]  ;;  %s11748_s20 = smov 18  }
  0x11   :  { %13417 = sst [smem:[#allocation2_spill]] %s11835_s19  ;;  %s11749_s14 = smov 19  }
  0x12   :  { %s11895_s5 = sld [smem:[%s13397_s0 + %s11746_s3]]   ;;  %s11750_s28 = smov 20  }
  0x13   :  { %s11900_s9 = sld [smem:[%s13397_s0 + %s11747_s8]]   ;;  %s11751_s29 = smov 21  }
  0x14   :  { %s11905_s23 = sld [smem:[%s13397_s0 + %s11748_s20]]   ;;  %s11752_s11 = smov 22  }
  0x15   :  { %s11910_s27 = sld [smem:[%s13397_s0 + %s11749_s14]]   ;;  %s11753_s16 = smov 23  }
  0x16   :  { %s11915_s2 = sld [smem:[%s13397_s0 + %s11750_s28]]   ;;  %s11754_s14 = smov 24  }
  0x17   :  { %s11920_s3 = sld [smem:[%s13397_s0 + %s11751_s29]]   ;;  %s11755_s25 = smov 25  }
  0x18   :  { %s11925_s15 = sld [smem:[%s13397_s0 + %s11752_s11]]   ;;  %s11756_s7 = smov 26  }
  0x19   :  { %s11930_s17 = sld [smem:[%s13397_s0 + %s11753_s16]]   ;;  %s11757_s16 = smov 27  }
  0x1a   :  { %s11935_s28 = sld [smem:[%s13397_s0 + %s11754_s14]]   ;;  %s11758_s14 = smov 28  }
  0x1b   :  { %s11940_s6 = sld [smem:[%s13397_s0 + %s11755_s25]]   ;;  %s11759_s25 = smov 29  }
  0x1c   :  { %s11945_s8 = sld [smem:[%s13397_s0 + %s11756_s7]]   ;;  %s11760_s7 = smov 30  }
  0x1d   :  { %s11950_s18 = sld [smem:[%s13397_s0 + %s11757_s16]]   ;;  %s11761_s16 = smov 31  }
  0x1e   :  { %s11955_s19 = sld [smem:[%s13397_s0 + %s11758_s14]]   ;;  %s11762_s14 = smov 32  }
  0x21   :  { %13418 = sst [smem:[#allocation3_spill]] %s11940_s6 }
  0x22   :  { %13419 = sst [smem:[#allocation4_spill]] %s11945_s8 }
  0x23   :  { %13420 = sst [smem:[#allocation5_spill]] %s11950_s18 }
  0x24   :  { %13421 = sst [smem:[#allocation6_spill]] %s11955_s19 }
  0x25   :  { %s11960_s6 = sld [smem:[%s13397_s0 + %s11759_s25]]   ;;  %s11763_s25 = smov 33  }
  0x26   :  { %s11965_s8 = sld [smem:[%s13397_s0 + %s11760_s7]]   ;;  %s11764_s7 = smov 34  }
  0x27   :  { %s11970_s18 = sld [smem:[%s13397_s0 + %s11761_s16]]   ;;  %s11765_s16 = smov 35  }
  0x28   :  { %s11975_s19 = sld [smem:[%s13397_s0 + %s11762_s14]]   ;;  %s11766_s14 = smov 36  }
  0x2b   :  { %13422 = sst [smem:[#allocation7_spill]] %s11960_s6 }
  0x2c   :  { %13423 = sst [smem:[#allocation8_spill]] %s11965_s8 }
  0x2d   :  { %13424 = sst [smem:[#allocation9_spill]] %s11970_s18 }
  0x2e   :  { %13425 = sst [smem:[#allocation10_spill]] %s11975_s19 }
  0x2f   :  { %s11980_s6 = sld [smem:[%s13397_s0 + %s11763_s25]]   ;;  %s11767_s25 = smov 37  }
  0x30   :  { %s11985_s8 = sld [smem:[%s13397_s0 + %s11764_s7]]   ;;  %s11768_s7 = smov 38  }
  0x31   :  { %s11990_s18 = sld [smem:[%s13397_s0 + %s11765_s16]]   ;;  %s11769_s16 = smov 39  }
  0x32   :  { %s11995_s19 = sld [smem:[%s13397_s0 + %s11766_s14]]   ;;  %s12024_s14 = smov 0  }
  0x35   :  { %13426 = sst [smem:[#allocation11_spill]] %s11980_s6 }
  0x36   :  { %13427 = sst [smem:[#allocation12_spill]] %s11985_s8 }
  0x37   :  { %13428 = sst [smem:[#allocation13_spill]] %s11990_s18 }
  0x38   :  { %s12000_s6 = sld [smem:[%s13397_s0 + %s11767_s25]]  }
  0x39   :  { %s12005_s8 = sld [smem:[%s13397_s0 + %s11768_s7]]  }
  0x3a   :  { %s12010_s18 = sld [smem:[%s13397_s0 + %s11769_s16]]  }
  0x3b LB: > { %v382_v30 = vld [vmem:[%s11846_s13 + $0x20] sm:$0xff]  ;;  %v383_v31 = vld [vmem:[%s11846_s13 + $0x28] sm:$0xff]  ;;  %v11770_v32 = vmov 0.0|0.0   ;;  %v10905_v35 = vpack.c.bf16 %v11709_v25, %v11713_v26  ;;  %vm11771_vm0 = vmmov 0   ;;  %v11772_v36 = vmov 0.0   ;;  %v384_v39 = vld [vmem:[%s11846_s13 + $0x30] sm:$0xff]  ;;  %s11729_s14 = sphi %s12024_s14, %s191_s14   ;;  %v11725_v29 = vphi %v12022_v29, %v13450_v29   ;;  %v11721_v28 = vphi %v12020_v28, %v13449_v28   ;;  %v11717_v27 = vphi %v12018_v27, %v13448_v27   ;;  %v11713_v26 = vphi %v12016_v26, %v13447_v26   ;;  %v11709_v25 = vphi %v12014_v25, %v13446_v25   ;;  %v11705_v24 = vphi %v12012_v24, %v13445_v24  }
  0x3c   : > { %10904 = vmatprep.subr.bf16.mxu0 %v11770_v32  ;;  %v378_v33 = vld [vmem:[%s11846_s13] sm:$0xff]  ;;  %v379_v34 = vld [vmem:[%s11846_s13 + $0x8] sm:$0xff]  ;;  %9740 = vmatprep.mubr.msk.f32.mxu0 %vm11771_vm0, %v11772_v36  ;;  %vm288_vm1 = vcmask 64512   ;;  %v10908_v37 = vpack.c.bf16 %v383_v31, %v382_v30  ;;  %vm198_vm2 = vcmask 130048   ;;  %v385_v40 = vld [vmem:[%s11846_s13 + $0x38] sm:$0xff]  ;;  %vm390_vm3 = vcmask 261120  }
  0x3d   : > { %9749 = vmatprep.subr.mxu1 %v11772_v36  ;;  %9751 = vmatprep.mubr.msk.f32.mxu1 %vm11771_vm0, %v11772_v36  ;;  %v10914_v38 = vpack.c.bf16 %v379_v34, %v378_v33  ;;  %v380_v41 = vld [vmem:[%s11846_s13 + $0x10] sm:$0xff]  ;;  %v381_v42 = vld [vmem:[%s11846_s13 + $0x18] sm:$0xff]  ;;  %v10911_v43 = vpack.c.bf16 %v385_v40, %v384_v39  ;;  %v386_v45 = vld [vmem:[%s11846_s13 + $0x40] sm:$0xff]  ;;  %vm816_vm7 = vcmask 195584   ;;  %s13431_s0 = sld [smem:[#allocation3_spill]]  ;;  %s13432_s24 = sld [smem:[#allocation5_spill]] }
  0x3e   : > { %10906 = vmatpush3.bf16.msra.mxu0 %v10905_v35  ;;  %9750 = vmatpush3.msra.mxu1 %v11705_v24  ;;  %v10917_v44 = vpack.c.bf16 %v381_v42, %v380_v41  ;;  %v387_v46 = vld [vmem:[%s11846_s13 + $0x48] sm:$0xff]  ;;  %v388_v49 = vld [vmem:[%s11846_s13 + $0x50] sm:$0xff]  ;;  %v389_v50 = vld [vmem:[%s11846_s13 + $0x58] sm:$0xff]  ;;  %s13433_s21 = sld [smem:[#allocation4_spill]]  ;;  %s13434_s25 = sld [smem:[#allocation6_spill]] }
  0x3f   : > { %9752 = vmatmul.mubr.msk.f32.vlgmr.msra.gmra.mrb[0].mxu1 %vm288_vm1, %v11821_v5  ;;  %10907 = vmatprep.subr.bf16.mxu1 %v11770_v32  ;;  %v10920_v47 = vpack.c.bf16 %v387_v46, %v386_v45  ;;  %v10923_v54 = vpack.c.bf16 %v389_v50, %v388_v49  ;;  %s13435_s1 = sld [smem:[#allocation8_spill]]  ;;  %s13436_s29 = sld [smem:[#allocation10_spill]] }
  0x40   : > { %9754 = vmatprep.mubr.msk.f32.mxu1 %vm11771_vm0, %v11772_v36  ;;  %10913 = vmatprep.subr.bf16.mxu0 %v11770_v32  ;;  %s13437_s7 = sld [smem:[#allocation7_spill]]  ;;  %s13438_s11 = sld [smem:[#allocation9_spill]] }
  0x41   : > { %9741 = vmatmul.mubr.msk.f32.vlgmr.msra.gmra.mrb[0].mxu0 %vm198_vm2, %v11808_v0  ;;  %10909 = vmatpush3.bf16.msra.mxu1 %v10908_v37  ;;  %s13440_s12 = sld [smem:[#allocation11_spill]]  ;;  %s13441_s16 = sld [smem:[#allocation12_spill]] }
  0x42   : > { %9743 = vmatprep.mubr.msk.f32.mxu0 %vm11771_vm0, %v11772_v36  ;;  %10915 = vmatpush3.bf16.msra.mxu0 %v10914_v38  ;;  %s191_s14 = sadd.s32 1, %s11729_s14  }
  0x43   : > { %9755 = vmatmul.mubr.msk.f32.gmra.mrb[2].mxu1 %vm288_vm1, %v11826_v6  ;;  %10910 = vmatprep.subr.bf16.mxu1 %v11770_v32  ;;  %p188_p0 = scmp.ge.s32.totalorder %s191_s14, 8  }
  0x44   : > { %9757 = vmatprep.mubr.msk.f32.mxu1 %vm11771_vm0, %v11772_v36  ;;  %10916 = vmatprep.subr.bf16.mxu0 %v11770_v32  ;;  %s13452_s20 = sld [smem:[#allocation5_spill]] (%p188_p0)  ;;  %s13453_s22 = sld [smem:[#allocation4_spill]] (%p188_p0) }
  0x45   : > { %9744 = vmatmul.mubr.msk.f32.gmra.mrb[2].mxu0 %vm198_vm2, %v11810_v1  ;;  %10912 = vmatpush3.bf16.msra.mxu1 %v10911_v43  ;;  %s13454_s14 = sld [smem:[#allocation6_spill]] (%p188_p0) }
  0x46   : > { %9746 = vmatprep.mubr.msk.f32.mxu0 %vm11771_vm0, %v11772_v36  ;;  %10918 = vmatpush3.bf16.msra.mxu0 %v10917_v44 }
  0x47   : > { %9758 = vmatmul.mubr.msk.f32.gmra.mrb[4].mxu1 %vm288_vm1, %v11828_v7  ;;  %10919 = vmatprep.subr.bf16.mxu1 %v11770_v32 }
  0x48   : > { %9768 = vmatprep.mubr.msk.f32.mxu1 %vm11771_vm0, %v11772_v36  ;;  %10925 = vmatprep.subr.bf16.mxu0 %v11770_v32 }
  0x49   : > { %9747 = vmatmul.mubr.msk.f32.gmra.mrb[4].mxu0 %vm198_vm2, %v11812_v2 }
  0x4a   : > { %9785 = vmatprep.mubr.msk.f32.mxu0 %vm11771_vm0, %v11772_v36 }
  0x4d   : > { %9786 = vmatmul.mubr.msk.f32.vlgmr.msra.gmra.mrb[6].mxu0 %vm390_vm3, %v11725_v29 }
  0x4e   : > { %9788 = vmatprep.mubr.msk.f32.mxu0 %vm11771_vm0, %v11772_v36 }
  0x51   : > { %9789 = vmatmul.mubr.msk.f32.gmra.mrb[8].mxu0 %vm390_vm3, %v11721_v28 }
  0x52   : > { %9791 = vmatprep.mubr.msk.f32.mxu0 %vm11771_vm0, %v11772_v36 }
  0x55   : > { %9792 = vmatmul.mubr.msk.f32.gmra.mrb[10].mxu0 %vm390_vm3, %v11717_v27 }
  0x56   : > { %9819 = vmatprep.mubr.msk.f32.mxu0 %vm11771_vm0, %v11772_v36 }
 0x112   : > { %v364_v48 = vpop.f32.mrb[0].mxu1 }
 0x113   : > { %v9753_v51 = vpop.f32.mrb[1].mxu1 }
 0x114   : > { %v274_v52 = vpop.f32.mrb[0].mxu0 }
 0x115   : > { %v9742_v53 = vpop.f32.mrb[1].mxu0  ;;  %9769 = vmatmul.mubr.msk.f32.vlgmr.msra.gmra.mrb[6].mxu1 %vm390_vm3, %v274_v52 }
 0x116   : > { %9771 = vmatprep.mubr.msk.f32.mxu1 %vm11771_vm0, %v11772_v36  ;;  %10921 = vmatpush3.bf16.msra.mxu1 %v10920_v47  ;;  %v369_v55 = vpop.f32.mrb[2].mxu1 }
 0x117   : > { %10922 = vmatprep.subr.bf16.mxu1 %v11770_v32  ;;  %v9756_v56 = vpop.f32.mrb[3].mxu1 }
 0x118   : > { %v279_v57 = vpop.f32.mrb[2].mxu0 }
 0x119   : > { %v9745_v58 = vpop.f32.mrb[3].mxu0  ;;  %9772 = vmatmul.mubr.msk.f32.gmra.mrb[8].mxu1 %vm390_vm3, %v279_v57 }
 0x11a   : > { %9774 = vmatprep.mubr.msk.f32.mxu1 %vm11771_vm0, %v11772_v36  ;;  %10924 = vmatpush3.bf16.msra.mxu1 %v10923_v54  ;;  %v374_v59 = vpop.f32.mrb[4].mxu1 }
 0x11b   : > { %v9759_v60 = vpop.f32.mrb[5].mxu1 }
 0x11c   : > { %v284_v61 = vpop.f32.mrb[4].mxu0 }
 0x11d   : > { %v9748_v62 = vpop.f32.mrb[5].mxu0  ;;  %9775 = vmatmul.mubr.msk.f32.gmra.mrb[10].mxu1 %vm390_vm3, %v284_v61 }
 0x11e   : > { %9802 = vmatprep.mubr.msk.f32.mxu1 %vm11771_vm0, %v11772_v36 }
 0x120   : > { %v555_v63 = vpop.f32.mrb[6].mxu0 }
 0x121   : > { %9803 = vmatmul.mubr.msk.f32.vlgmr.msra.gmra.mrb[12].mxu1 %vm390_vm3, %v364_v48  ;;  %v9787_v30 = vpop.f32.mrb[7].mxu0 }
 0x122   : > { %9805 = vmatprep.mubr.msk.f32.mxu1 %vm11771_vm0, %v11772_v36  ;;  %v698_v30 = vld [vmem:[%s11855_s26] sm:$0xff] }
 0x124   : > { %v560_v31 = vpop.f32.mrb[8].mxu0 }
 0x125   : > { %9806 = vmatmul.mubr.msk.f32.gmra.mrb[14].mxu1 %vm390_vm3, %v369_v55  ;;  %v9790_v33 = vpop.f32.mrb[9].mxu0 }
 0x126   : > { %9808 = vmatprep.mubr.msk.f32.mxu1 %vm11771_vm0, %v11772_v36 }
 0x128   : > { %v565_v34 = vpop.f32.mrb[10].mxu0 }
 0x129   : > { %9809 = vmatmul.mubr.msk.f32.gmra.mrb[16].mxu1 %vm390_vm3, %v374_v59  ;;  %v9793_v35 = vpop.f32.mrb[11].mxu0 }
 0x12a   : > { %v701_v35 = vld [vmem:[%s11855_s26 + $0x18] sm:$0xff]  ;;  %9834 = vmatprep.mubr.msk.f32.mxu1 %vm816_vm7, %v11817_v3 }
 0x1e8   : > { %v466_v37 = vpop.f32.mrb[6].mxu1 }
 0x1e9   : > { %v556_v38 = vadd.f32 %v555_v63, %v466_v37  ;;  %v9770_v39 = vpop.f32.mrb[7].mxu1 }
 0x1ec   : > { %v471_v40 = vpop.f32.mrb[8].mxu1 }
 0x1ed   : > { %v561_v41 = vadd.f32 %v560_v31, %v471_v40  ;;  %v9773_v42 = vpop.f32.mrb[9].mxu1  ;;  %v699_v31 = vld [vmem:[%s11855_s26 + $0x8] sm:$0xff] }
 0x1ee   : > { %v10926_v33 = vpack.c.bf16 %v699_v31, %v698_v30 }
 0x1f0   : > { %v476_v43 = vpop.f32.mrb[10].mxu1  ;;  %10927 = vmatpush3.bf16.msra.mxu0 %v10926_v33  ;;  %v8976_v33 = vld [vmem:[%s11862_s30] ss:$0 sm:$0xff] }
 0x1f1   : > { %v566_v44 = vadd.f32 %v565_v34, %v476_v43  ;;  %v9776_v45 = vpop.f32.mrb[11].mxu1  ;;  %10928 = vmatprep.subr.bf16.mxu0 %v11770_v32  ;;  %v700_v34 = vld [vmem:[%s11855_s26 + $0x10] sm:$0xff] }
 0x1f2   : > { %v10929_v37 = vpack.c.bf16 %v701_v35, %v700_v34 }
 0x1f4   : > { %v644_v46 = vpop.f32.mrb[12].mxu1  ;;  %10930 = vmatpush3.bf16.msra.mxu0 %v10929_v37 }
 0x1f5   : > { %v658_v47 = vadd.f32 %v644_v46, %v556_v38  ;;  %v9804_v48 = vpop.f32.mrb[13].mxu1 }
 0x1f7   : > { %v661_v49 = vadd.f32 %v658_v47, %v11837_v9 }
 0x1f8   : > { %v649_v50 = vpop.f32.mrb[14].mxu1 }
 0x1f9   : > { %v659_v51 = vadd.f32 %v649_v50, %v561_v41  ;;  %v9807_v52 = vpop.f32.mrb[15].mxu1  ;;  %v664_v53 = vmul.f32 %v661_v49, %v661_v49 }
 0x1fb   : > { %v662_v54 = vadd.f32 %v659_v51, %v11839_v10  ;;  %v667_v55 = vsel %vm390_vm3, %v664_v53, 0.0 }
 0x1fc   : > { %668 = vadd.xlane.f32.xlu0 %v667_v55  ;;  %v654_v56 = vpop.f32.mrb[16].mxu1 }
 0x1fd   : > { %v660_v57 = vadd.f32 %v654_v56, %v566_v44  ;;  %v665_v58 = vmul.f32 %v662_v54, %v662_v54  ;;  %v9810_v59 = vpop.f32.mrb[17].mxu1 }
 0x1fe   : > { %v12149_v59 = vpack.c.bf16 %v11721_v28, %v11725_v29 }
 0x1ff   : > { %v663_v60 = vadd.f32 %v660_v57, %v11841_v11  ;;  %v670_v61 = vsel %vm390_vm3, %v665_v58, 0.0 }
 0x200   : > { %671 = vadd.xlane.f32.xlu0 %v670_v61  ;;  %v978_v61 = vld [vmem:[%s11873_s4 + $0x28] sm:$0xff]  ;;  %10932 = vmatprep.subr.bf16.mxu1 %v12149_v59 }
 0x201   : > { %v666_v62 = vmul.f32 %v663_v60, %v663_v60  ;;  %10934 = vmatpush3.bf16.msra.mxu1 %v12149_v59 }
 0x202   : > { %9832 = vmatprep.subr.mxu1 %v11717_v27 }
 0x203   : > { %v673_v63 = vsel %vm390_vm3, %v666_v62, 0.0  ;;  %v979_v62 = vld [vmem:[%s11873_s4 + $0x30] sm:$0xff] }
 0x204   : > { %674 = vadd.xlane.f32.xlu1 %v673_v63  ;;  %v980_v63 = vld [vmem:[%s11873_s4 + $0x38] sm:$0xff] }
 0x205   : > { %v10943_v31 = vpack.c.bf16 %v980_v63, %v979_v62  ;;  %9833 = vmatpush3.msra.mxu1 %v11717_v27  ;;  %v975_v63 = vld [vmem:[%s11873_s4 + $0x10] sm:$0xff] }
 0x206   : > { %9835 = vmatmul.mubr.msk.f32.vlgmr.msra.gmra.mrb[18].mxu1 %vm816_vm7, %v11819_v4 }
 0x289   : > { %v669_v38 = vpop.xlane.xlu0 %668 }
 0x28a   : > { %v677_v39 = vmul.f32 0.03125, %v669_v38 }
 0x28c   : > { %v680_v40 = vadd.f32 1e-06, %v677_v39 }
 0x28d   : > { %v672_v41 = vpop.xlane.xlu0 %671 }
 0x28e   : > { %11529 = vrsqrt.f32 %v680_v40  ;;  %v678_v42 = vmul.f32 0.03125, %v672_v41 }
 0x290   : > { %v681_v43 = vadd.f32 1e-06, %v678_v42 }
 0x291   : > { %v675_v44 = vpop.xlane.xlu1 %674 }
 0x292   : > { %11531 = vrsqrt.f32 %v681_v43  ;;  %v679_v45 = vmul.f32 0.03125, %v675_v44 }
 0x294   : > { %v682_v46 = vadd.f32 1e-06, %v679_v45 }
 0x296   : > { %11533 = vrsqrt.f32 %v682_v46 }
 0x298   : > { %v11530_v47 = vpop.eup %11529 }
 0x299   : > { %v686_v48 = vmul.f32 %v11530_v47, %v661_v49 }
 0x29b   : > { %vm689_vm4 = vcmp.ge.f32.partialorder %v686_v48, 0.0  ;;  %v692_v50 = vmul.f32 0.01, %v686_v48 }
 0x29c   : > { %v11532_v51 = vpop.eup %11531 }
 0x29d   : > { %v695_v52 = vsel %vm689_vm4, %v686_v48, %v692_v50  ;;  %v687_v53 = vmul.f32 %v11532_v51, %v662_v54 }
 0x29e   : > { %9820 = vmatmul.mubr.msk.f32.vlgmr.msra.gmra.mrb[12].mxu0 %vm390_vm3, %v695_v52 }
 0x29f   : > { %9822 = vmatprep.mubr.msk.f32.mxu0 %vm11771_vm0, %v11772_v36  ;;  %vm690_vm5 = vcmp.ge.f32.partialorder %v687_v53, 0.0  ;;  %v693_v55 = vmul.f32 0.01, %v687_v53 }
 0x2a0   : > { %v11534_v56 = vpop.eup %11533 }
 0x2a1   : > { %v696_v57 = vsel %vm690_vm5, %v687_v53, %v693_v55  ;;  %v688_v58 = vmul.f32 %v11534_v56, %v663_v60  ;;  %v977_v60 = vld [vmem:[%s11873_s4 + $0x20] sm:$0xff] }
 0x2a2   : > { %9823 = vmatmul.mubr.msk.f32.gmra.mrb[14].mxu0 %vm390_vm3, %v696_v57  ;;  %v10939_v30 = vpack.c.bf16 %v978_v61, %v977_v60 }
 0x2a3   : > { %9825 = vmatprep.mubr.msk.f32.mxu0 %vm11771_vm0, %v11772_v36  ;;  %vm691_vm6 = vcmp.ge.f32.partialorder %v688_v58, 0.0  ;;  %v694_v49 = vmul.f32 0.01, %v688_v58 }
 0x2a4   : > { %10940 = vmatprep.subr.bf16.mxu1 %v10939_v30 }
 0x2a5   : > { %v697_v54 = vsel %vm691_vm6, %v688_v58, %v694_v49  ;;  %10942 = vmatpush3.bf16.msra.mxu1 %v10939_v30  ;;  %v973_v49 = vld [vmem:[%s11873_s4] sm:$0xff]  ;;  %v976_v30 = vld [vmem:[%s11873_s4 + $0x18] sm:$0xff] }
 0x2a6   : > { %9826 = vmatmul.mubr.msk.f32.gmra.mrb[16].mxu0 %vm390_vm3, %v697_v54  ;;  %10944 = vmatprep.subr.bf16.mxu1 %v10943_v31  ;;  %v974_v54 = vld [vmem:[%s11873_s4 + $0x8] sm:$0xff] }
 0x2a7   : > { %9843 = vmatprep.mubr.msk.f32.mxu0 %vm816_vm7, %v11817_v3  ;;  %v10947_v60 = vpack.c.bf16 %v974_v54, %v973_v49 }
 0x2a9   : > { %10946 = vmatpush3.bf16.msra.mxu1 %v10943_v31 }
 0x2aa   : > { %10948 = vmatprep.subr.bf16.mxu1 %v10947_v60 }
 0x2d9   : > { %v9836_v61 = vpop.f32.mrb[18].mxu1 }
 0x2da   : > { %v889_v62 = vpop.f32.mrb[19].mxu1 }
 0x371   : > { %v784_v34 = vpop.f32.mrb[12].mxu0 }
 0x372   : > { %v785_v35 = vadd.f32 %v8976_v33, %v784_v34  ;;  %v9821_v37 = vpop.f32.mrb[13].mxu0  ;;  %v10951_v34 = vpack.c.bf16 %v976_v30, %v975_v63 }
 0x374   : > { %v8980_v38 = vmul.f32 -1.442695, %v785_v35  ;;  %v8991_v35 = vld [vmem:[%s11884_s10] ss:$0 sm:$0xff] }
 0x375   : > { %v789_v39 = vpop.f32.mrb[14].mxu0 }
 0x376   : > { %11535 = vpow2.f32 %v8980_v38  ;;  %v790_v40 = vadd.f32 %v8976_v33, %v789_v39  ;;  %v9824_v41 = vpop.f32.mrb[15].mxu0 }
 0x378   : > { %v8981_v42 = vmul.f32 -1.442695, %v790_v40 }
 0x379   : > { %v794_v43 = vpop.f32.mrb[16].mxu0 }
 0x37a   : > { %11537 = vpow2.f32 %v8981_v42  ;;  %v795_v44 = vadd.f32 %v8976_v33, %v794_v43  ;;  %v9827_v45 = vpop.f32.mrb[17].mxu0 }
 0x37b   : > { %v1174_v45 = vld [vmem:[%s11895_s5] sm:$0xff] }
 0x37c   : > { %v8982_v46 = vmul.f32 -1.442695, %v795_v44 }
 0x37e   : > { %11539 = vpow2.f32 %v8982_v46  ;;  %v1175_v46 = vld [vmem:[%s11895_s5 + $0x8] sm:$0xff] }
 0x380   : > { %v11536_v47 = vpop.eup %11535 }
 0x381   : > { %v807_v48 = vadd.f32 1.0, %v11536_v47  ;;  %v1176_v47 = vld [vmem:[%s11895_s5 + $0x10] sm:$0xff] }
 0x383   : > { %11541 = vrcp.f32 %v807_v48  ;;  %v10955_v48 = vpack.c.bf16 %v1175_v46, %v1174_v45  ;;  %v8992_v45 = vld [vmem:[%s11900_s9] ss:$0 sm:$0xff] }
 0x384   : > { %v11538_v50 = vpop.eup %11537 }
 0x385   : > { %v808_v51 = vadd.f32 1.0, %v11538_v50  ;;  %v1177_v50 = vld [vmem:[%s11895_s5 + $0x18] sm:$0xff] }
 0x387   : > { %11543 = vrcp.f32 %v808_v51  ;;  %v10959_v51 = vpack.c.bf16 %v1177_v50, %v1176_v47  ;;  %v1268_v47 = vld [vmem:[%s11905_s23 + $0x10] sm:$0xff] }
 0x388   : > { %v11540_v52 = vpop.eup %11539 }
 0x389   : > { %v809_v53 = vadd.f32 1.0, %v11540_v52  ;;  %v1270_v52 = vld [vmem:[%s11905_s23 + $0x20] sm:$0xff] }
 0x38b   : > { %11545 = vrcp.f32 %v809_v53  ;;  %v1271_v53 = vld [vmem:[%s11905_s23 + $0x28] sm:$0xff] }
 0x38d   : > { %v11542_v55 = vpop.eup %11541 }
 0x391   : > { %v11544_v56 = vpop.eup %11543 }
 0x392   : > { %v12164_v57 = vpack.c.bf16 %v11544_v56, %v11542_v55  ;;  %v10963_v55 = vpack.c.bf16 %v1271_v53, %v1270_v52 }
 0x394   : > { %10936 = vmatprep.subr.bf16.mxu0 %v12164_v57 }
 0x395   : > { %v12167_v58 = vpop.eup %11545  ;;  %10938 = vmatpush3.bf16.msra.mxu0 %v12164_v57 }
 0x396   : > { %9841 = vmatprep.subr.mxu0 %v12167_v58 }
 0x399   : > { %9842 = vmatpush3.msra.mxu0 %v12167_v58 }
 0x39a   : > { %9844 = vmatmul.mubr.msk.f32.vlgmr.msra.gmra.mrb[18].mxu0 %vm816_vm7, %v11819_v4  ;;  %10956 = vmatprep.subr.bf16.mxu0 %v10955_v48 }
 0x39b   : > { %10958 = vmatpush3.bf16.msra.mxu0 %v10955_v48  ;;  %v1269_v48 = vld [vmem:[%s11905_s23 + $0x18] sm:$0xff] }
 0x39c   : > { %10960 = vmatprep.subr.bf16.mxu0 %v10959_v51  ;;  %v10975_v53 = vpack.c.bf16 %v1269_v48, %v1268_v47 }
 0x39f   : > { %10962 = vmatpush3.bf16.msra.mxu0 %v10959_v51 }
 0x3a0   : > { %10964 = vmatprep.subr.bf16.mxu0 %v10963_v55 }
 0x46d   : > { %v9845_v31 = vpop.f32.mrb[18].mxu0 }
 0x46e   : > { %v964_v33 = vpop.f32.mrb[19].mxu0 }
 0x46f   : > { %9854 = vmatprep.mubr.msk.f32.mxu1 %vm390_vm3, %v964_v33 }
 0x470   : > { %9855 = vmatmul.mubr.msk.f32.vlgmr.msra.gmra.mrb[20].mxu1 %vm390_vm3, %v9845_v31 }
 0x471   : > { %10950 = vmatpush3.bf16.msra.mxu1 %v10947_v60  ;;  %9865 = vmatprep.mubr.msk.f32.mxu1 %vm390_vm3, %v889_v62 }
 0x472   : > { %10952 = vmatprep.subr.bf16.mxu1 %v10951_v34 }
 0x475   : > { %10954 = vmatpush3.bf16.msra.mxu1 %v10951_v34 }
 0x478   : > { %9866 = vmatmul.mubr.msk.f32.vlgmr.msra.gmra.mrb[20].mxu1 %vm390_vm3, %v9836_v61 }
 0x54b   : > { %v9867_v37 = vpop.f32.mrb[20].mxu1 }
 0x54c   : > { %v1151_v38 = vadd.f32 %v9867_v37, %v8991_v35  ;;  %v1134_v39 = vpop.f32.mrb[21].mxu1 }
 0x54d   : > { %v1150_v40 = vadd.f32 %v8991_v35, %v1134_v39 }
 0x54e   : > { %v1153_v41 = vmul.f32 %v1151_v38, %v1151_v38 }
 0x54f   : > { %v1152_v42 = vmul.f32 %v1150_v40, %v1150_v40 }
 0x550   : > { %v1157_v43 = vsel %vm390_vm3, %v1153_v41, 0.0  ;;  %v1272_v41 = vld [vmem:[%s11905_s23 + $0x30] sm:$0xff] }
 0x551   : > { %1158 = vadd.xlane.f32.xlu0 %v1157_v43  ;;  %v1154_v44 = vsel %vm390_vm3, %v1152_v42, 0.0  ;;  %v1273_v42 = vld [vmem:[%s11905_s23 + $0x38] sm:$0xff]  ;;  %v1267_v43 = vld [vmem:[%s11905_s23 + $0x8] sm:$0xff] }
 0x552   : > { %1155 = vadd.xlane.f32.xlu1 %v1154_v44 }
 0x5de   : > { %v1159_v56 = vpop.xlane.xlu0 %1158 }
 0x5df   : > { %v1161_v49 = vmul.f32 0.03125, %v1159_v56  ;;  %v1156_v54 = vpop.xlane.xlu1 %1155 }
 0x5e0   : > { %v1160_v60 = vmul.f32 0.03125, %v1156_v54 }
 0x5e1   : > { %v1163_v61 = vadd.f32 1e-06, %v1161_v49 }
 0x5e2   : > { %v1162_v62 = vadd.f32 1e-06, %v1160_v60 }
 0x5e3   : > { %11547 = vrsqrt.f32 %v1163_v61 }
 0x5e4   : > { %11549 = vrsqrt.f32 %v1162_v62 }
 0x5ed   : > { %v11548_v63 = vpop.eup %11547 }
 0x5ee   : > { %v11550_v30 = vpop.eup %11549  ;;  %v1167_v31 = vmul.f32 %v11548_v63, %v1151_v38  ;;  %v10967_v38 = vpack.c.bf16 %v1273_v42, %v1272_v41  ;;  %v1557_v41 = vld [vmem:[%s11920_s3 + $0x8] sm:$0xff] }
 0x5ef   : > { %v1166_v33 = vmul.f32 %v11550_v30, %v1150_v40  ;;  %v1266_v40 = vld [vmem:[%s11905_s23] sm:$0xff] }
 0x5f0   : > { %v1171_v34 = vmul.f32 0.01, %v1167_v31  ;;  %vm1169_vm9 = vcmp.ge.f32.partialorder %v1167_v31, 0.0  ;;  %v10971_v44 = vpack.c.bf16 %v1267_v43, %v1266_v40  ;;  %v1460_v30 = vld [vmem:[%s11910_s27] sm:$0xff] }
 0x5f1   : > { %vm1168_vm8 = vcmp.ge.f32.partialorder %v1166_v33, 0.0  ;;  %v1170_v35 = vmul.f32 0.01, %v1166_v33 }
 0x5f2   : > { %v1173_v39 = vsel %vm1169_vm9, %v1167_v31, %v1171_v34  ;;  %v1461_v31 = vld [vmem:[%s11910_s27 + $0x8] sm:$0xff] }
 0x5f3   : > { %v1172_v37 = vsel %vm1168_vm8, %v1166_v33, %v1170_v35  ;;  %v1462_v33 = vld [vmem:[%s11910_s27 + $0x10] sm:$0xff]  ;;  %v10979_v34 = vpack.c.bf16 %v1461_v31, %v1460_v30  ;;  %v1463_v35 = vld [vmem:[%s11910_s27 + $0x18] sm:$0xff] }
 0x5f4   : > { %9876 = vmatprep.mubr.msk.f32.mxu0 %vm390_vm3, %v1172_v37  ;;  %v10983_v37 = vpack.c.bf16 %v1463_v35, %v1462_v33 }
 0x5f5   : > { %9877 = vmatmul.mubr.msk.f32.vlgmr.msra.gmra.mrb[20].mxu0 %vm390_vm3, %v1173_v39  ;;  %10980 = vmatprep.subr.bf16.mxu1 %v10979_v34  ;;  %v1556_v39 = vld [vmem:[%s11920_s3] sm:$0xff] }
 0x5f6   : > { %10966 = vmatpush3.bf16.msra.mxu0 %v10963_v55  ;;  %10982 = vmatpush3.bf16.msra.mxu1 %v10979_v34  ;;  %v10987_v42 = vpack.c.bf16 %v1557_v41, %v1556_v39 }
 0x5f7   : > { %10968 = vmatprep.subr.bf16.mxu0 %v10967_v38  ;;  %10984 = vmatprep.subr.bf16.mxu1 %v10983_v37 }
 0x5fa   : > { %10970 = vmatpush3.bf16.msra.mxu0 %v10967_v38  ;;  %10986 = vmatpush3.bf16.msra.mxu1 %v10983_v37  ;;  %v9002_v37 = vld [vmem:[%s11925_s15] ss:$0 sm:$0xff] }
 0x5fb   : > { %10972 = vmatprep.subr.bf16.mxu0 %v10971_v44  ;;  %10988 = vmatprep.subr.bf16.mxu1 %v10987_v42 }
 0x6c8   : > { %v9878_v46 = vpop.f32.mrb[20].mxu0 }
 0x6c9   : > { %v1257_v50 = vpop.f32.mrb[21].mxu0  ;;  %v1263_v52 = vadd.f32 %v9878_v46, %v8992_v45 }
 0x6ca   : > { %v1258_v51 = vadd.f32 %v8992_v45, %v1257_v50 }
 0x6cc   : > { %9887 = vmatprep.mubr.msk.f32.mxu0 %vm390_vm3, %v1258_v51 }
 0x6cd   : > { %9888 = vmatmul.mubr.msk.f32.vlgmr.msra.gmra.mrb[22].mxu0 %vm390_vm3, %v1263_v52 }
 0x6ce   : > { %10974 = vmatpush3.bf16.msra.mxu0 %v10971_v44  ;;  %9898 = vmatprep.mubr.msk.f32.mxu0 %vm390_vm3, %v11713_v26 }
 0x6cf   : > { %10976 = vmatprep.subr.bf16.mxu0 %v10975_v53 }
 0x6d2   : > { %10978 = vmatpush3.bf16.msra.mxu0 %v10975_v53  ;;  %v1558_v53 = vld [vmem:[%s11920_s3 + $0x10] sm:$0xff] }
 0x6d3   : > { %10995 = vmatprep.subr.bf16.mxu0 %v11770_v32 }
 0x6d5   : > { %9899 = vmatmul.mubr.msk.f32.vlgmr.msra.gmra.mrb[22].mxu0 %vm390_vm3, %v11709_v25 }
 0x6d6   : > { %9927 = vmatprep.mubr.msk.f32.mxu0 %vm11771_vm0, %v11772_v36 }
 0x7a8   : > { %v9900_v55 = vpop.f32.mrb[22].mxu0 }
 0x7a9   : > { %v1437_v56 = vadd.f32 %v9900_v55, %v11850_v13  ;;  %v1427_v49 = vpop.f32.mrb[23].mxu0  ;;  %v1559_v55 = vld [vmem:[%s11920_s3 + $0x18] sm:$0xff] }
 0x7aa   : > { %v1436_v54 = vadd.f32 %v1427_v49, %v11848_v12 }
 0x7ab   : > { %v1439_v60 = vmul.f32 %v1437_v56, %v1437_v56 }
 0x7ac   : > { %v1438_v61 = vmul.f32 %v1436_v54, %v1436_v54 }
 0x7ad   : > { %v1443_v62 = vsel %vm390_vm3, %v1439_v60, 0.0 }
 0x7ae   : > { %1444 = vadd.xlane.f32.xlu0 %v1443_v62  ;;  %v1440_v63 = vsel %vm390_vm3, %v1438_v61, 0.0  ;;  %v10991_v61 = vpack.c.bf16 %v1559_v55, %v1558_v53 }
 0x7af   : > { %1441 = vadd.xlane.f32.xlu1 %v1440_v63  ;;  %v1552_v63 = vmul.f32 0.5, %v11713_v26 }
 0x83b   : > { %v1445_v38 = vpop.xlane.xlu0 %1444 }
 0x83c   : > { %v1447_v40 = vmul.f32 0.03125, %v1445_v38  ;;  %v1442_v43 = vpop.xlane.xlu1 %1441 }
 0x83d   : > { %v1446_v44 = vmul.f32 0.03125, %v1442_v43  ;;  %v1884_v43 = vld [vmem:[%s11930_s17 + $0x8] sm:$0xff] }
 0x83e   : > { %v1449_v45 = vadd.f32 1e-06, %v1447_v40 }
 0x83f   : > { %v1448_v46 = vadd.f32 1e-06, %v1446_v44 }
 0x840   : > { %11551 = vrsqrt.f32 %v1449_v45  ;;  %v1885_v45 = vld [vmem:[%s11930_s17 + $0x10] sm:$0xff] }
 0x841   : > { %11553 = vrsqrt.f32 %v1448_v46  ;;  %v1886_v46 = vld [vmem:[%s11930_s17 + $0x18] sm:$0xff] }
 0x84a   : > { %v11552_v47 = vpop.eup %11551 }
 0x84b   : > { %v11554_v48 = vpop.eup %11553  ;;  %v1453_v50 = vmul.f32 %v11552_v47, %v1437_v56  ;;  %v8999_v56 = vld [vmem:[%s11915_s2] ss:$0 sm:$0xff]  ;;  %v1889_v47 = vld [vmem:[%s11930_s17 + $0x30] sm:$0xff] }
 0x84c   : > { %v1452_v51 = vmul.f32 %v11554_v48, %v1436_v54  ;;  %v1553_v54 = vmul.f32 0.5, %v11709_v25  ;;  %v1890_v48 = vld [vmem:[%s11930_s17 + $0x38] sm:$0xff] }
 0x84d   : > { %v1457_v52 = vmul.f32 0.01, %v1453_v50  ;;  %vm1455_vm11 = vcmp.ge.f32.partialorder %v1453_v50, 0.0 }
 0x84e   : > { %vm1454_vm10 = vcmp.ge.f32.partialorder %v1452_v51, 0.0  ;;  %v1456_v49 = vmul.f32 0.01, %v1452_v51 }
 0x84f   : > { %v1459_v62 = vsel %vm1455_vm11, %v1453_v50, %v1457_v52  ;;  %v11014_v50 = vpack.c.bf16 %v1886_v46, %v1885_v45  ;;  %v2144_v45 = vld [vmem:[%s13432_s24 + $0x20] sm:$0xff]  ;;  %v2145_v46 = vld [vmem:[%s13432_s24 + $0x28] sm:$0xff] }
 0x850   : > { %v1458_v60 = vsel %vm1454_vm10, %v1452_v51, %v1456_v49  ;;  %v11008_v51 = vpack.c.bf16 %v1890_v48, %v1889_v47  ;;  %v11023_v47 = vpack.c.bf16 %v2145_v46, %v2144_v45 }
 0x851   : > { %9909 = vmatprep.mubr.msk.f32.mxu1 %vm390_vm3, %v1458_v60 }
 0x852   : > { %9910 = vmatmul.mubr.msk.f32.vlgmr.msra.gmra.mrb[22].mxu1 %vm390_vm3, %v1459_v62 }
 0x853   : > { %10990 = vmatpush3.bf16.msra.mxu1 %v10987_v42  ;;  %9920 = vmatprep.mubr.msk.f32.mxu1 %vm390_vm3, %v1458_v60 }
 0x854   : > { %10992 = vmatprep.subr.bf16.mxu1 %v10991_v61 }
 0x857   : > { %10994 = vmatpush3.bf16.msra.mxu1 %v10991_v61 }
 0x858   : > { %10998 = vmatprep.subr.bf16.mxu1 %v11770_v32 }
 0x85a   : > { %9921 = vmatmul.mubr.msk.f32.vlgmr.msra.gmra.mrb[24].mxu1 %vm390_vm3, %v1459_v62 }
 0x85b   : > { %11000 = vmatpush3.bf16.msra.mxu1 %v12149_v59  ;;  %9942 = vmatprep.mubr.msk.f32.mxu1 %vm11771_vm0, %v11772_v36 }
 0x85c   : > { %9940 = vmatprep.subr.mxu1 %v11772_v36 }
 0x85f   : > { %9941 = vmatpush3.msra.mxu1 %v11717_v27 }
 0x860   : > { %9943 = vmatmul.mubr.msk.f32.vlgmr.msra.gmra.mrb[26].mxu1 %vm816_vm7, %v11830_v8  ;;  %11004 = vmatprep.subr.bf16.mxu1 %v11770_v32 }
 0x861   : > { %9962 = vmatprep.mubr.msk.f32.mxu1 %vm11771_vm0, %v11772_v36 }
 0x925   : > { %v9911_v59 = vpop.f32.mrb[22].mxu1 }
 0x926   : > { %v1549_v30 = vadd.f32 %v9911_v59, %v8999_v56  ;;  %v1543_v31 = vpop.f32.mrb[23].mxu1 }
 0x927   : > { %v1544_v33 = vadd.f32 %v8999_v56, %v1543_v31  ;;  %v11773_v31 = vmov 0  }
 0x928   : > { %v12239_v25 = vadd.f32 %v1553_v54, %v1549_v30   ;;  %11527 = vset.pattern.permute.xlu1 %v11773_v31  ;;  %11528 = vset.pattern.permute.xlu0 %v11773_v31  ;;  %v2146_v31 = vld [vmem:[%s13432_s24 + $0x30] sm:$0xff] }
 0x929   : > { %v12241_v26 = vadd.f32 %v1552_v63, %v1544_v33  }
 0x92a   : > { %v13429_v34 = vmov %v12239_v25  ;;  %v1887_v25 = vld [vmem:[%s11930_s17 + $0x20] sm:$0xff] }
 0x92b   : > { %v13430_v35 = vmov %v12241_v26  ;;  %v1888_v26 = vld [vmem:[%s11930_s17 + $0x28] sm:$0xff] }
 0x92d   : > { %v9922_v39 = vpop.f32.mrb[24].mxu1 }
 0x92e   : > { %v1639_v41 = vadd.f32 %v9922_v39, %v9002_v37  ;;  %v1633_v42 = vpop.f32.mrb[25].mxu1 }
 0x92f   : > { %v1634_v38 = vadd.f32 %v9002_v37, %v1633_v42  ;;  %v9012_v37 = vld [vmem:[%s11935_s28] ss:$0 sm:$0xff] }
 0x931   : > { %v10996_v40 = vpack.c.bf16 %v1639_v41, %v1634_v38 }
 0x933   : > { %10997 = vmatpush3.bf16.msra.mxu0 %v10996_v40  ;;  %v1809_v52 = vpop.f32.mrb[26].mxu1 }
 0x934   : > { %11001 = vmatprep.subr.bf16.mxu0 %v11770_v32  ;;  %v9944_v53 = vpop.f32.mrb[27].mxu1 }
 0x935   : > { %v2140_v53 = vld [vmem:[%s13432_s24] sm:$0xff] }
 0x936   : > { %9928 = vmatmul.mubr.msk.f32.vlgmr.msra.gmra.mrb[24].mxu0 %vm198_vm2, %v11808_v0 }
 0x937   : > { %11003 = vmatpush3.bf16.msra.mxu0 %v12164_v57  ;;  %9930 = vmatprep.mubr.msk.f32.mxu0 %vm11771_vm0, %v11772_v36  ;;  %v1883_v57 = vld [vmem:[%s11930_s17] sm:$0xff] }
 0x938   : > { %9949 = vmatprep.subr.mxu0 %v11772_v36  ;;  %v11011_v44 = vpack.c.bf16 %v1884_v43, %v1883_v57  ;;  %v2058_v57 = vld [vmem:[%s13431_s0 + $0x10] sm:$0xff]  ;;  %v2059_v43 = vld [vmem:[%s13431_s0 + $0x18] sm:$0xff] }
 0x93a   : > { %9931 = vmatmul.mubr.msk.f32.gmra.mrb[26].mxu0 %vm198_vm2, %v11810_v1 }
 0x93b   : > { %9950 = vmatpush3.msra.mxu0 %v12167_v58  ;;  %9933 = vmatprep.mubr.msk.f32.mxu0 %vm11771_vm0, %v11772_v36  ;;  %v11005_v58 = vpack.c.bf16 %v1888_v26, %v1887_v25  ;;  %v2056_v25 = vld [vmem:[%s13431_s0] sm:$0xff]  ;;  %v2057_v26 = vld [vmem:[%s13431_s0 + $0x8] sm:$0xff]  ;;  %s13455_s0 = sld [smem:[#allocation8_spill]] (%p188_p0) }
 0x93c   : > { %11010 = vmatprep.subr.bf16.mxu0 %v11770_v32 }
 0x93d   : > { %11006 = vmatpush3.bf16.msra.mxu1 %v11005_v58  ;;  %v11017_v58 = vpack.c.bf16 %v2057_v26, %v2056_v25 }
 0x93e   : > { %9934 = vmatmul.mubr.msk.f32.gmra.mrb[28].mxu0 %vm198_vm2, %v11812_v2  ;;  %11007 = vmatprep.subr.bf16.mxu1 %v11770_v32 }
 0x93f   : > { %9951 = vmatprep.mubr.msk.f32.mxu0 %vm11771_vm0, %v11772_v36 }
 0x941   : > { %11009 = vmatpush3.bf16.msra.mxu1 %v11008_v51 }
 0x942   : > { %9952 = vmatmul.mubr.msk.f32.vlgmr.msra.gmra.mrb[30].mxu0 %vm816_vm7, %v11830_v8  ;;  %11016 = vmatprep.subr.bf16.mxu1 %v11770_v32 }
 0x943   : > { %9973 = vmatprep.mubr.msk.f32.mxu0 %vm11771_vm0, %v11772_v36  ;;  %11012 = vmatpush3.bf16.msra.mxu0 %v11011_v44  ;;  %v11020_v44 = vpack.c.bf16 %v2059_v43, %v2058_v57 }
 0x944   : > { %11013 = vmatprep.subr.bf16.mxu0 %v11770_v32 }
 0x947   : > { %11015 = vmatpush3.bf16.msra.mxu0 %v11014_v50 }
 0x948   : > { %11022 = vmatprep.subr.bf16.mxu0 %v11770_v32 }
 0x94a   : > { %9974 = vmatmul.mubr.msk.f32.vlgmr.msra.gmra.mrb[32].mxu0 %vm390_vm3, %v1809_v52 }
 0x94b   : > { %9995 = vmatprep.mubr.msk.f32.mxu0 %vm11771_vm0, %v11772_v36  ;;  %11024 = vmatpush3.bf16.msra.mxu0 %v11023_v47  ;;  %v2306_v47 = vld [vmem:[%s13434_s25] sm:$0xff] }
 0x94c   : > { %11025 = vmatprep.subr.bf16.mxu0 %v11770_v32 }
 0xa09   : > { %v12280_v55 = vpop.f32.mrb[24].mxu0 }
 0xa0a   : > { %v9929_v49 = vpop.f32.mrb[25].mxu0 }
 0xa0b   : > { %v2141_v49 = vld [vmem:[%s13432_s24 + $0x8] sm:$0xff] }
 0xa0d   : > { %v12282_v60 = vpop.f32.mrb[26].mxu0 }
 0xa0e   : > { %v9932_v61 = vpop.f32.mrb[27].mxu0 }
 0xa11   : > { %v12284_v62 = vpop.f32.mrb[28].mxu0 }
 0xa12   : > { %v9935_v56 = vpop.f32.mrb[29].mxu0 }
 0xa15   : > { %v1879_v54 = vpop.f32.mrb[30].mxu0 }
 0xa16   : > { %9963 = vmatmul.mubr.msk.f32.vlgmr.msra.gmra.mrb[28].mxu1 %vm390_vm3, %v1879_v54  ;;  %v9953_v59 = vpop.f32.mrb[31].mxu0  ;;  %v11029_v54 = vpack.c.bf16 %v2141_v49, %v2140_v53  ;;  %v2308_v53 = vld [vmem:[%s13434_s25 + $0x10] sm:$0xff]  ;;  %v2309_v49 = vld [vmem:[%s13434_s25 + $0x18] sm:$0xff] }
 0xa17   : > { %9984 = vmatprep.mubr.msk.f32.mxu1 %vm11771_vm0, %v11772_v36  ;;  %11018 = vmatpush3.bf16.msra.mxu1 %v11017_v58 }
 0xa18   : > { %11019 = vmatprep.subr.bf16.mxu1 %v11770_v32 }
 0xa1b   : > { %11021 = vmatpush3.bf16.msra.mxu1 %v11020_v44 }
 0xa1c   : > { %11028 = vmatprep.subr.bf16.mxu1 %v11770_v32 }
 0xa1d   : > { %v2033_v63 = vpop.f32.mrb[32].mxu0 }
 0xa1e   : > { %v9975_v30 = vpop.f32.mrb[33].mxu0 }
 0xa1f   : > { %v2143_v30 = vld [vmem:[%s13432_s24 + $0x18] sm:$0xff] }
 0xae9   : > { %v1960_v33 = vpop.f32.mrb[28].mxu1 }
 0xaea   : > { %v2034_v39 = vadd.f32 %v2033_v63, %v1960_v33  ;;  %v9964_v41 = vpop.f32.mrb[29].mxu1  ;;  %v2142_v63 = vld [vmem:[%s13432_s24 + $0x10] sm:$0xff]  ;;  %v2147_v33 = vld [vmem:[%s13432_s24 + $0x38] sm:$0xff]  ;;  %s13456_s24 = sld [smem:[#allocation10_spill]] (%p188_p0) }
 0xaeb   : > { %v9013_v41 = vld [vmem:[%s13433_s21] ss:$0 sm:$0xff]  ;;  %s13457_s21 = sld [smem:[#allocation9_spill]] (%p188_p0) }
 0xaec   : > { %v2044_v42 = vadd.f32 %v9012_v37, %v2034_v39  ;;  %v11032_v37 = vpack.c.bf16 %v2143_v30, %v2142_v63  ;;  %v11026_v39 = vpack.c.bf16 %v2147_v33, %v2146_v31 }
 0xaee   : > { %v2045_v38 = vmul.f32 %v2044_v42, %v2044_v42  ;;  %11027 = vmatpush3.bf16.msra.mxu0 %v11026_v39 }
 0xaef   : > { %11034 = vmatprep.subr.bf16.mxu0 %v11770_v32 }
 0xaf0   : > { %v2046_v40 = vsel %vm390_vm3, %v2045_v38, 0.0 }
 0xaf1   : > { %2047 = vadd.xlane.f32.xlu1 %v2046_v40 }
 0xb02   : > { %1724 = vperm.xlu1 %11527, %v11886_v21  }
 0xb06   : > { %1734 = vperm.xlu1 %11527, %v11890_v23  }
 0xb7e   : > { %v2048_v48 = vpop.xlane.xlu1 %2047 }
 0xb7f   : > { %v2049_v50 = vmul.f32 0.03125, %v2048_v48  ;;  %v2307_v48 = vld [vmem:[%s13434_s25 + $0x8] sm:$0xff]  ;;  %s13458_s25 = sld [smem:[#allocation11_spill]] (%p188_p0) }
 0xb81   : > { %v2050_v51 = vadd.f32 1e-06, %v2049_v50  ;;  %v2392_v50 = vld [vmem:[%s13435_s1] sm:$0xff] }
 0xb83   : > { %11555 = vrsqrt.f32 %v2050_v51  ;;  %v11035_v51 = vpack.c.bf16 %v2307_v48, %v2306_v47 }
 0xb8d   : > { %v11556_v52 = vpop.eup %11555 }
 0xb8e   : > { %v2052_v61 = vmul.f32 %v11556_v52, %v2044_v42  ;;  %v2393_v52 = vld [vmem:[%s13435_s1 + $0x8] sm:$0xff] }
 0xb90   : > { %vm2053_vm12 = vcmp.ge.f32.partialorder %v2052_v61, 0.0  ;;  %v2054_v56 = vmul.f32 0.01, %v2052_v61 }
 0xb92   : > { %v2055_v59 = vsel %vm2053_vm12, %v2052_v61, %v2054_v56  ;;  %v11041_v61 = vpack.c.bf16 %v2393_v52, %v2392_v50  ;;  %v2394_v56 = vld [vmem:[%s13435_s1 + $0x10] sm:$0xff] }
 0xb93   : > { %9985 = vmatmul.mubr.msk.f32.vlgmr.msra.gmra.mrb[30].mxu1 %vm390_vm3, %v2055_v59  ;;  %v11038_v59 = vpack.c.bf16 %v2309_v49, %v2308_v53  ;;  %v2554_v49 = vld [vmem:[%s13436_s29 + $0x8] sm:$0xff] }
 0xb94   : > { %11030 = vmatpush3.bf16.msra.mxu1 %v11029_v54  ;;  %10006 = vmatprep.mubr.msk.f32.mxu1 %vm11771_vm0, %v11772_v36  ;;  %v2395_v54 = vld [vmem:[%s13435_s1 + $0x18] sm:$0xff]  ;;  %s13459_s1 = sld [smem:[#allocation13_spill]] (%p188_p0) }
 0xb95   : > { %11031 = vmatprep.subr.bf16.mxu1 %v11770_v32  ;;  %v11044_v63 = vpack.c.bf16 %v2395_v54, %v2394_v56  ;;  %v2555_v56 = vld [vmem:[%s13436_s29 + $0x10] sm:$0xff]  ;;  %v2556_v54 = vld [vmem:[%s13436_s29 + $0x18] sm:$0xff] }
 0xb98   : > { %11033 = vmatpush3.bf16.msra.mxu1 %v11032_v37 }
 0xb99   : > { %11040 = vmatprep.subr.bf16.mxu1 %v11770_v32 }
 0xb9b   : > { %10007 = vmatmul.mubr.msk.f32.vlgmr.msra.gmra.mrb[32].mxu1 %vm390_vm3, %v11705_v24 }
 0xb9c   : > { %10028 = vmatprep.mubr.msk.f32.mxu1 %vm11771_vm0, %v11772_v36  ;;  %11042 = vmatpush3.bf16.msra.mxu1 %v11041_v61 }
 0xb9d   : > { %11043 = vmatprep.subr.bf16.mxu1 %v11770_v32 }
 0xba0   : > { %11045 = vmatpush3.bf16.msra.mxu1 %v11044_v63  ;;  %v2561_v63 = vld [vmem:[%s13436_s29 + $0x40] sm:$0xff] }
 0xba1   : > { %11046 = vmatprep.subr.bf16.mxu1 %v11770_v32 }
 0xc66   : > { %v2136_v42 = vpop.f32.mrb[30].mxu1 }
 0xc67   : > { %v2137_v38 = vadd.f32 %v9013_v41, %v2136_v42  ;;  %v9986_v40 = vpop.f32.mrb[31].mxu1 }
 0xc68   : > { %v2558_v40 = vld [vmem:[%s13436_s29 + $0x28] sm:$0xff] }
 0xc69   : > { %9996 = vmatmul.mubr.msk.f32.vlgmr.msra.gmra.mrb[34].mxu0 %vm390_vm3, %v2137_v38  ;;  %v2557_v38 = vld [vmem:[%s13436_s29 + $0x20] sm:$0xff] }
 0xc6a   : > { %10017 = vmatprep.mubr.msk.f32.mxu0 %vm11771_vm0, %v11772_v36  ;;  %11036 = vmatpush3.bf16.msra.mxu0 %v11035_v51 }
 0xc6b   : > { %11037 = vmatprep.subr.bf16.mxu0 %v11770_v32 }
 0xc6e   : > { %v2290_v25 = vpop.f32.mrb[32].mxu1  ;;  %11039 = vmatpush3.bf16.msra.mxu0 %v11038_v59  ;;  %v11056_v59 = vpack.c.bf16 %v2556_v54, %v2555_v56 }
 0xc6f   : > { %v10008_v26 = vpop.f32.mrb[33].mxu1  ;;  %10031 = vmatprep.subr.mxu0 %v11772_v36 }
 0xc70   : > { %v11047_v26 = vpack.c.bf16 %v2558_v40, %v2557_v38 }
 0xd3c   : > { %v2217_v57 = vpop.f32.mrb[34].mxu0 }
 0xd3d   : > { %v2291_v58 = vadd.f32 %v2290_v25, %v2217_v57  ;;  %v9997_v43 = vpop.f32.mrb[35].mxu0  ;;  %v2559_v25 = vld [vmem:[%s13436_s29 + $0x30] sm:$0xff]  ;;  %v2560_v57 = vld [vmem:[%s13436_s29 + $0x38] sm:$0xff] }
 0xd3e   : > { %v9017_v43 = vld [vmem:[%s13437_s7] ss:$0 sm:$0xff] }
 0xd3f   : > { %v2294_v44 = vadd.f32 %v2291_v58, %v11857_v14  ;;  %v11050_v58 = vpack.c.bf16 %v2560_v57, %v2559_v25  ;;  %v1725_v25 = vpop.permute.xlu1 %1724 }
 0xd41   : > { %v2295_v45 = vmul.f32 %v2294_v44, %v2294_v44 }
 0xd43   : > { %v2296_v46 = vsel %vm390_vm3, %v2295_v45, 0.0  ;;  %v2390_v45 = vmul.f32 0.5, %v11705_v24 }
 0xd44   : > { %2297 = vadd.xlane.f32.xlu0 %v2296_v46 }
 0xd5a   : > { %1729 = vperm.xlu0 %11528, %v11888_v22  }
 0xdd1   : > { %v2298_v30 = vpop.xlane.xlu0 %2297 }
 0xdd2   : > { %v2299_v31 = vmul.f32 0.03125, %v2298_v30  ;;  %v2562_v30 = vld [vmem:[%s13436_s29 + $0x48] sm:$0xff] }
 0xdd4   : > { %v2300_v33 = vadd.f32 1e-06, %v2299_v31  ;;  %v11059_v31 = vpack.c.bf16 %v2562_v30, %v2561_v63 }
 0xdd6   : > { %11557 = vrsqrt.f32 %v2300_v33  ;;  %v2563_v33 = vld [vmem:[%s13436_s29 + $0x50] sm:$0xff] }
 0xde0   : > { %v11558_v37 = vpop.eup %11557 }
 0xde1   : > { %v2302_v39 = vmul.f32 %v11558_v37, %v2294_v44  ;;  %v9019_v44 = vld [vmem:[%s13438_s11] ss:$0 sm:$0xff]  ;;  %v2564_v37 = vld [vmem:[%s13436_s29 + $0x58] sm:$0xff] }
 0xde3   : > { %vm2303_vm13 = vcmp.ge.f32.partialorder %v2302_v39, 0.0  ;;  %v2304_v41 = vmul.f32 0.01, %v2302_v39 }
 0xde5   : > { %v2305_v42 = vsel %vm2303_vm13, %v2302_v39, %v2304_v41 }
 0xde6   : > { %10018 = vmatmul.mubr.msk.f32.vlgmr.msra.gmra.mrb[36].mxu0 %vm390_vm3, %v2305_v42  ;;  %10029 = vmatmul.mubr.msk.f32.vlgmr.msra.gmra.mrb[34].mxu1 %vm390_vm3, %v2305_v42  ;;  %v11062_v42 = vpack.c.bf16 %v2564_v37, %v2563_v33 }
 0xde7   : > { %10033 = vmatprep.mubr.msk.f32.mxu0 %vm11771_vm0, %v11772_v36  ;;  %10050 = vmatprep.mubr.msk.f32.mxu1 %vm11771_vm0, %v11772_v36 }
 0xde8   : > { %11048 = vmatpush3.bf16.msra.mxu1 %v11047_v26 }
 0xde9   : > { %11049 = vmatprep.subr.bf16.mxu1 %v11770_v32 }
 0xdec   : > { %11051 = vmatpush3.bf16.msra.mxu1 %v11050_v58  ;;  %v1737_v58 = vmul.f32 %v1725_v25, %v12280_v55 }
 0xded   : > { %11058 = vmatprep.subr.bf16.mxu1 %v11770_v32 }
 0xeb9   : > { %v2386_v46 = vpop.f32.mrb[36].mxu0  ;;  %v2469_v47 = vpop.f32.mrb[34].mxu1 }
 0xeba   : > { %v2387_v48 = vadd.f32 %v9017_v43, %v2386_v46  ;;  %v2470_v50 = vadd.f32 %v9019_v44, %v2469_v47  ;;  %v10019_v51 = vpop.f32.mrb[37].mxu0  ;;  %v10030_v52 = vpop.f32.mrb[35].mxu1 }
 0xebb   : > { %v1730_v43 = vpop.permute.xlu0 %1729 }
 0xebc   : > { %v12352_v24 = vadd.f32 %v2390_v45, %v2387_v48   ;;  %10032 = vmatpush3.msra.mxu0 %v2470_v50  ;;  %v1738_v44 = vmul.f32 %v1730_v43, %v12282_v60  ;;  %v1735_v45 = vpop.permute.xlu1 %1734 }
 0xebd   : > { %10034 = vmatmul.mubr.msk.f32.vlgmr.msra.gmra.mrb[38].mxu0 %vm288_vm1, %v11821_v5  ;;  %11052 = vmatprep.subr.bf16.mxu0 %v11770_v32  ;;  %v1739_v46 = vmul.f32 %v1735_v45, %v12284_v62 }
 0xebe   : > { %v13439_v53 = vmov %v12352_v24  ;;  %10036 = vmatprep.mubr.msk.f32.mxu0 %vm11771_vm0, %v11772_v36  ;;  %v2553_v24 = vld [vmem:[%s13436_s29] sm:$0xff]  ;;  %s13460_s29 = sld [smem:[#allocation12_spill]] (%p188_p0) }
 0xebf   : > { %v11053_v61 = vpack.c.bf16 %v2554_v49, %v2553_v24 }
 0xec1   : > { %10037 = vmatmul.mubr.msk.f32.gmra.mrb[40].mxu0 %vm288_vm1, %v11826_v6 }
 0xec2   : > { %10039 = vmatprep.mubr.msk.f32.mxu0 %vm11771_vm0, %v11772_v36  ;;  %11054 = vmatpush3.bf16.msra.mxu0 %v11053_v61 }
 0xec3   : > { %11055 = vmatprep.subr.bf16.mxu0 %v11770_v32 }
 0xec5   : > { %10040 = vmatmul.mubr.msk.f32.gmra.mrb[42].mxu0 %vm288_vm1, %v11828_v7 }
 0xec6   : > { %10067 = vmatprep.mubr.msk.f32.mxu0 %vm11771_vm0, %v11772_v36  ;;  %11057 = vmatpush3.bf16.msra.mxu0 %v11056_v59 }
 0xec7   : > { %11064 = vmatprep.subr.bf16.mxu0 %v11770_v32 }
 0xec9   : > { %10068 = vmatmul.mubr.msk.f32.vlgmr.msra.gmra.mrb[44].mxu0 %vm390_vm3, %v11725_v29 }
 0xeca   : > { %10070 = vmatprep.mubr.msk.f32.mxu0 %vm11771_vm0, %v11772_v36 }
 0xecd   : > { %10071 = vmatmul.mubr.msk.f32.gmra.mrb[46].mxu0 %vm390_vm3, %v11721_v28 }
 0xece   : > { %10073 = vmatprep.mubr.msk.f32.mxu0 %vm11771_vm0, %v11772_v36 }
 0xed1   : > { %10074 = vmatmul.mubr.msk.f32.gmra.mrb[48].mxu0 %vm390_vm3, %v11717_v27 }
 0xed2   : > { %10101 = vmatprep.mubr.msk.f32.mxu0 %vm11771_vm0, %v11772_v36 }
 0xf90   : > { %v2539_v39 = vpop.f32.mrb[38].mxu0 }
 0xf91   : > { %10051 = vmatmul.mubr.msk.f32.vlgmr.msra.gmra.mrb[36].mxu1 %vm390_vm3, %v2539_v39  ;;  %v10035_v41 = vpop.f32.mrb[39].mxu0 }
 0xf92   : > { %10053 = vmatprep.mubr.msk.f32.mxu1 %vm11771_vm0, %v11772_v36  ;;  %11060 = vmatpush3.bf16.msra.mxu1 %v11059_v31 }
 0xf93   : > { %11061 = vmatprep.subr.bf16.mxu1 %v11770_v32 }
 0xf94   : > { %v2544_v38 = vpop.f32.mrb[40].mxu0 }
 0xf95   : > { %10054 = vmatmul.mubr.msk.f32.gmra.mrb[38].mxu1 %vm390_vm3, %v2544_v38  ;;  %v10038_v40 = vpop.f32.mrb[41].mxu0 }
 0xf96   : > { %10056 = vmatprep.mubr.msk.f32.mxu1 %vm11771_vm0, %v11772_v36  ;;  %11063 = vmatpush3.bf16.msra.mxu1 %v11062_v42 }
 0xf98   : > { %v2549_v26 = vpop.f32.mrb[42].mxu0 }
 0xf99   : > { %10057 = vmatmul.mubr.msk.f32.gmra.mrb[40].mxu1 %vm390_vm3, %v2549_v26  ;;  %v10041_v57 = vpop.f32.mrb[43].mxu0 }
 0xf9a   : > { %10084 = vmatprep.mubr.msk.f32.mxu1 %vm11771_vm0, %v11772_v36 }
 0xf9c   : > { %v2720_v47 = vpop.f32.mrb[44].mxu0 }
 0xf9d   : > { %10085 = vmatmul.mubr.msk.f32.vlgmr.msra.gmra.mrb[42].mxu1 %vm390_vm3, %v1737_v58  ;;  %v10069_v55 = vpop.f32.mrb[45].mxu0 }
 0xf9e   : > { %10087 = vmatprep.mubr.msk.f32.mxu1 %vm11771_vm0, %v11772_v36  ;;  %v2862_v55 = vld [vmem:[%s13440_s12] sm:$0xff] }
 0xfa0   : > { %v2725_v48 = vpop.f32.mrb[46].mxu0 }
 0xfa1   : > { %10088 = vmatmul.mubr.msk.f32.gmra.mrb[44].mxu1 %vm390_vm3, %v1738_v44  ;;  %v10072_v50 = vpop.f32.mrb[47].mxu0 }
 0xfa2   : > { %10090 = vmatprep.mubr.msk.f32.mxu1 %vm11771_vm0, %v11772_v36 }
 0xfa4   : > { %v2730_v51 = vpop.f32.mrb[48].mxu0 }
 0xfa5   : > { %10091 = vmatmul.mubr.msk.f32.gmra.mrb[46].mxu1 %vm390_vm3, %v1739_v46  ;;  %v10075_v52 = vpop.f32.mrb[49].mxu0 }
 0xfa6   : > { %v2865_v52 = vld [vmem:[%s13440_s12 + $0x18] sm:$0xff] }
0x1064   : > { %v2640_v24 = vpop.f32.mrb[36].mxu1 }
0x1065   : > { %v10052_v49 = vpop.f32.mrb[37].mxu1  ;;  %v2721_v61 = vadd.f32 %v2720_v47, %v2640_v24 }
0x1068   : > { %v2645_v60 = vpop.f32.mrb[38].mxu1 }
0x1069   : > { %v10055_v56 = vpop.f32.mrb[39].mxu1  ;;  %v2726_v54 = vadd.f32 %v2725_v48, %v2645_v60  ;;  %v2863_v48 = vld [vmem:[%s13440_s12 + $0x8] sm:$0xff] }
0x106a   : > { %v11065_v50 = vpack.c.bf16 %v2863_v48, %v2862_v55 }
0x106c   : > { %v2650_v59 = vpop.f32.mrb[40].mxu1  ;;  %11066 = vmatpush3.bf16.msra.mxu0 %v11065_v50 }
0x106d   : > { %v10058_v63 = vpop.f32.mrb[41].mxu1  ;;  %v2731_v30 = vadd.f32 %v2730_v51, %v2650_v59  ;;  %11067 = vmatprep.subr.bf16.mxu0 %v11770_v32  ;;  %v2864_v51 = vld [vmem:[%s13440_s12 + $0x10] sm:$0xff] }
0x106e   : > { %v11068_v24 = vpack.c.bf16 %v2865_v52, %v2864_v51  ;;  %v2964_v52 = vmul.f32 0.5, %v11717_v27 }
0x1070   : > { %v2809_v31 = vpop.f32.mrb[42].mxu1  ;;  %11069 = vmatpush3.bf16.msra.mxu0 %v11068_v24 }
0x1071   : > { %v2823_v33 = vadd.f32 %v2809_v31, %v2721_v61  ;;  %v10086_v62 = vpop.f32.mrb[43].mxu1 }
0x1073   : > { %v2826_v37 = vadd.f32 %v2823_v33, %v11864_v15 }
0x1074   : > { %v2814_v39 = vpop.f32.mrb[44].mxu1 }
0x1075   : > { %v2824_v41 = vadd.f32 %v2814_v39, %v2726_v54  ;;  %v10089_v42 = vpop.f32.mrb[45].mxu1  ;;  %v2829_v38 = vmul.f32 %v2826_v37, %v2826_v37 }
0x1077   : > { %v2827_v40 = vadd.f32 %v2824_v41, %v11866_v16  ;;  %v2832_v25 = vsel %vm390_vm3, %v2829_v38, 0.0 }
0x1078   : > { %v2819_v26 = vpop.f32.mrb[46].mxu1  ;;  %2833 = vadd.xlane.f32.xlu1 %v2832_v25 }
0x1079   : > { %v2825_v57 = vadd.f32 %v2819_v26, %v2731_v30  ;;  %v10092_v58 = vpop.f32.mrb[47].mxu1  ;;  %v2830_v43 = vmul.f32 %v2827_v40, %v2827_v40 }
0x107b   : > { %v2828_v44 = vadd.f32 %v2825_v57, %v11868_v17  ;;  %v2835_v45 = vsel %vm390_vm3, %v2830_v43, 0.0  ;;  %v2962_v43 = vmul.f32 0.5, %v11725_v29 }
0x107c   : > { %2836 = vadd.xlane.f32.xlu0 %v2835_v45 }
0x107d   : > { %v2831_v46 = vmul.f32 %v2828_v44, %v2828_v44 }
0x107f   : > { %v2838_v47 = vsel %vm390_vm3, %v2831_v46, 0.0 }
0x1080   : > { %2839 = vadd.xlane.f32.xlu1 %v2838_v47 }
0x1105   : > { %v2834_v49 = vpop.xlane.xlu1 %2833 }
0x1106   : > { %v2841_v61 = vmul.f32 0.03125, %v2834_v49 }
0x1108   : > { %v2844_v60 = vadd.f32 1e-06, %v2841_v61 }
0x1109   : > { %v2837_v56 = vpop.xlane.xlu0 %2836 }
0x110a   : > { %11559 = vrsqrt.f32 %v2844_v60  ;;  %v2842_v54 = vmul.f32 0.03125, %v2837_v56  ;;  %v3152_v56 = vld [vmem:[%s11846_s13 + $0x20] sm:$0xff] (%p188_p0) }
0x110c   : > { %v2845_v59 = vadd.f32 1e-06, %v2842_v54  ;;  %v3153_v54 = vld [vmem:[%s11846_s13 + $0x28] sm:$0xff] (%p188_p0) }
0x110d   : > { %v2840_v63 = vpop.xlane.xlu1 %2839 }
0x110e   : > { %11561 = vrsqrt.f32 %v2845_v59  ;;  %v2843_v30 = vmul.f32 0.03125, %v2840_v63  ;;  %v3148_v59 = vld [vmem:[%s11846_s13] sm:$0xff] (%p188_p0)  ;;  %v11774_v63 = vmov (%p188_p0), 0.0|0.0  }
0x110f   :  { %11070 = vmatprep.subr.bf16.mxu0 (%p188_p0), %v11774_v63 }
0x1110   : > { %v2846_v31 = vadd.f32 1e-06, %v2843_v30  ;;  %v11776_v30 = vmov (%p188_p0), 0.0  }
0x1111   :  { %10123 = vmatprep.subr.mxu1 (%p188_p0), %v11776_v30 }
0x1112   : > { %11563 = vrsqrt.f32 %v2846_v31  ;;  %10124 = vmatpush3.msra.mxu1 (%p188_p0), %v13439_v53 }
0x1113   :  { %11073 = vmatprep.subr.bf16.mxu1 (%p188_p0), %v11774_v63 }
0x1114   : > { %v11560_v33 = vpop.eup %11559 }
0x1115   : > { %v2850_v62 = vmul.f32 %v11560_v33, %v2826_v37  ;;  %v3154_v33 = vld [vmem:[%s11846_s13 + $0x30] sm:$0xff] (%p188_p0) }
0x1117   : > { %vm2853_vm14 = vcmp.ge.f32.partialorder %v2850_v62, 0.0  ;;  %v2856_v32 = vmul.f32 0.01, %v2850_v62 }
0x1118   : > { %v11562_v39 = vpop.eup %11561 }
0x1119   : > { %v2859_v41 = vsel %vm2853_vm14, %v2850_v62, %v2856_v32  ;;  %v2851_v42 = vmul.f32 %v11562_v39, %v2827_v40  ;;  %v9033_v40 = vld [vmem:[%s13441_s16] ss:$0 sm:$0xff]  ;;  %v3155_v62 = vld [vmem:[%s11846_s13 + $0x38] sm:$0xff] (%p188_p0)  ;;  %v3150_v32 = vld [vmem:[%s11846_s13 + $0x10] sm:$0xff] (%p188_p0) }
0x111a   : > { %10102 = vmatmul.mubr.msk.f32.vlgmr.msra.gmra.mrb[50].mxu0 %vm390_vm3, %v2859_v41  ;;  %v3151_v39 = vld [vmem:[%s11846_s13 + $0x18] sm:$0xff] (%p188_p0)  ;;  %v11077_v41 = vpack.c.bf16 (%p188_p0), %v3155_v62, %v3154_v33 }
0x111b   : > { %10104 = vmatprep.mubr.msk.f32.mxu0 %vm11771_vm0, %v11772_v36  ;;  %vm2854_vm15 = vcmp.ge.f32.partialorder %v2851_v42, 0.0  ;;  %v2857_v38 = vmul.f32 0.01, %v2851_v42 }
0x111c   : > { %v11564_v25 = vpop.eup %11563 }
0x111d   : > { %v2860_v26 = vsel %vm2854_vm15, %v2851_v42, %v2857_v38  ;;  %v2852_v57 = vmul.f32 %v11564_v25, %v2828_v44  ;;  %v2963_v44 = vmul.f32 0.5, %v11721_v28  ;;  %v13446_v25 = vmov %v13429_v34  ;;  %v3156_v38 = vld [vmem:[%s11846_s13 + $0x40] sm:$0xff] (%p188_p0) }
0x111e   : > { %10105 = vmatmul.mubr.msk.f32.gmra.mrb[52].mxu0 %vm390_vm3, %v2860_v26  ;;  %v13447_v26 = vmov %v13430_v35  ;;  %v11083_v42 = vpack.c.bf16 (%p188_p0), %v3151_v39, %v3150_v32  ;;  %v3157_v25 = vld [vmem:[%s11846_s13 + $0x48] sm:$0xff] (%p188_p0) }
0x111f   : > { %10107 = vmatprep.mubr.msk.f32.mxu0 %vm11771_vm0, %v11772_v36  ;;  %vm2855_vm4 = vcmp.ge.f32.partialorder %v2852_v57, 0.0  ;;  %v2858_v37 = vmul.f32 0.01, %v2852_v57  ;;  %vm11775_vm0 = vmmov (%p188_p0), 0   ;;  %v11086_v26 = vpack.c.bf16 (%p188_p0), %v3157_v25, %v3156_v38 }
0x1120   :  { %10125 = vmatprep.mubr.msk.f32.mxu1 (%p188_p0), %vm11775_vm0, %v11776_v30 }
0x1121   : > { %v2861_v58 = vsel %vm2855_vm4, %v2852_v57, %v2858_v37  ;;  %10126 = vmatmul.mubr.msk.f32.vlgmr.msra.gmra.mrb[0].mxu1 (%p188_p0), %vm288_vm1, %v11821_v5  ;;  %v3158_v57 = vld [vmem:[%s11846_s13 + $0x50] sm:$0xff] (%p188_p0)  ;;  %v3159_v37 = vld [vmem:[%s11846_s13 + $0x58] sm:$0xff] (%p188_p0) }
0x1122   : > { %10108 = vmatmul.mubr.msk.f32.gmra.mrb[54].mxu0 %vm390_vm3, %v2861_v58  ;;  %10128 = vmatprep.mubr.msk.f32.mxu1 (%p188_p0), %vm11775_vm0, %v11776_v30 }
0x1123   :  { %10114 = vmatprep.mubr.msk.f32.mxu0 (%p188_p0), %vm11775_vm0, %v11776_v30 }
0x1125   :  { %10129 = vmatmul.mubr.msk.f32.gmra.mrb[2].mxu1 (%p188_p0), %vm288_vm1, %v11826_v6 }
0x1126   :  { %10131 = vmatprep.mubr.msk.f32.mxu1 (%p188_p0), %vm11775_vm0, %v11776_v30 }
0x1129   :  { %10132 = vmatmul.mubr.msk.f32.gmra.mrb[4].mxu1 (%p188_p0), %vm288_vm1, %v11828_v7 }
0x112a   :  { %10142 = vmatprep.mubr.msk.f32.mxu1 (%p188_p0), %vm11775_vm0, %v11776_v30 }
0x11ed   : > { %v2948_v45 = vpop.f32.mrb[50].mxu0 }
0x11ee   : > { %v2949_v46 = vadd.f32 %v9033_v40, %v2948_v45  ;;  %v10103_v47 = vpop.f32.mrb[51].mxu0 }
0x11f0   : > { %v12429_v29 = vadd.f32 %v2962_v43, %v2949_v46   ;;  %v11089_v46 = vpack.c.bf16 (%p188_p0), %v3159_v37, %v3158_v57 }
0x11f1   : > { %v2953_v48 = vpop.f32.mrb[52].mxu0 }
0x11f2   : > { %v13442_v55 = vmov %v12429_v29  ;;  %v2954_v50 = vadd.f32 %v9033_v40, %v2953_v48  ;;  %v10106_v51 = vpop.f32.mrb[53].mxu0 }
0x11f3   : > { %v13450_v29 = vmov %v13442_v55 }
0x11f4   : > { %v12432_v28 = vadd.f32 %v2963_v44, %v2954_v50   ;;  %v11071_v29 = vpack.c.bf16 (%p188_p0), %v13429_v34, %v13430_v35  ;;  %v3134_v58 = vpop.f32.mrb[0].mxu1 (%p188_p0) }
0x11f5   : > { %v2958_v24 = vpop.f32.mrb[54].mxu0  ;;  %190 = sbr.rel (!%p188_p0) target bundleno = 59 (0x3b), region = 224  ;;  %v10127_v43 = vpop.f32.mrb[1].mxu1 (%p188_p0) }
0x11f6   : > { %v13443_v36 = vmov %v12432_v28  ;;  %v2959_v49 = vadd.f32 %v9033_v40, %v2958_v24  ;;  %v10109_v61 = vpop.f32.mrb[55].mxu0  ;;  %v13445_v24 = vmov %v13439_v53  ;;  %11072 = vmatpush3.bf16.msra.mxu0 (%p188_p0), %v11071_v29 }
0x11f7   : > { %v13449_v28 = vmov %v13443_v36  ;;  %11079 = vmatprep.subr.bf16.mxu0 (%p188_p0), %v11774_v63 }
0x11f8   : > { %v12435_v27 = vadd.f32 %v2964_v52, %v2959_v49   ;;  %v11074_v28 = vpack.c.bf16 (%p188_p0), %v3153_v54, %v3152_v56  ;;  %v3139_v47 = vpop.f32.mrb[2].mxu1 (%p188_p0) }
0x11f9   :  { %10115 = vmatmul.mubr.msk.f32.vlgmr.msra.gmra.mrb[0].mxu0 (%p188_p0), %vm198_vm2, %v11808_v0  ;;  %v10130_v48 = vpop.f32.mrb[3].mxu1 (%p188_p0) }
0x11fa   : > { %v13444_v60 = vmov %v12435_v27  ;;  %10117 = vmatprep.mubr.msk.f32.mxu0 (%p188_p0), %vm11775_vm0, %v11776_v30  ;;  %11075 = vmatpush3.bf16.msra.mxu1 (%p188_p0), %v11074_v28 }
0x11fb   : > { %v13448_v27 = vmov %v13444_v60  ;;  %11076 = vmatprep.subr.bf16.mxu1 (%p188_p0), %v11774_v63 }
0x11fc   :  { %v3149_v27 = vld [vmem:[%s11846_s13 + $0x8] sm:$0xff]  ;;  %v3144_v51 = vpop.f32.mrb[4].mxu1 }
0x11fd   :  { %v11080_v31 = vpack.c.bf16 %v3149_v27, %v3148_v59  ;;  %10118 = vmatmul.mubr.msk.f32.gmra.mrb[2].mxu0 %vm198_vm2, %v11810_v1  ;;  %v10133_v24 = vpop.f32.mrb[5].mxu1 }
0x11fe   :  { %10120 = vmatprep.mubr.msk.f32.mxu0 %vm11775_vm0, %v11776_v30  ;;  %11078 = vmatpush3.bf16.msra.mxu1 %v11077_v41 }
0x11ff   :  { %11081 = vmatpush3.bf16.msra.mxu0 %v11080_v31  ;;  %11085 = vmatprep.subr.bf16.mxu1 %v11774_v63 }
0x1200   :  { %11082 = vmatprep.subr.bf16.mxu0 %v11774_v63 }
0x1201   :  { %10121 = vmatmul.mubr.msk.f32.gmra.mrb[4].mxu0 %vm198_vm2, %v11812_v2 }
0x1202   :  { %10159 = vmatprep.mubr.msk.f32.mxu0 %vm11775_vm0, %v11776_v30 }
0x1203   :  { %11084 = vmatpush3.bf16.msra.mxu0 %v11083_v42 }
0x1204   :  { %11091 = vmatprep.subr.bf16.mxu0 %v11774_v63 }
0x1206   :  { %10160 = vmatmul.mubr.msk.f32.vlgmr.msra.gmra.mrb[6].mxu0 %vm390_vm3, %v13442_v55 }
0x1207   :  { %10162 = vmatprep.mubr.msk.f32.mxu0 %vm11775_vm0, %v11776_v30 }
0x120a   :  { %10163 = vmatmul.mubr.msk.f32.gmra.mrb[8].mxu0 %vm390_vm3, %v13443_v36 }
0x120b   :  { %10165 = vmatprep.mubr.msk.f32.mxu0 %vm11775_vm0, %v11776_v30 }
0x120e   :  { %10166 = vmatmul.mubr.msk.f32.gmra.mrb[10].mxu0 %vm390_vm3, %v13444_v60 }
0x120f   :  { %10193 = vmatprep.mubr.msk.f32.mxu0 %vm11775_vm0, %v11776_v30 }
0x12cc   :  { %v3044_v40 = vpop.f32.mrb[0].mxu0 }
0x12cd   :  { %v10116_v45 = vpop.f32.mrb[1].mxu0  ;;  %10143 = vmatmul.mubr.msk.f32.vlgmr.msra.gmra.mrb[6].mxu1 %vm390_vm3, %v3044_v40 }
0x12ce   :  { %10145 = vmatprep.mubr.msk.f32.mxu1 %vm11775_vm0, %v11776_v30  ;;  %11087 = vmatpush3.bf16.msra.mxu1 %v11086_v26 }
0x12cf   :  { %11088 = vmatprep.subr.bf16.mxu1 %v11774_v63 }
0x12d0   :  { %v3049_v44 = vpop.f32.mrb[2].mxu0 }
0x12d1   :  { %v10119_v50 = vpop.f32.mrb[3].mxu0  ;;  %10146 = vmatmul.mubr.msk.f32.gmra.mrb[8].mxu1 %vm390_vm3, %v3049_v44 }
0x12d2   :  { %10148 = vmatprep.mubr.msk.f32.mxu1 %vm11775_vm0, %v11776_v30  ;;  %11090 = vmatpush3.bf16.msra.mxu1 %v11089_v46 }
0x12d4   :  { %v3054_v52 = vpop.f32.mrb[4].mxu0 }
0x12d5   :  { %v10122_v49 = vpop.f32.mrb[5].mxu0  ;;  %10149 = vmatmul.mubr.msk.f32.gmra.mrb[10].mxu1 %vm390_vm3, %v3054_v52 }
0x12d6   :  { %10176 = vmatprep.mubr.msk.f32.mxu1 %vm11775_vm0, %v11776_v30 }
0x12d9   :  { %10177 = vmatmul.mubr.msk.f32.vlgmr.msra.gmra.mrb[12].mxu1 %vm390_vm3, %v3134_v58  ;;  %v3325_v61 = vpop.f32.mrb[6].mxu0 }
0x12da   :  { %10179 = vmatprep.mubr.msk.f32.mxu1 %vm11775_vm0, %v11776_v30  ;;  %v10161_v29 = vpop.f32.mrb[7].mxu0 }
0x12db   :  { %v3468_v29 = vld [vmem:[%s11855_s26] sm:$0xff] }
0x12dd   :  { %10180 = vmatmul.mubr.msk.f32.gmra.mrb[14].mxu1 %vm390_vm3, %v3139_v47  ;;  %v3330_v56 = vpop.f32.mrb[8].mxu0 }
0x12de   :  { %10182 = vmatprep.mubr.msk.f32.mxu1 %vm11775_vm0, %v11776_v30  ;;  %v10164_v54 = vpop.f32.mrb[9].mxu0 }
0x12e1   :  { %10183 = vmatmul.mubr.msk.f32.gmra.mrb[16].mxu1 %vm390_vm3, %v3144_v51  ;;  %v3335_v59 = vpop.f32.mrb[10].mxu0 }
0x12e2   :  { %10208 = vmatprep.mubr.msk.f32.mxu1 %vm816_vm7, %v11817_v3  ;;  %v10167_v27 = vpop.f32.mrb[11].mxu0 }
0x12e3   :  { %v3471_v27 = vld [vmem:[%s11855_s26 + $0x18] sm:$0xff] }
0x13a0   :  { %v3236_v28 = vpop.f32.mrb[6].mxu1 }
0x13a1   :  { %v3326_v31 = vadd.f32 %v3325_v61, %v3236_v28  ;;  %v10144_v33 = vpop.f32.mrb[7].mxu1 }
0x13a4   :  { %v3241_v62 = vpop.f32.mrb[8].mxu1 }
0x13a5   :  { %v3331_v32 = vadd.f32 %v3330_v56, %v3241_v62  ;;  %v10147_v39 = vpop.f32.mrb[9].mxu1  ;;  %v3469_v56 = vld [vmem:[%s11855_s26 + $0x8] sm:$0xff] }
0x13a6   :  { %v11092_v54 = vpack.c.bf16 %v3469_v56, %v3468_v29 }
0x13a8   :  { %v3246_v41 = vpop.f32.mrb[10].mxu1  ;;  %11093 = vmatpush3.bf16.msra.mxu0 %v11092_v54  ;;  %v9052_v54 = vld [vmem:[%s11862_s30] ss:$0 sm:$0xff] }
0x13a9   :  { %v3336_v42 = vadd.f32 %v3335_v59, %v3246_v41  ;;  %v10150_v38 = vpop.f32.mrb[11].mxu1  ;;  %v3470_v59 = vld [vmem:[%s11855_s26 + $0x10] sm:$0xff]  ;;  %11094 = vmatprep.subr.bf16.mxu0 %v11774_v63 }
0x13aa   :  { %v11095_v28 = vpack.c.bf16 %v3471_v27, %v3470_v59 }
0x13ac   :  { %v3414_v25 = vpop.f32.mrb[12].mxu1  ;;  %11096 = vmatpush3.bf16.msra.mxu0 %v11095_v28 }
0x13ad   :  { %v3428_v26 = vadd.f32 %v3414_v25, %v3326_v31  ;;  %v10178_v57 = vpop.f32.mrb[13].mxu1 }
0x13af   :  { %v3431_v37 = vadd.f32 %v3428_v26, %v11837_v9 }
0x13b0   :  { %v3419_v58 = vpop.f32.mrb[14].mxu1 }
0x13b1   :  { %v3429_v40 = vadd.f32 %v3419_v58, %v3331_v32  ;;  %v10181_v43 = vpop.f32.mrb[15].mxu1  ;;  %v3434_v45 = vmul.f32 %v3431_v37, %v3431_v37 }
0x13b3   :  { %v3432_v46 = vadd.f32 %v3429_v40, %v11839_v10  ;;  %v3437_v47 = vsel %vm390_vm3, %v3434_v45, 0.0 }
0x13b4   :  { %v3424_v44 = vpop.f32.mrb[16].mxu1  ;;  %3438 = vadd.xlane.f32.xlu0 %v3437_v47 }
0x13b5   :  { %v3430_v48 = vadd.f32 %v3424_v44, %v3336_v42  ;;  %v10184_v50 = vpop.f32.mrb[17].mxu1  ;;  %v3435_v51 = vmul.f32 %v3432_v46, %v3432_v46 }
0x13b7   :  { %v3433_v52 = vadd.f32 %v3430_v48, %v11841_v11  ;;  %v3440_v24 = vsel %vm390_vm3, %v3435_v51, 0.0  ;;  %v12562_v51 = vpack.c.bf16 %v13443_v36, %v13442_v55 }
0x13b8   :  { %3441 = vadd.xlane.f32.xlu0 %v3440_v24  ;;  %v3747_v24 = vld [vmem:[%s11873_s4 + $0x20] sm:$0xff] }
0x13b9   :  { %v3436_v49 = vmul.f32 %v3433_v52, %v3433_v52  ;;  %11098 = vmatprep.subr.bf16.mxu1 %v12562_v51 }
0x13ba   :  { %11100 = vmatpush3.bf16.msra.mxu1 %v12562_v51 }
0x13bb   :  { %v3443_v61 = vsel %vm390_vm3, %v3436_v49, 0.0  ;;  %v3749_v49 = vld [vmem:[%s11873_s4 + $0x30] sm:$0xff]  ;;  %10206 = vmatprep.subr.mxu1 %v13444_v60 }
0x13bc   :  { %3444 = vadd.xlane.f32.xlu1 %v3443_v61  ;;  %v3750_v61 = vld [vmem:[%s11873_s4 + $0x38] sm:$0xff] }
0x13bd   :  { %v11109_v56 = vpack.c.bf16 %v3750_v61, %v3749_v49  ;;  %v3745_v61 = vld [vmem:[%s11873_s4 + $0x10] sm:$0xff] }
0x13be   :  { %10207 = vmatpush3.msra.mxu1 %v13444_v60 }
0x13bf   :  { %10209 = vmatmul.mubr.msk.f32.vlgmr.msra.gmra.mrb[18].mxu1 %vm816_vm7, %v11819_v4 }
0x1441   :  { %v3439_v31 = vpop.xlane.xlu0 %3438 }
0x1442   :  { %v3447_v33 = vmul.f32 0.03125, %v3439_v31 }
0x1444   :  { %v3450_v62 = vadd.f32 1e-06, %v3447_v33 }
0x1445   :  { %v3442_v32 = vpop.xlane.xlu0 %3441 }
0x1446   :  { %11567 = vrsqrt.f32 %v3450_v62  ;;  %v3448_v39 = vmul.f32 0.03125, %v3442_v32 }
0x1448   :  { %v3451_v41 = vadd.f32 1e-06, %v3448_v39 }
0x1449   :  { %v3445_v42 = vpop.xlane.xlu1 %3444 }
0x144a   :  { %11569 = vrsqrt.f32 %v3451_v41  ;;  %v3449_v38 = vmul.f32 0.03125, %v3445_v42 }
0x144c   :  { %v3452_v25 = vadd.f32 1e-06, %v3449_v38 }
0x144e   :  { %11571 = vrsqrt.f32 %v3452_v25 }
0x1450   :  { %v11568_v26 = vpop.eup %11567 }
0x1451   :  { %v3456_v57 = vmul.f32 %v11568_v26, %v3431_v37 }
0x1453   :  { %vm3459_vm5 = vcmp.ge.f32.partialorder %v3456_v57, 0.0  ;;  %v3462_v58 = vmul.f32 0.01, %v3456_v57 }
0x1454   :  { %v11570_v40 = vpop.eup %11569 }
0x1455   :  { %v3465_v43 = vsel %vm3459_vm5, %v3456_v57, %v3462_v58  ;;  %v3457_v45 = vmul.f32 %v11570_v40, %v3432_v46 }
0x1456   :  { %10194 = vmatmul.mubr.msk.f32.vlgmr.msra.gmra.mrb[12].mxu0 %vm390_vm3, %v3465_v43 }
0x1457   :  { %10196 = vmatprep.mubr.msk.f32.mxu0 %vm11775_vm0, %v11776_v30  ;;  %vm3460_vm6 = vcmp.ge.f32.partialorder %v3457_v45, 0.0  ;;  %v3463_v47 = vmul.f32 0.01, %v3457_v45 }
0x1458   :  { %v11572_v44 = vpop.eup %11571 }
0x1459   :  { %v3466_v48 = vsel %vm3460_vm6, %v3457_v45, %v3463_v47  ;;  %v3458_v50 = vmul.f32 %v11572_v44, %v3433_v52  ;;  %v3748_v52 = vld [vmem:[%s11873_s4 + $0x28] sm:$0xff] }
0x145a   :  { %10197 = vmatmul.mubr.msk.f32.gmra.mrb[14].mxu0 %vm390_vm3, %v3466_v48  ;;  %v11105_v29 = vpack.c.bf16 %v3748_v52, %v3747_v24 }
0x145b   :  { %10199 = vmatprep.mubr.msk.f32.mxu0 %vm11775_vm0, %v11776_v30  ;;  %vm3461_vm8 = vcmp.ge.f32.partialorder %v3458_v50, 0.0  ;;  %v3464_v37 = vmul.f32 0.01, %v3458_v50 }
0x145c   :  { %11106 = vmatprep.subr.bf16.mxu1 %v11105_v29 }
0x145d   :  { %v3467_v46 = vsel %vm3461_vm8, %v3458_v50, %v3464_v37  ;;  %11108 = vmatpush3.bf16.msra.mxu1 %v11105_v29  ;;  %v3743_v37 = vld [vmem:[%s11873_s4] sm:$0xff]  ;;  %v3746_v29 = vld [vmem:[%s11873_s4 + $0x18] sm:$0xff] }
0x145e   :  { %10200 = vmatmul.mubr.msk.f32.gmra.mrb[16].mxu0 %vm390_vm3, %v3467_v46  ;;  %11110 = vmatprep.subr.bf16.mxu1 %v11109_v56  ;;  %v3744_v46 = vld [vmem:[%s11873_s4 + $0x8] sm:$0xff] }
0x145f   :  { %10217 = vmatprep.mubr.msk.f32.mxu0 %vm816_vm7, %v11817_v3  ;;  %v11113_v24 = vpack.c.bf16 %v3744_v46, %v3743_v37 }
0x1461   :  { %11112 = vmatpush3.bf16.msra.mxu1 %v11109_v56 }
0x1462   :  { %11114 = vmatprep.subr.bf16.mxu1 %v11113_v24 }
0x1492   :  { %v10210_v52 = vpop.f32.mrb[18].mxu1 }
0x1493   :  { %v3659_v49 = vpop.f32.mrb[19].mxu1 }
0x1529   :  { %v3554_v59 = vpop.f32.mrb[12].mxu0 }
0x152a   :  { %v3555_v27 = vadd.f32 %v9052_v54, %v3554_v59  ;;  %v10195_v28 = vpop.f32.mrb[13].mxu0  ;;  %v11117_v59 = vpack.c.bf16 %v3746_v29, %v3745_v61 }
0x152c   :  { %v9056_v31 = vmul.f32 -1.442695, %v3555_v27  ;;  %v9067_v27 = vld [vmem:[%s11884_s10] ss:$0 sm:$0xff] }
0x152d   :  { %v3559_v33 = vpop.f32.mrb[14].mxu0 }
0x152e   :  { %11573 = vpow2.f32 %v9056_v31  ;;  %v3560_v62 = vadd.f32 %v9052_v54, %v3559_v33  ;;  %v10198_v32 = vpop.f32.mrb[15].mxu0 }
0x1530   :  { %v9057_v39 = vmul.f32 -1.442695, %v3560_v62 }
0x1531   :  { %v3564_v41 = vpop.f32.mrb[16].mxu0 }
0x1532   :  { %11575 = vpow2.f32 %v9057_v39  ;;  %v3565_v42 = vadd.f32 %v9052_v54, %v3564_v41  ;;  %v10201_v38 = vpop.f32.mrb[17].mxu0 }
0x1533   :  { %v3944_v38 = vld [vmem:[%s11895_s5] sm:$0xff] }
0x1534   :  { %v9058_v25 = vmul.f32 -1.442695, %v3565_v42 }
0x1536   :  { %11577 = vpow2.f32 %v9058_v25  ;;  %v3945_v25 = vld [vmem:[%s11895_s5 + $0x8] sm:$0xff] }
0x1538   :  { %v11574_v26 = vpop.eup %11573 }
0x1539   :  { %v3577_v57 = vadd.f32 1.0, %v11574_v26  ;;  %v3946_v26 = vld [vmem:[%s11895_s5 + $0x10] sm:$0xff] }
0x153b   :  { %11579 = vrcp.f32 %v3577_v57  ;;  %v11121_v57 = vpack.c.bf16 %v3945_v25, %v3944_v38  ;;  %v9068_v38 = vld [vmem:[%s11900_s9] ss:$0 sm:$0xff] }
0x153c   :  { %v11576_v58 = vpop.eup %11575 }
0x153d   :  { %v3578_v40 = vadd.f32 1.0, %v11576_v58  ;;  %v3947_v58 = vld [vmem:[%s11895_s5 + $0x18] sm:$0xff] }
0x153f   :  { %11581 = vrcp.f32 %v3578_v40  ;;  %v11125_v40 = vpack.c.bf16 %v3947_v58, %v3946_v26  ;;  %v4038_v26 = vld [vmem:[%s11905_s23 + $0x10] sm:$0xff] }
0x1540   :  { %v11578_v43 = vpop.eup %11577 }
0x1541   :  { %v3579_v45 = vadd.f32 1.0, %v11578_v43  ;;  %v4040_v43 = vld [vmem:[%s11905_s23 + $0x20] sm:$0xff] }
0x1543   :  { %11583 = vrcp.f32 %v3579_v45  ;;  %v4041_v45 = vld [vmem:[%s11905_s23 + $0x28] sm:$0xff] }
0x1545   :  { %v11580_v47 = vpop.eup %11579 }
0x1549   :  { %v11582_v44 = vpop.eup %11581 }
0x154a   :  { %v12575_v48 = vpack.c.bf16 %v11582_v44, %v11580_v47  ;;  %v11129_v47 = vpack.c.bf16 %v4041_v45, %v4040_v43 }
0x154c   :  { %11102 = vmatprep.subr.bf16.mxu0 %v12575_v48 }
0x154d   :  { %v12578_v50 = vpop.eup %11583  ;;  %11104 = vmatpush3.bf16.msra.mxu0 %v12575_v48 }
0x154e   :  { %10215 = vmatprep.subr.mxu0 %v12578_v50 }
0x1551   :  { %10216 = vmatpush3.msra.mxu0 %v12578_v50 }
0x1552   :  { %10218 = vmatmul.mubr.msk.f32.vlgmr.msra.gmra.mrb[18].mxu0 %vm816_vm7, %v11819_v4  ;;  %11122 = vmatprep.subr.bf16.mxu0 %v11121_v57 }
0x1553   :  { %11124 = vmatpush3.bf16.msra.mxu0 %v11121_v57  ;;  %v4039_v57 = vld [vmem:[%s11905_s23 + $0x18] sm:$0xff] }
0x1554   :  { %11126 = vmatprep.subr.bf16.mxu0 %v11125_v40  ;;  %v11141_v45 = vpack.c.bf16 %v4039_v57, %v4038_v26 }
0x1557   :  { %11128 = vmatpush3.bf16.msra.mxu0 %v11125_v40 }
0x1558   :  { %11130 = vmatprep.subr.bf16.mxu0 %v11129_v47 }
0x1625   :  { %v10219_v56 = vpop.f32.mrb[18].mxu0 }
0x1626   :  { %v3734_v54 = vpop.f32.mrb[19].mxu0 }
0x1627   :  { %10228 = vmatprep.mubr.msk.f32.mxu1 %vm390_vm3, %v3734_v54 }
0x1628   :  { %10229 = vmatmul.mubr.msk.f32.vlgmr.msra.gmra.mrb[20].mxu1 %vm390_vm3, %v10219_v56 }
0x1629   :  { %11116 = vmatpush3.bf16.msra.mxu1 %v11113_v24  ;;  %10239 = vmatprep.mubr.msk.f32.mxu1 %vm390_vm3, %v3659_v49 }
0x162a   :  { %11118 = vmatprep.subr.bf16.mxu1 %v11117_v59 }
0x162d   :  { %11120 = vmatpush3.bf16.msra.mxu1 %v11117_v59 }
0x1630   :  { %10240 = vmatmul.mubr.msk.f32.vlgmr.msra.gmra.mrb[20].mxu1 %vm390_vm3, %v10210_v52 }
0x1703   :  { %v10241_v28 = vpop.f32.mrb[20].mxu1 }
0x1704   :  { %v3921_v31 = vadd.f32 %v10241_v28, %v9067_v27  ;;  %v3904_v33 = vpop.f32.mrb[21].mxu1 }
0x1705   :  { %v3920_v62 = vadd.f32 %v9067_v27, %v3904_v33 }
0x1706   :  { %v3923_v32 = vmul.f32 %v3921_v31, %v3921_v31 }
0x1707   :  { %v3922_v39 = vmul.f32 %v3920_v62, %v3920_v62 }
0x1708   :  { %v3927_v41 = vsel %vm390_vm3, %v3923_v32, 0.0  ;;  %v4042_v32 = vld [vmem:[%s11905_s23 + $0x30] sm:$0xff] }
0x1709   :  { %3928 = vadd.xlane.f32.xlu0 %v3927_v41  ;;  %v3924_v42 = vsel %vm390_vm3, %v3922_v39, 0.0  ;;  %v4043_v39 = vld [vmem:[%s11905_s23 + $0x38] sm:$0xff]  ;;  %v4037_v41 = vld [vmem:[%s11905_s23 + $0x8] sm:$0xff] }
0x170a   :  { %3925 = vadd.xlane.f32.xlu1 %v3924_v42 }
0x1796   :  { %v3929_v44 = vpop.xlane.xlu0 %3928 }
0x1797   :  { %v3931_v37 = vmul.f32 0.03125, %v3929_v44  ;;  %v3926_v46 = vpop.xlane.xlu1 %3925 }
0x1798   :  { %v3930_v24 = vmul.f32 0.03125, %v3926_v46 }
0x1799   :  { %v3933_v52 = vadd.f32 1e-06, %v3931_v37 }
0x179a   :  { %v3932_v49 = vadd.f32 1e-06, %v3930_v24 }
0x179b   :  { %11585 = vrsqrt.f32 %v3933_v52 }
0x179c   :  { %11587 = vrsqrt.f32 %v3932_v49 }
0x17a5   :  { %v11586_v61 = vpop.eup %11585 }
0x17a6   :  { %v11588_v29 = vpop.eup %11587  ;;  %v3937_v56 = vmul.f32 %v11586_v61, %v3921_v31  ;;  %v11133_v31 = vpack.c.bf16 %v4043_v39, %v4042_v32  ;;  %v4327_v32 = vld [vmem:[%s11920_s3 + $0x8] sm:$0xff] }
0x17a7   :  { %v3936_v54 = vmul.f32 %v11588_v29, %v3920_v62  ;;  %v4036_v62 = vld [vmem:[%s11905_s23] sm:$0xff] }
0x17a8   :  { %v3941_v59 = vmul.f32 0.01, %v3937_v56  ;;  %vm3939_vm10 = vcmp.ge.f32.partialorder %v3937_v56, 0.0  ;;  %v11137_v42 = vpack.c.bf16 %v4037_v41, %v4036_v62  ;;  %v4230_v29 = vld [vmem:[%s11910_s27] sm:$0xff] }
0x17a9   :  { %vm3938_vm9 = vcmp.ge.f32.partialorder %v3936_v54, 0.0  ;;  %v3940_v27 = vmul.f32 0.01, %v3936_v54 }
0x17aa   :  { %v3943_v33 = vsel %vm3939_vm10, %v3937_v56, %v3941_v59  ;;  %v4231_v56 = vld [vmem:[%s11910_s27 + $0x8] sm:$0xff] }
0x17ab   :  { %v3942_v28 = vsel %vm3938_vm9, %v3936_v54, %v3940_v27  ;;  %v4232_v54 = vld [vmem:[%s11910_s27 + $0x10] sm:$0xff]  ;;  %v11145_v59 = vpack.c.bf16 %v4231_v56, %v4230_v29  ;;  %v4233_v27 = vld [vmem:[%s11910_s27 + $0x18] sm:$0xff]  ;;  %s13451_s27 = sld [smem:[#allocation3_spill]] }
0x17ac   :  { %10250 = vmatprep.mubr.msk.f32.mxu0 %vm390_vm3, %v3942_v28  ;;  %v11149_v28 = vpack.c.bf16 %v4233_v27, %v4232_v54 }
0x17ad   :  { %10251 = vmatmul.mubr.msk.f32.vlgmr.msra.gmra.mrb[20].mxu0 %vm390_vm3, %v3943_v33  ;;  %11146 = vmatprep.subr.bf16.mxu1 %v11145_v59  ;;  %v4326_v33 = vld [vmem:[%s11920_s3] sm:$0xff] }
0x17ae   :  { %11132 = vmatpush3.bf16.msra.mxu0 %v11129_v47  ;;  %11148 = vmatpush3.bf16.msra.mxu1 %v11145_v59  ;;  %v11153_v39 = vpack.c.bf16 %v4327_v32, %v4326_v33  ;;  %v4658_v33 = vld [vmem:[%s11930_s17 + $0x28] sm:$0xff] }
0x17af   :  { %11134 = vmatprep.subr.bf16.mxu0 %v11133_v31  ;;  %11150 = vmatprep.subr.bf16.mxu1 %v11149_v28 }
0x17b2   :  { %11136 = vmatpush3.bf16.msra.mxu0 %v11133_v31  ;;  %11152 = vmatpush3.bf16.msra.mxu1 %v11149_v28  ;;  %v4657_v28 = vld [vmem:[%s11930_s17 + $0x20] sm:$0xff] }
0x17b3   :  { %11138 = vmatprep.subr.bf16.mxu0 %v11137_v42  ;;  %11154 = vmatprep.subr.bf16.mxu1 %v11153_v39  ;;  %v11171_v32 = vpack.c.bf16 %v4658_v33, %v4657_v28  ;;  %v4827_v28 = vld [vmem:[%s13451_s27 + $0x8] sm:$0xff]  ;;  %v4828_v33 = vld [vmem:[%s13451_s27 + $0x10] sm:$0xff] }
0x1880   :  { %v10252_v25 = vpop.f32.mrb[20].mxu0 }
0x1881   :  { %v4027_v58 = vpop.f32.mrb[21].mxu0  ;;  %v4033_v43 = vadd.f32 %v10252_v25, %v9068_v38 }
0x1882   :  { %v4028_v40 = vadd.f32 %v9068_v38, %v4027_v58 }
0x1884   :  { %10261 = vmatprep.mubr.msk.f32.mxu0 %vm390_vm3, %v4028_v40 }
0x1885   :  { %10262 = vmatmul.mubr.msk.f32.vlgmr.msra.gmra.mrb[22].mxu0 %vm390_vm3, %v4033_v43 }
0x1886   :  { %11140 = vmatpush3.bf16.msra.mxu0 %v11137_v42  ;;  %10272 = vmatprep.mubr.msk.f32.mxu0 %vm390_vm3, %v13430_v35 }
0x1887   :  { %11142 = vmatprep.subr.bf16.mxu0 %v11141_v45 }
0x188a   :  { %11144 = vmatpush3.bf16.msra.mxu0 %v11141_v45  ;;  %v4328_v45 = vld [vmem:[%s11920_s3 + $0x10] sm:$0xff] }
0x188b   :  { %11161 = vmatprep.subr.bf16.mxu0 %v11774_v63 }
0x188d   :  { %10273 = vmatmul.mubr.msk.f32.vlgmr.msra.gmra.mrb[22].mxu0 %vm390_vm3, %v13429_v34 }
0x188e   :  { %10301 = vmatprep.mubr.msk.f32.mxu0 %vm11775_vm0, %v11776_v30 }
0x1960   :  { %v10274_v47 = vpop.f32.mrb[22].mxu0 }
0x1961   :  { %v4207_v44 = vadd.f32 %v10274_v47, %v11850_v13  ;;  %v4197_v37 = vpop.f32.mrb[23].mxu0  ;;  %v4329_v47 = vld [vmem:[%s11920_s3 + $0x18] sm:$0xff] }
0x1962   :  { %v4206_v46 = vadd.f32 %v4197_v37, %v11848_v12 }
0x1963   :  { %v4209_v24 = vmul.f32 %v4207_v44, %v4207_v44 }
0x1964   :  { %v4208_v52 = vmul.f32 %v4206_v46, %v4206_v46 }
0x1965   :  { %v4213_v49 = vsel %vm390_vm3, %v4209_v24, 0.0 }
0x1966   :  { %4214 = vadd.xlane.f32.xlu0 %v4213_v49  ;;  %v4210_v61 = vsel %vm390_vm3, %v4208_v52, 0.0  ;;  %v11157_v52 = vpack.c.bf16 %v4329_v47, %v4328_v45 }
0x1967   :  { %4211 = vadd.xlane.f32.xlu1 %v4210_v61 }
0x19f3   :  { %v4215_v31 = vpop.xlane.xlu0 %4214 }
0x19f4   :  { %v4217_v62 = vmul.f32 0.03125, %v4215_v31  ;;  %v4212_v41 = vpop.xlane.xlu1 %4211  ;;  %v4656_v31 = vld [vmem:[%s11930_s17 + $0x18] sm:$0xff] }
0x19f5   :  { %v4216_v42 = vmul.f32 0.03125, %v4212_v41  ;;  %v4659_v41 = vld [vmem:[%s11930_s17 + $0x30] sm:$0xff] }
0x19f6   :  { %v4219_v38 = vadd.f32 1e-06, %v4217_v62 }
0x19f7   :  { %v4218_v25 = vadd.f32 1e-06, %v4216_v42  ;;  %v4660_v42 = vld [vmem:[%s11930_s17 + $0x38] sm:$0xff] }
0x19f8   :  { %11589 = vrsqrt.f32 %v4219_v38  ;;  %v11174_v38 = vpack.c.bf16 %v4660_v42, %v4659_v41  ;;  %v4915_v41 = vld [vmem:[%s13452_s20 + $0x28] sm:$0xff] }
0x19f9   :  { %11591 = vrsqrt.f32 %v4218_v25 }
0x1a02   :  { %v11590_v26 = vpop.eup %11589 }
0x1a03   :  { %v11592_v57 = vpop.eup %11591  ;;  %v4223_v58 = vmul.f32 %v11590_v26, %v4207_v44 }
0x1a04   :  { %v4222_v40 = vmul.f32 %v11592_v57, %v4206_v46 }
0x1a05   :  { %v4227_v43 = vmul.f32 0.01, %v4223_v58  ;;  %vm4225_vm12 = vcmp.ge.f32.partialorder %v4223_v58, 0.0 }
0x1a06   :  { %vm4224_vm11 = vcmp.ge.f32.partialorder %v4222_v40, 0.0  ;;  %v4226_v37 = vmul.f32 0.01, %v4222_v40 }
0x1a07   :  { %v4229_v49 = vsel %vm4225_vm12, %v4223_v58, %v4227_v43 }
0x1a08   :  { %v4228_v24 = vsel %vm4224_vm11, %v4222_v40, %v4226_v37 }
0x1a09   :  { %10283 = vmatprep.mubr.msk.f32.mxu1 %vm390_vm3, %v4228_v24 }
0x1a0a   :  { %10284 = vmatmul.mubr.msk.f32.vlgmr.msra.gmra.mrb[22].mxu1 %vm390_vm3, %v4229_v49 }
0x1a0b   :  { %11156 = vmatpush3.bf16.msra.mxu1 %v11153_v39  ;;  %10294 = vmatprep.mubr.msk.f32.mxu1 %vm390_vm3, %v4228_v24  ;;  %v4655_v39 = vld [vmem:[%s11930_s17 + $0x10] sm:$0xff] }
0x1a0c   :  { %11158 = vmatprep.subr.bf16.mxu1 %v11157_v52  ;;  %v11180_v62 = vpack.c.bf16 %v4656_v31, %v4655_v39  ;;  %v4829_v39 = vld [vmem:[%s13451_s27 + $0x18] sm:$0xff] }
0x1a0d   :  { %v11186_v31 = vpack.c.bf16 %v4829_v39, %v4828_v33 }
0x1a0f   :  { %11160 = vmatpush3.bf16.msra.mxu1 %v11157_v52 }
0x1a10   :  { %11164 = vmatprep.subr.bf16.mxu1 %v11774_v63 }
0x1a12   :  { %10295 = vmatmul.mubr.msk.f32.vlgmr.msra.gmra.mrb[24].mxu1 %vm390_vm3, %v4229_v49 }
0x1a13   :  { %11166 = vmatpush3.bf16.msra.mxu1 %v12562_v51  ;;  %10316 = vmatprep.mubr.msk.f32.mxu1 %vm11775_vm0, %v11776_v30  ;;  %v9078_v51 = vld [vmem:[%s11925_s15] ss:$0 sm:$0xff] }
0x1a14   :  { %10314 = vmatprep.subr.mxu1 %v11776_v30 }
0x1a17   :  { %10315 = vmatpush3.msra.mxu1 %v13444_v60 }
0x1a18   :  { %10317 = vmatmul.mubr.msk.f32.vlgmr.msra.gmra.mrb[26].mxu1 %vm816_vm7, %v11830_v8  ;;  %11170 = vmatprep.subr.bf16.mxu1 %v11774_v63 }
0x1a19   :  { %10336 = vmatprep.mubr.msk.f32.mxu1 %vm11775_vm0, %v11776_v30  ;;  %11172 = vmatpush3.bf16.msra.mxu1 %v11171_v32 }
0x1a1a   :  { %11173 = vmatprep.subr.bf16.mxu1 %v11774_v63 }
0x1a1d   :  { %11175 = vmatpush3.bf16.msra.mxu1 %v11174_v38 }
0x1a1e   :  { %11182 = vmatprep.subr.bf16.mxu1 %v11774_v63 }
0x1add   :  { %v12647_v44 = vpop.f32.mrb[22].mxu1 }
0x1ade   :  { %v12649_v46 = vpop.f32.mrb[23].mxu1 }
0x1ae5   :  { %v10296_v61 = vpop.f32.mrb[24].mxu1 }
0x1ae6   :  { %v4409_v29 = vadd.f32 %v10296_v61, %v9078_v51  ;;  %v4403_v56 = vpop.f32.mrb[25].mxu1 }
0x1ae7   :  { %v4404_v54 = vadd.f32 %v9078_v51, %v4403_v56  ;;  %v11777_v51 = vmov 0  }
0x1ae8   :  { %11565 = vset.pattern.permute.xlu1 %v11777_v51  ;;  %11566 = vset.pattern.permute.xlu0 %v11777_v51 }
0x1ae9   :  { %v11162_v59 = vpack.c.bf16 %v4409_v29, %v4404_v54  ;;  %v9088_v29 = vld [vmem:[%s11935_s28] ss:$0 sm:$0xff] }
0x1aeb   :  { %11163 = vmatpush3.bf16.msra.mxu0 %v11162_v59  ;;  %v4579_v25 = vpop.f32.mrb[26].mxu1 }
0x1aec   :  { %11167 = vmatprep.subr.bf16.mxu0 %v11774_v63  ;;  %v10318_v26 = vpop.f32.mrb[27].mxu1 }
0x1aed   :  { %v4910_v26 = vld [vmem:[%s13452_s20] sm:$0xff] }
0x1aee   :  { %10302 = vmatmul.mubr.msk.f32.vlgmr.msra.gmra.mrb[24].mxu0 %vm198_vm2, %v11808_v0 }
0x1aef   :  { %11169 = vmatpush3.bf16.msra.mxu0 %v12575_v48  ;;  %10304 = vmatprep.mubr.msk.f32.mxu0 %vm11775_vm0, %v11776_v30  ;;  %v4653_v48 = vld [vmem:[%s11930_s17] sm:$0xff] }
0x1af0   :  { %10323 = vmatprep.subr.mxu0 %v11776_v30 }
0x1af2   :  { %10305 = vmatmul.mubr.msk.f32.gmra.mrb[26].mxu0 %vm198_vm2, %v11810_v1 }
0x1af3   :  { %10324 = vmatpush3.msra.mxu0 %v12578_v50  ;;  %10307 = vmatprep.mubr.msk.f32.mxu0 %vm11775_vm0, %v11776_v30  ;;  %v4654_v50 = vld [vmem:[%s11930_s17 + $0x8] sm:$0xff] }
0x1af4   :  { %11176 = vmatprep.subr.bf16.mxu0 %v11774_v63  ;;  %v11177_v27 = vpack.c.bf16 %v4654_v50, %v4653_v48 }
0x1af6   :  { %10308 = vmatmul.mubr.msk.f32.gmra.mrb[28].mxu0 %vm198_vm2, %v11812_v2 }
0x1af7   :  { %10325 = vmatprep.mubr.msk.f32.mxu0 %vm11775_vm0, %v11776_v30 }
0x1afa   :  { %10326 = vmatmul.mubr.msk.f32.vlgmr.msra.gmra.mrb[30].mxu0 %vm816_vm7, %v11830_v8 }
0x1afb   :  { %10347 = vmatprep.mubr.msk.f32.mxu0 %vm11775_vm0, %v11776_v30  ;;  %11178 = vmatpush3.bf16.msra.mxu0 %v11177_v27  ;;  %v4826_v27 = vld [vmem:[%s13451_s27] sm:$0xff] }
0x1afc   :  { %11179 = vmatprep.subr.bf16.mxu0 %v11774_v63  ;;  %v11183_v32 = vpack.c.bf16 %v4827_v28, %v4826_v27 }
0x1aff   :  { %11181 = vmatpush3.bf16.msra.mxu0 %v11180_v62  ;;  %v4914_v62 = vld [vmem:[%s13452_s20 + $0x20] sm:$0xff] }
0x1b00   :  { %11188 = vmatprep.subr.bf16.mxu0 %v11774_v63 }
0x1b02   :  { %10348 = vmatmul.mubr.msk.f32.vlgmr.msra.gmra.mrb[32].mxu0 %vm390_vm3, %v4579_v25 }
0x1b03   :  { %10369 = vmatprep.mubr.msk.f32.mxu0 %vm11775_vm0, %v11776_v30 }
0x1bc1   :  { %v12688_v57 = vpop.f32.mrb[24].mxu0 }
0x1bc2   :  { %v10303_v58 = vpop.f32.mrb[25].mxu0 }
0x1bc3   :  { %v4911_v58 = vld [vmem:[%s13452_s20 + $0x8] sm:$0xff] }
0x1bc5   :  { %v12690_v40 = vpop.f32.mrb[26].mxu0 }
0x1bc6   :  { %v10306_v43 = vpop.f32.mrb[27].mxu0 }
0x1bc9   :  { %v12692_v45 = vpop.f32.mrb[28].mxu0 }
0x1bca   :  { %v10309_v47 = vpop.f32.mrb[29].mxu0 }
0x1bcd   :  { %v4649_v37 = vpop.f32.mrb[30].mxu0 }
0x1bce   :  { %v10327_v24 = vpop.f32.mrb[31].mxu0  ;;  %10337 = vmatmul.mubr.msk.f32.vlgmr.msra.gmra.mrb[28].mxu1 %vm390_vm3, %v4649_v37  ;;  %v11195_v37 = vpack.c.bf16 %v4911_v58, %v4910_v26  ;;  %v5078_v26 = vld [vmem:[%s13454_s14 + $0x10] sm:$0xff]  ;;  %v5079_v58 = vld [vmem:[%s13454_s14 + $0x18] sm:$0xff] }
0x1bcf   :  { %10358 = vmatprep.mubr.msk.f32.mxu1 %vm11775_vm0, %v11776_v30  ;;  %11184 = vmatpush3.bf16.msra.mxu1 %v11183_v32  ;;  %v4912_v24 = vld [vmem:[%s13452_s20 + $0x10] sm:$0xff] }
0x1bd0   :  { %11185 = vmatprep.subr.bf16.mxu1 %v11774_v63 }
0x1bd3   :  { %11187 = vmatpush3.bf16.msra.mxu1 %v11186_v31 }
0x1bd4   :  { %11194 = vmatprep.subr.bf16.mxu1 %v11774_v63 }
0x1bd5   :  { %v4803_v52 = vpop.f32.mrb[32].mxu0 }
0x1bd6   :  { %v10349_v49 = vpop.f32.mrb[33].mxu0 }
0x1ca1   :  { %v4730_v61 = vpop.f32.mrb[28].mxu1 }
0x1ca2   :  { %v4804_v56 = vadd.f32 %v4803_v52, %v4730_v61  ;;  %v10338_v54 = vpop.f32.mrb[29].mxu1  ;;  %v4913_v52 = vld [vmem:[%s13452_s20 + $0x18] sm:$0xff]  ;;  %v4916_v61 = vld [vmem:[%s13452_s20 + $0x30] sm:$0xff] }
0x1ca3   :  { %v11198_v51 = vpack.c.bf16 %v4913_v52, %v4912_v24  ;;  %v9089_v54 = vld [vmem:[%s13453_s22] ss:$0 sm:$0xff]  ;;  %v11204_v24 = vpack.c.bf16 %v5079_v58, %v5078_v26  ;;  %v5326_v26 = vld [vmem:[%s13456_s24 + $0x18] sm:$0xff] }
0x1ca4   :  { %v4814_v59 = vadd.f32 %v9088_v29, %v4804_v56  ;;  %v4917_v29 = vld [vmem:[%s13452_s20 + $0x38] sm:$0xff] }
0x1ca5   :  { %v11192_v56 = vpack.c.bf16 %v4917_v29, %v4916_v61 }
0x1ca6   :  { %v4815_v48 = vmul.f32 %v4814_v59, %v4814_v59 }
0x1ca8   :  { %v4816_v50 = vsel %vm390_vm3, %v4815_v48, 0.0 }
0x1ca9   :  { %4817 = vadd.xlane.f32.xlu1 %v4816_v50 }
0x1cba   :  { %4494 = vperm.xlu1 %11565, %v11886_v21   ;;  %v11189_v21 = vpack.c.bf16 %v4915_v41, %v4914_v62 }
0x1cbc   :  { %11190 = vmatpush3.bf16.msra.mxu0 %v11189_v21  ;;  %v5076_v21 = vld [vmem:[%s13454_s14] sm:$0xff] }
0x1cbd   :  { %11191 = vmatprep.subr.bf16.mxu0 %v11774_v63 }
0x1cbe   :  { %4504 = vperm.xlu1 %11565, %v11890_v23  }
0x1cc0   :  { %11193 = vmatpush3.bf16.msra.mxu0 %v11192_v56 }
0x1cc1   :  { %11200 = vmatprep.subr.bf16.mxu0 %v11774_v63 }
0x1d36   :  { %v4818_v23 = vpop.xlane.xlu1 %4817 }
0x1d37   :  { %v4819_v42 = vmul.f32 0.03125, %v4818_v23  ;;  %v5077_v23 = vld [vmem:[%s13454_s14 + $0x8] sm:$0xff] }
0x1d39   :  { %v4820_v38 = vadd.f32 1e-06, %v4819_v42  ;;  %v5162_v42 = vld [vmem:[%s13455_s0] sm:$0xff] }
0x1d3b   :  { %11593 = vrsqrt.f32 %v4820_v38  ;;  %v11201_v38 = vpack.c.bf16 %v5077_v23, %v5076_v21 }
0x1d45   :  { %v11594_v25 = vpop.eup %11593 }
0x1d46   :  { %v4822_v43 = vmul.f32 %v11594_v25, %v4814_v59  ;;  %v5163_v25 = vld [vmem:[%s13455_s0 + $0x8] sm:$0xff] }
0x1d48   :  { %vm4823_vm13 = vcmp.ge.f32.partialorder %v4822_v43, 0.0  ;;  %v4824_v47 = vmul.f32 0.01, %v4822_v43 }
0x1d4a   :  { %v4825_v49 = vsel %vm4823_vm13, %v4822_v43, %v4824_v47  ;;  %v11207_v43 = vpack.c.bf16 %v5163_v25, %v5162_v42  ;;  %v5164_v47 = vld [vmem:[%s13455_s0 + $0x10] sm:$0xff] }
0x1d4b   :  { %10359 = vmatmul.mubr.msk.f32.vlgmr.msra.gmra.mrb[30].mxu1 %vm390_vm3, %v4825_v49  ;;  %v5325_v25 = vld [vmem:[%s13456_s24 + $0x10] sm:$0xff] }
0x1d4c   :  { %11196 = vmatpush3.bf16.msra.mxu1 %v11195_v37  ;;  %10380 = vmatprep.mubr.msk.f32.mxu1 %vm11775_vm0, %v11776_v30  ;;  %v5165_v37 = vld [vmem:[%s13455_s0 + $0x18] sm:$0xff]  ;;  %v11222_v58 = vpack.c.bf16 %v5326_v26, %v5325_v25 }
0x1d4d   :  { %11197 = vmatprep.subr.bf16.mxu1 %v11774_v63  ;;  %v11210_v52 = vpack.c.bf16 %v5165_v37, %v5164_v47  ;;  %v5332_v47 = vld [vmem:[%s13456_s24 + $0x48] sm:$0xff] }
0x1d50   :  { %11199 = vmatpush3.bf16.msra.mxu1 %v11198_v51 }
0x1d51   :  { %11206 = vmatprep.subr.bf16.mxu1 %v11774_v63 }
0x1d53   :  { %10381 = vmatmul.mubr.msk.f32.vlgmr.msra.gmra.mrb[32].mxu1 %vm390_vm3, %v13439_v53 }
0x1d54   :  { %10402 = vmatprep.mubr.msk.f32.mxu1 %vm11775_vm0, %v11776_v30  ;;  %11208 = vmatpush3.bf16.msra.mxu1 %v11207_v43  ;;  %v5331_v43 = vld [vmem:[%s13456_s24 + $0x40] sm:$0xff] }
0x1d55   :  { %11209 = vmatprep.subr.bf16.mxu1 %v11774_v63  ;;  %v11225_v37 = vpack.c.bf16 %v5332_v47, %v5331_v43 }
0x1d58   :  { %11211 = vmatpush3.bf16.msra.mxu1 %v11210_v52  ;;  %v5334_v52 = vld [vmem:[%s13456_s24 + $0x58] sm:$0xff] }
0x1d59   :  { %11212 = vmatprep.subr.bf16.mxu1 %v11774_v63 }
0x1e1e   :  { %v4906_v59 = vpop.f32.mrb[30].mxu1 }
0x1e1f   :  { %v4907_v48 = vadd.f32 %v9089_v54, %v4906_v59  ;;  %v10360_v50 = vpop.f32.mrb[31].mxu1  ;;  %v5327_v59 = vld [vmem:[%s13456_s24 + $0x20] sm:$0xff] }
0x1e21   :  { %10370 = vmatmul.mubr.msk.f32.vlgmr.msra.gmra.mrb[34].mxu0 %vm390_vm3, %v4907_v48  ;;  %v5328_v48 = vld [vmem:[%s13456_s24 + $0x28] sm:$0xff] }
0x1e22   :  { %10391 = vmatprep.mubr.msk.f32.mxu0 %vm11775_vm0, %v11776_v30  ;;  %11202 = vmatpush3.bf16.msra.mxu0 %v11201_v38  ;;  %v11213_v50 = vpack.c.bf16 %v5328_v48, %v5327_v59 }
0x1e23   :  { %11203 = vmatprep.subr.bf16.mxu0 %v11774_v63 }
0x1e26   :  { %v5060_v27 = vpop.f32.mrb[32].mxu1  ;;  %11205 = vmatpush3.bf16.msra.mxu0 %v11204_v24  ;;  %v5333_v24 = vld [vmem:[%s13456_s24 + $0x50] sm:$0xff] }
0x1e27   :  { %v10382_v28 = vpop.f32.mrb[33].mxu1  ;;  %10405 = vmatprep.subr.mxu0 %v11776_v30 }
0x1e28   :  { %v5330_v28 = vld [vmem:[%s13456_s24 + $0x38] sm:$0xff] }
0x1ef4   :  { %v4987_v33 = vpop.f32.mrb[34].mxu0 }
0x1ef5   :  { %v5061_v32 = vadd.f32 %v5060_v27, %v4987_v33  ;;  %v10371_v39 = vpop.f32.mrb[35].mxu0  ;;  %v5329_v27 = vld [vmem:[%s13456_s24 + $0x30] sm:$0xff] }
0x1ef6   :  { %v11216_v33 = vpack.c.bf16 %v5330_v28, %v5329_v27  ;;  %v5323_v39 = vld [vmem:[%s13456_s24] sm:$0xff] }
0x1ef7   :  { %v5064_v31 = vadd.f32 %v5061_v32, %v11857_v14  ;;  %v9095_v32 = vld [vmem:[%s13457_s21] ss:$0 sm:$0xff] }
0x1ef9   :  { %v5065_v62 = vmul.f32 %v5064_v31, %v5064_v31 }
0x1efb   :  { %v5066_v41 = vsel %vm390_vm3, %v5065_v62, 0.0 }
0x1efc   :  { %5067 = vadd.xlane.f32.xlu0 %v5066_v41 }
0x1f12   :  { %4499 = vperm.xlu0 %11566, %v11888_v22  }
0x1f89   :  { %v5068_v22 = vpop.xlane.xlu0 %5067 }
0x1f8a   :  { %v5069_v49 = vmul.f32 0.03125, %v5068_v22 }
0x1f8c   :  { %v5070_v51 = vadd.f32 1e-06, %v5069_v49 }
0x1f8e   :  { %11595 = vrsqrt.f32 %v5070_v51  ;;  %v11228_v51 = vpack.c.bf16 %v5334_v52, %v5333_v24 }
0x1f98   :  { %v11596_v61 = vpop.eup %11595 }
0x1f99   :  { %v5072_v29 = vmul.f32 %v11596_v61, %v5064_v31  ;;  %v5324_v31 = vld [vmem:[%s13456_s24 + $0x8] sm:$0xff] }
0x1f9a   :  { %v11219_v38 = vpack.c.bf16 %v5324_v31, %v5323_v39 }
0x1f9b   :  { %vm5073_vm14 = vcmp.ge.f32.partialorder %v5072_v29, 0.0  ;;  %v5074_v56 = vmul.f32 0.01, %v5072_v29 }
0x1f9d   :  { %v5075_v54 = vsel %vm5073_vm14, %v5072_v29, %v5074_v56  ;;  %v12803_v56 = vpop.permute.xlu1 %4494 }
0x1f9e   :  { %10392 = vmatmul.mubr.msk.f32.vlgmr.msra.gmra.mrb[36].mxu0 %vm390_vm3, %v5075_v54  ;;  %10403 = vmatmul.mubr.msk.f32.vlgmr.msra.gmra.mrb[34].mxu1 %vm390_vm3, %v5075_v54  ;;  %v4507_v48 = vmul.f32 %v12803_v56, %v12688_v57 }
0x1f9f   :  { %10407 = vmatprep.mubr.msk.f32.mxu0 %vm11775_vm0, %v11776_v30  ;;  %10424 = vmatprep.mubr.msk.f32.mxu1 %vm11775_vm0, %v11776_v30 }
0x1fa0   :  { %11214 = vmatpush3.bf16.msra.mxu1 %v11213_v50  ;;  %v12810_v50 = vpop.permute.xlu0 %4499 }
0x1fa1   :  { %11215 = vmatprep.subr.bf16.mxu1 %v11774_v63  ;;  %v4508_v27 = vmul.f32 %v12810_v50, %v12690_v40  ;;  %v12817_v28 = vpop.permute.xlu1 %4504 }
0x1fa2   :  { %v4509_v57 = vmul.f32 %v12817_v28, %v12692_v45 }
0x1fa4   :  { %11217 = vmatpush3.bf16.msra.mxu1 %v11216_v33 }
0x1fa5   :  { %11224 = vmatprep.subr.bf16.mxu1 %v11774_v63 }
0x2071   :  { %v12760_v62 = vpop.f32.mrb[36].mxu0  ;;  %v5239_v41 = vpop.f32.mrb[34].mxu1 }
0x2072   :  { %v5240_v21 = vadd.f32 %v9095_v32, %v5239_v41  ;;  %v10393_v23 = vpop.f32.mrb[37].mxu0  ;;  %v10404_v42 = vpop.f32.mrb[35].mxu1 }
0x2074   :  { %10406 = vmatpush3.msra.mxu0 %v5240_v21 }
0x2075   :  { %10408 = vmatmul.mubr.msk.f32.vlgmr.msra.gmra.mrb[38].mxu0 %vm288_vm1, %v11821_v5  ;;  %11218 = vmatprep.subr.bf16.mxu0 %v11774_v63 }
0x2076   :  { %10410 = vmatprep.mubr.msk.f32.mxu0 %vm11775_vm0, %v11776_v30  ;;  %11220 = vmatpush3.bf16.msra.mxu0 %v11219_v38 }
0x2077   :  { %11221 = vmatprep.subr.bf16.mxu0 %v11774_v63 }
0x2079   :  { %10411 = vmatmul.mubr.msk.f32.gmra.mrb[40].mxu0 %vm288_vm1, %v11826_v6 }
0x207a   :  { %10413 = vmatprep.mubr.msk.f32.mxu0 %vm11775_vm0, %v11776_v30  ;;  %11223 = vmatpush3.bf16.msra.mxu0 %v11222_v58 }
0x207b   :  { %11230 = vmatprep.subr.bf16.mxu0 %v11774_v63 }
0x207d   :  { %10414 = vmatmul.mubr.msk.f32.gmra.mrb[42].mxu0 %vm288_vm1, %v11828_v7 }
0x207e   :  { %10441 = vmatprep.mubr.msk.f32.mxu0 %vm11775_vm0, %v11776_v30 }
0x2081   :  { %10442 = vmatmul.mubr.msk.f32.vlgmr.msra.gmra.mrb[44].mxu0 %vm390_vm3, %v13442_v55 }
0x2082   :  { %10444 = vmatprep.mubr.msk.f32.mxu0 %vm11775_vm0, %v11776_v30 }
0x2085   :  { %10445 = vmatmul.mubr.msk.f32.gmra.mrb[46].mxu0 %vm390_vm3, %v13443_v36 }
0x2086   :  { %10447 = vmatprep.mubr.msk.f32.mxu0 %vm11775_vm0, %v11776_v30 }
0x2089   :  { %10448 = vmatmul.mubr.msk.f32.gmra.mrb[48].mxu0 %vm390_vm3, %v13444_v60 }
0x208a   :  { %10475 = vmatprep.mubr.msk.f32.mxu0 %vm11775_vm0, %v11776_v30 }
0x2148   :  { %v5309_v22 = vpop.f32.mrb[38].mxu0 }
0x2149   :  { %v10409_v49 = vpop.f32.mrb[39].mxu0  ;;  %10425 = vmatmul.mubr.msk.f32.vlgmr.msra.gmra.mrb[36].mxu1 %vm390_vm3, %v5309_v22 }
0x214a   :  { %10427 = vmatprep.mubr.msk.f32.mxu1 %vm11775_vm0, %v11776_v30  ;;  %11226 = vmatpush3.bf16.msra.mxu1 %v11225_v37 }
0x214b   :  { %11227 = vmatprep.subr.bf16.mxu1 %v11774_v63 }
0x214c   :  { %v5314_v61 = vpop.f32.mrb[40].mxu0 }
0x214d   :  { %v10412_v29 = vpop.f32.mrb[41].mxu0  ;;  %10428 = vmatmul.mubr.msk.f32.gmra.mrb[38].mxu1 %vm390_vm3, %v5314_v61 }
0x214e   :  { %10430 = vmatprep.mubr.msk.f32.mxu1 %vm11775_vm0, %v11776_v30  ;;  %11229 = vmatpush3.bf16.msra.mxu1 %v11228_v51 }
0x214f   :  { %11236 = vmatprep.subr.bf16.mxu1 %v11774_v63 }
0x2150   :  { %v5319_v54 = vpop.f32.mrb[42].mxu0 }
0x2151   :  { %v10415_v59 = vpop.f32.mrb[43].mxu0  ;;  %10431 = vmatmul.mubr.msk.f32.gmra.mrb[40].mxu1 %vm390_vm3, %v5319_v54 }
0x2152   :  { %10458 = vmatprep.mubr.msk.f32.mxu1 %vm11775_vm0, %v11776_v30 }
0x2154   :  { %v5490_v33 = vpop.f32.mrb[44].mxu0 }
0x2155   :  { %10459 = vmatmul.mubr.msk.f32.vlgmr.msra.gmra.mrb[42].mxu1 %vm390_vm3, %v4507_v48  ;;  %v10443_v32 = vpop.f32.mrb[45].mxu0 }
0x2156   :  { %10461 = vmatprep.mubr.msk.f32.mxu1 %vm11775_vm0, %v11776_v30 }
0x2158   :  { %v5495_v39 = vpop.f32.mrb[46].mxu0 }
0x2159   :  { %10462 = vmatmul.mubr.msk.f32.gmra.mrb[44].mxu1 %vm390_vm3, %v4508_v27  ;;  %v10446_v31 = vpop.f32.mrb[47].mxu0 }
0x215a   :  { %10464 = vmatprep.mubr.msk.f32.mxu1 %vm11775_vm0, %v11776_v30 }
0x215c   :  { %v5500_v40 = vpop.f32.mrb[48].mxu0 }
0x215d   :  { %10465 = vmatmul.mubr.msk.f32.gmra.mrb[46].mxu1 %vm390_vm3, %v4509_v57  ;;  %v10449_v41 = vpop.f32.mrb[49].mxu0 }
0x215e   :  { %10492 = vmatprep.mubr.msk.f32.mxu1 %vm11775_vm0, %v11776_v30  ;;  %v5633_v41 = vld [vmem:[%s13458_s25 + $0x8] sm:$0xff] }
0x221c   :  { %v5410_v21 = vpop.f32.mrb[36].mxu1 }
0x221d   :  { %v5491_v23 = vadd.f32 %v5490_v33, %v5410_v21  ;;  %v10426_v42 = vpop.f32.mrb[37].mxu1 }
0x221e   :  { %v5635_v42 = vld [vmem:[%s13458_s25 + $0x18] sm:$0xff] }
0x2220   :  { %v5415_v38 = vpop.f32.mrb[38].mxu1 }
0x2221   :  { %v5496_v25 = vadd.f32 %v5495_v39, %v5415_v38  ;;  %v10429_v26 = vpop.f32.mrb[39].mxu1 }
0x2222   :  { %v5739_v26 = vld [vmem:[%s13459_s1 + $0x8] sm:$0xff] }
0x2224   :  { %v5420_v58 = vpop.f32.mrb[40].mxu1 }
0x2225   :  { %v5501_v43 = vadd.f32 %v5500_v40, %v5420_v58  ;;  %v10432_v45 = vpop.f32.mrb[41].mxu1  ;;  %v5632_v40 = vld [vmem:[%s13458_s25] sm:$0xff] }
0x2226   :  { %v11231_v21 = vpack.c.bf16 %v5633_v41, %v5632_v40 }
0x2228   :  { %v5579_v47 = vpop.f32.mrb[42].mxu1  ;;  %11232 = vmatpush3.bf16.msra.mxu0 %v11231_v21  ;;  %v5740_v21 = vld [vmem:[%s13459_s1 + $0x10] sm:$0xff] }
0x2229   :  { %v5593_v37 = vadd.f32 %v5579_v47, %v5491_v23  ;;  %v10460_v24 = vpop.f32.mrb[43].mxu1  ;;  %v5634_v23 = vld [vmem:[%s13458_s25 + $0x10] sm:$0xff]  ;;  %11233 = vmatprep.subr.bf16.mxu0 %v11774_v63 }
0x222a   :  { %v11234_v38 = vpack.c.bf16 %v5635_v42, %v5634_v23  ;;  %v5741_v23 = vld [vmem:[%s13459_s1 + $0x18] sm:$0xff] }
0x222b   :  { %v5596_v52 = vadd.f32 %v5593_v37, %v11864_v15  ;;  %v11240_v42 = vpack.c.bf16 %v5741_v23, %v5740_v21 }
0x222c   :  { %v5584_v22 = vpop.f32.mrb[44].mxu1  ;;  %11235 = vmatpush3.bf16.msra.mxu0 %v11234_v38 }
0x222d   :  { %v5594_v49 = vadd.f32 %v5584_v22, %v5496_v25  ;;  %v10463_v51 = vpop.f32.mrb[45].mxu1  ;;  %v5599_v61 = vmul.f32 %v5596_v52, %v5596_v52  ;;  %11242 = vmatprep.subr.bf16.mxu0 %v11774_v63  ;;  %v5738_v25 = vld [vmem:[%s13459_s1] sm:$0xff] }
0x222e   :  { %v11237_v58 = vpack.c.bf16 %v5739_v26, %v5738_v25  ;;  %v4323_v25 = vmul.f32 0.5, %v13429_v34 }
0x222f   :  { %v5597_v29 = vadd.f32 %v5594_v49, %v11866_v16  ;;  %v5602_v54 = vsel %vm390_vm3, %v5599_v61, 0.0 }
0x2230   :  { %v5589_v59 = vpop.f32.mrb[46].mxu1  ;;  %5603 = vadd.xlane.f32.xlu1 %v5602_v54  ;;  %11238 = vmatpush3.bf16.msra.mxu1 %v11237_v58  ;;  %v4322_v58 = vmul.f32 0.5, %v13430_v35 }
0x2231   :  { %v5595_v48 = vadd.f32 %v5589_v59, %v5501_v43  ;;  %v10466_v27 = vpop.f32.mrb[47].mxu1  ;;  %v5600_v57 = vmul.f32 %v5597_v29, %v5597_v29  ;;  %11239 = vmatprep.subr.bf16.mxu1 %v11774_v63 }
0x2233   :  { %v5598_v33 = vadd.f32 %v5595_v48, %v11868_v17  ;;  %v5605_v32 = vsel %vm390_vm3, %v5600_v57, 0.0 }
0x2234   :  { %5606 = vadd.xlane.f32.xlu0 %v5605_v32  ;;  %11241 = vmatpush3.bf16.msra.mxu1 %v11240_v42 }
0x2235   :  { %v5601_v39 = vmul.f32 %v5598_v33, %v5598_v33  ;;  %11248 = vmatprep.subr.bf16.mxu1 %v11774_v63 }
0x2237   :  { %v5608_v31 = vsel %vm390_vm3, %v5601_v39, 0.0 }
0x2238   :  { %5609 = vadd.xlane.f32.xlu1 %v5608_v31 }
0x22bd   :  { %v5604_v43 = vpop.xlane.xlu1 %5603 }
0x22be   :  { %v5611_v45 = vmul.f32 0.03125, %v5604_v43  ;;  %v9109_v43 = vld [vmem:[%s13460_s29] ss:$0 sm:$0xff] }
0x22c0   :  { %v5614_v47 = vadd.f32 1e-06, %v5611_v45  ;;  %v5732_v45 = vmul.f32 0.5, %v13442_v55 }
0x22c1   :  { %v5607_v37 = vpop.xlane.xlu0 %5606 }
0x22c2   :  { %11597 = vrsqrt.f32 %v5614_v47  ;;  %v5612_v24 = vmul.f32 0.03125, %v5607_v37 }
0x22c4   :  { %v5615_v22 = vadd.f32 1e-06, %v5612_v24 }
0x22c5   :  { %v5610_v49 = vpop.xlane.xlu1 %5609 }
0x22c6   :  { %11599 = vrsqrt.f32 %v5615_v22  ;;  %v5613_v51 = vmul.f32 0.03125, %v5610_v49 }
0x22c8   :  { %v5616_v61 = vadd.f32 1e-06, %v5613_v51 }
0x22ca   :  { %11601 = vrsqrt.f32 %v5616_v61 }
0x22cc   :  { %v11598_v54 = vpop.eup %11597 }
0x22cd   :  { %v5620_v59 = vmul.f32 %v11598_v54, %v5596_v52  ;;  %v5734_v54 = vmul.f32 0.5, %v13444_v60  ;;  %v6226_v60 = vld [vmem:[%s11846_s13 + $0x20] sm:$0xff] }
0x22cf   :  { %vm5623_vm15 = vcmp.ge.f32.partialorder %v5620_v59, 0.0  ;;  %v5626_v48 = vmul.f32 0.01, %v5620_v59 }
0x22d0   :  { %v11600_v27 = vpop.eup %11599 }
0x22d1   :  { %v5629_v57 = vsel %vm5623_vm15, %v5620_v59, %v5626_v48  ;;  %v5621_v32 = vmul.f32 %v11600_v27, %v5597_v29 }
0x22d2   :  { %10476 = vmatmul.mubr.msk.f32.vlgmr.msra.gmra.mrb[50].mxu0 %vm390_vm3, %v5629_v57  ;;  %v6227_v57 = vld [vmem:[%s11846_s13 + $0x28] sm:$0xff] }
0x22d3   :  { %10478 = vmatprep.mubr.msk.f32.mxu0 %vm11775_vm0, %v11776_v30  ;;  %vm5624_vm4 = vcmp.ge.f32.partialorder %v5621_v32, 0.0  ;;  %v5627_v39 = vmul.f32 0.01, %v5621_v32 }
0x22d4   :  { %v11602_v31 = vpop.eup %11601 }
0x22d5   :  { %v5630_v40 = vsel %vm5624_vm4, %v5621_v32, %v5627_v39  ;;  %v5622_v41 = vmul.f32 %v11602_v31, %v5598_v33  ;;  %v9075_v33 = vld [vmem:[%s11915_s2] ss:$0 sm:$0xff]  ;;  %v11252_v32 = vpack.c.bf16 %v6227_v57, %v6226_v60  ;;  %v6228_v39 = vld [vmem:[%s11846_s13 + $0x30] sm:$0xff]  ;;  %v6229_v31 = vld [vmem:[%s11846_s13 + $0x38] sm:$0xff]  ;;  %s13461_s2 = sld [smem:[#allocation7_spill]] }
0x22d6   :  { %10479 = vmatmul.mubr.msk.f32.gmra.mrb[52].mxu0 %vm390_vm3, %v5630_v40  ;;  %v4319_v38 = vadd.f32 %v12647_v44, %v9075_v33  ;;  %v4314_v26 = vadd.f32 %v9075_v33, %v12649_v46  ;;  %v5733_v44 = vmul.f32 0.5, %v13443_v36  ;;  %v11255_v40 = vpack.c.bf16 %v6229_v31, %v6228_v39  ;;  %v5871_v60 = vld [vmem:[%s12000_s6] sm:$0xff]  ;;  %v5872_v57 = vld [vmem:[%s12000_s6 + $0x8] sm:$0xff]  ;;  %v5873_v39 = vld [vmem:[%s12000_s6 + $0x10] sm:$0xff] }
0x22d7   :  { %10481 = vmatprep.mubr.msk.f32.mxu0 %vm11775_vm0, %v11776_v30  ;;  %vm5625_vm5 = vcmp.ge.f32.partialorder %v5622_v41, 0.0  ;;  %v5628_v52 = vmul.f32 0.01, %v5622_v41  ;;  %v5874_v31 = vld [vmem:[%s12000_s6 + $0x18] sm:$0xff] }
0x22d8   :  { %v12861_v47 = vadd.f32 %v4323_v25, %v4319_v38  ;;  %v12863_v37 = vadd.f32 %v4322_v58, %v4314_v26  ;;  %v6230_v58 = vld [vmem:[%s11846_s13 + $0x40] sm:$0xff] }
0x22d9   :  { %v5631_v29 = vsel %vm5625_vm5, %v5622_v41, %v5628_v52  ;;  %v9113_v41 = vld [vmem:[%s11995_s19] ss:$0 sm:$0xff] }
0x22da   :  { %10482 = vmatmul.mubr.msk.f32.gmra.mrb[54].mxu0 %vm390_vm3, %v5631_v29  ;;  %v11249_v34 = vpack.c.bf16 %v12861_v47, %v12863_v37 }
0x22db   :  { %10509 = vmatprep.mubr.msk.f32.mxu0 %vm11775_vm0, %v11776_v30 }
0x23a5   :  { %v5718_v24 = vpop.f32.mrb[50].mxu0 }
0x23a6   :  { %v5719_v22 = vadd.f32 %v9109_v43, %v5718_v24  ;;  %v10477_v49 = vpop.f32.mrb[51].mxu0 }
0x23a8   :  { %v12865_v51 = vadd.f32 %v5732_v45, %v5719_v22 }
0x23a9   :  { %v5723_v46 = vpop.f32.mrb[52].mxu0 }
0x23aa   :  { %v5724_v61 = vadd.f32 %v9109_v43, %v5723_v46  ;;  %v10480_v35 = vpop.f32.mrb[53].mxu0  ;;  %10493 = vmatmul.mubr.msk.f32.vlgmr.msra.gmra.mrb[48].mxu1 %vm390_vm3, %v12865_v51  ;;  %v6232_v46 = vld [vmem:[%s11846_s13 + $0x50] sm:$0xff] }
0x23ab   :  { %11250 = vmatpush3.bf16.msra.mxu1 %v11249_v34  ;;  %10495 = vmatprep.mubr.msk.f32.mxu1 %vm11775_vm0, %v11776_v30 }
0x23ac   :  { %v12874_v55 = vadd.f32 %v5733_v44, %v5724_v61  ;;  %11251 = vmatprep.subr.bf16.mxu1 %v11774_v63  ;;  %v6233_v61 = vld [vmem:[%s11846_s13 + $0x58] sm:$0xff] }
0x23ad   :  { %v5728_v36 = vpop.f32.mrb[54].mxu0 }
0x23ae   :  { %v5729_v59 = vadd.f32 %v9109_v43, %v5728_v36  ;;  %v10483_v48 = vpop.f32.mrb[55].mxu0  ;;  %10496 = vmatmul.mubr.msk.f32.gmra.mrb[50].mxu1 %vm390_vm3, %v12874_v55  ;;  %v6231_v43 = vld [vmem:[%s11846_s13 + $0x48] sm:$0xff] }
0x23af   :  { %10498 = vmatprep.mubr.msk.f32.mxu1 %vm11775_vm0, %v11776_v30  ;;  %v11264_v44 = vpack.c.bf16 %v6231_v43, %v6230_v58  ;;  %v12932_v48 = vpack.c.bf16 %v12874_v55, %v12865_v51 }
0x23b0   :  { %v12882_v27 = vadd.f32 %v5734_v54, %v5729_v59  ;;  %v11267_v59 = vpack.c.bf16 %v6233_v61, %v6232_v46  ;;  %v5160_v61 = vmul.f32 0.5, %v13439_v53 }
0x23b2   :  { %10499 = vmatmul.mubr.msk.f32.gmra.mrb[52].mxu1 %vm390_vm3, %v12882_v27 }
0x23b3   :  { %10522 = vmatprep.mubr.msk.f32.mxu1 %vm11775_vm0, %v11776_v30 }
0x23b6   :  { %10523 = vmatmul.mubr.msk.f32.vlgmr.msra.gmra.mrb[54].mxu1 %vm198_vm2, %v11808_v0 }
0x23b7   :  { %10525 = vmatprep.mubr.msk.f32.mxu1 %vm11775_vm0, %v11776_v30  ;;  %11253 = vmatpush3.bf16.msra.mxu1 %v11252_v32  ;;  %v11243_v32 = vpack.c.bf16 %v5872_v57, %v5871_v60 }
0x23b8   :  { %11254 = vmatprep.subr.bf16.mxu1 %v11774_v63 }
0x23b9   :  { %11244 = vmatpush3.bf16.msra.mxu0 %v11243_v32 }
0x23ba   :  { %10526 = vmatmul.mubr.msk.f32.gmra.mrb[56].mxu1 %vm198_vm2, %v11810_v1  ;;  %11245 = vmatprep.subr.bf16.mxu0 %v11774_v63 }
0x23bb   :  { %10528 = vmatprep.mubr.msk.f32.mxu1 %vm11775_vm0, %v11776_v30  ;;  %11256 = vmatpush3.bf16.msra.mxu1 %v11255_v40  ;;  %v11246_v40 = vpack.c.bf16 %v5874_v31, %v5873_v39  ;;  %v6222_v39 = vld [vmem:[%s11846_s13] sm:$0xff]  ;;  %v6223_v31 = vld [vmem:[%s11846_s13 + $0x8] sm:$0xff] }
0x23bc   :  { %11263 = vmatprep.subr.bf16.mxu1 %v11774_v63 }
0x23bd   :  { %11247 = vmatpush3.bf16.msra.mxu0 %v11246_v40 }
0x23be   :  { %10529 = vmatmul.mubr.msk.f32.gmra.mrb[58].mxu1 %vm198_vm2, %v11812_v2  ;;  %10531 = vmatprep.subr.mxu0 %v11776_v30 }
0x23bf   :  { %10550 = vmatprep.mubr.msk.f32.mxu1 %vm11775_vm0, %v11776_v30 }
0x247d   :  { %v5824_v52 = vpop.f32.mrb[48].mxu1 }
0x247e   :  { %v12907_v29 = vadd.f32 %v9113_v41, %v5824_v52  ;;  %v10494_v21 = vpop.f32.mrb[49].mxu1 }
0x2480   :  { %v5838_v23 = vmul.f32 %v12907_v29, %v12907_v29 }
0x2481   :  { %v5829_v42 = vpop.f32.mrb[50].mxu1 }
0x2482   :  { %v12911_v33 = vadd.f32 %v9113_v41, %v5829_v42  ;;  %v10497_v38 = vpop.f32.mrb[51].mxu1  ;;  %v5841_v25 = vsel %vm390_vm3, %v5838_v23, 0.0 }
0x2483   :  { %5842 = vadd.xlane.f32.xlu1 %v5841_v25 }
0x2484   :  { %v5839_v26 = vmul.f32 %v12911_v33, %v12911_v33 }
0x2485   :  { %v5834_v45 = vpop.f32.mrb[52].mxu1 }
0x2486   :  { %v12918_v24 = vadd.f32 %v9113_v41, %v5834_v45  ;;  %v10500_v22 = vpop.f32.mrb[53].mxu1  ;;  %v5844_v49 = vsel %vm390_vm3, %v5839_v26, 0.0 }
0x2487   :  { %5845 = vadd.xlane.f32.xlu1 %v5844_v49 }
0x2488   :  { %v5840_v34 = vmul.f32 %v12918_v24, %v12918_v24 }
0x2489   :  { %v6128_v35 = vpop.f32.mrb[54].mxu1 }
0x248a   :  { %10551 = vmatmul.mubr.msk.f32.vlgmr.msra.gmra.mrb[60].mxu1 %vm390_vm3, %v6128_v35  ;;  %v5847_v54 = vsel %vm390_vm3, %v5840_v34, 0.0  ;;  %v10524_v36 = vpop.f32.mrb[55].mxu1 }
0x248b   :  { %11265 = vmatpush3.bf16.msra.mxu1 %v11264_v44  ;;  %5848 = vadd.xlane.f32.xlu1 %v5847_v54  ;;  %v9093_v44 = vld [vmem:[%s13461_s2] ss:$0 sm:$0xff] }
0x248c   :  { %11266 = vmatprep.subr.bf16.mxu1 %v11774_v63  ;;  %10553 = vmatprep.mubr.msk.f32.mxu1 %vm11775_vm0, %v11776_v30  ;;  %v5157_v46 = vadd.f32 %v9093_v44, %v12760_v62 }
0x248d   :  { %v6133_v41 = vpop.f32.mrb[56].mxu1 }
0x248e   :  { %10554 = vmatmul.mubr.msk.f32.gmra.mrb[62].mxu1 %vm390_vm3, %v6133_v41  ;;  %v10527_v52 = vpop.f32.mrb[57].mxu1  ;;  %v11258_v41 = vpack.c.bf16 %v6223_v31, %v6222_v39 }
0x248f   :  { %11268 = vmatpush3.bf16.msra.mxu1 %v11267_v59  ;;  %10556 = vmatprep.mubr.msk.f32.mxu1 %vm11775_vm0, %v11776_v30  ;;  %v12951_v59 = vadd.f32 %v5160_v61, %v5157_v46  ;;  %v6224_v52 = vld [vmem:[%s11846_s13 + $0x10] sm:$0xff] }
0x2490   :  { %11276 = vmatprep.subr.bf16.mxu1 %v12932_v48 }
0x2491   :  { %v6138_v21 = vpop.f32.mrb[58].mxu1 }
0x2492   :  { %10557 = vmatmul.mubr.msk.f32.gmra.mrb[64].mxu1 %vm390_vm3, %v6138_v21  ;;  %v10530_v23 = vpop.f32.mrb[59].mxu1  ;;  %v6225_v21 = vld [vmem:[%s11846_s13 + $0x18] sm:$0xff]  ;;  %s13463_s13 = smov 4  }
0x2493   :  { %10584 = vmatprep.mubr.msk.f32.mxu1 %vm11775_vm0, %v11776_v30 }
0x2510   :  { %v5843_v42 = vpop.xlane.xlu1 %5842 }
0x2511   :  { %v5850_v38 = vmul.f32 0.03125, %v5843_v42 }
0x2513   :  { %v5853_v25 = vadd.f32 1e-06, %v5850_v38 }
0x2514   :  { %v5846_v26 = vpop.xlane.xlu1 %5845 }
0x2515   :  { %11603 = vrsqrt.f32 %v5853_v25  ;;  %v5851_v58 = vmul.f32 0.03125, %v5846_v26 }
0x2517   :  { %v5854_v43 = vadd.f32 1e-06, %v5851_v58 }
0x2518   :  { %v5849_v45 = vpop.xlane.xlu1 %5848 }
0x2519   :  { %11605 = vrsqrt.f32 %v5854_v43  ;;  %v5852_v22 = vmul.f32 0.03125, %v5849_v45 }
0x251b   :  { %v5855_v49 = vadd.f32 1e-06, %v5852_v22 }
0x251d   :  { %11607 = vrsqrt.f32 %v5855_v49 }
0x251f   :  { %v11604_v34 = vpop.eup %11603 }
0x2520   :  { %v5859_v35 = vmul.f32 %v11604_v34, %v12907_v29 }
0x2522   :  { %vm5862_vm6 = vcmp.ge.f32.partialorder %v5859_v35, 0.0  ;;  %v5865_v54 = vmul.f32 0.01, %v5859_v35 }
0x2523   :  { %v11606_v36 = vpop.eup %11605 }
0x2524   :  { %v5868_v60 = vsel %vm5862_vm6, %v5859_v35, %v5865_v54  ;;  %v5860_v57 = vmul.f32 %v11606_v36, %v12911_v33 }
0x2525   :  { %10510 = vmatmul.mubr.msk.f32.vlgmr.msra.gmra.mrb[56].mxu0 %vm390_vm3, %v5868_v60 }
0x2526   :  { %10532 = vmatpush3.msra.mxu0 %v12951_v59  ;;  %10512 = vmatprep.mubr.msk.f32.mxu0 %vm11775_vm0, %v11776_v30  ;;  %vm5863_vm8 = vcmp.ge.f32.partialorder %v5860_v57, 0.0  ;;  %v5866_v53 = vmul.f32 0.01, %v5860_v57 }
0x2527   :  { %v11608_v62 = vpop.eup %11607  ;;  %11257 = vmatprep.subr.bf16.mxu0 %v11774_v63 }
0x2528   :  { %v5869_v29 = vsel %vm5863_vm8, %v5860_v57, %v5866_v53  ;;  %v5861_v32 = vmul.f32 %v11608_v62, %v12918_v24  ;;  %v11261_v24 = vpack.c.bf16 %v6225_v21, %v6224_v52 }
0x2529   :  { %10513 = vmatmul.mubr.msk.f32.gmra.mrb[58].mxu0 %vm390_vm3, %v5869_v29 }
0x252a   :  { %10515 = vmatprep.mubr.msk.f32.mxu0 %vm11775_vm0, %v11776_v30  ;;  %vm5864_vm9 = vcmp.ge.f32.partialorder %v5861_v32, 0.0  ;;  %v5867_v33 = vmul.f32 0.01, %v5861_v32 }
0x252c   :  { %v5870_v40 = vsel %vm5864_vm9, %v5861_v32, %v5867_v33 }
0x252d   :  { %10516 = vmatmul.mubr.msk.f32.gmra.mrb[60].mxu0 %vm390_vm3, %v5870_v40 }
0x252e   :  { %10533 = vmatprep.mubr.msk.f32.mxu0 %vm11775_vm0, %v11776_v30 }
0x2531   :  { %10534 = vmatmul.mubr.msk.f32.vlgmr.msra.gmra.mrb[62].mxu0 %vm288_vm1, %v11821_v5 }
0x2532   :  { %10536 = vmatprep.mubr.msk.f32.mxu0 %vm11775_vm0, %v11776_v30  ;;  %11259 = vmatpush3.bf16.msra.mxu0 %v11258_v41 }
0x2533   :  { %11260 = vmatprep.subr.bf16.mxu0 %v11774_v63 }
0x2535   :  { %10537 = vmatmul.mubr.msk.f32.gmra.mrb[64].mxu0 %vm288_vm1, %v11826_v6 }
0x2536   :  { %10539 = vmatprep.mubr.msk.f32.mxu0 %vm11775_vm0, %v11776_v30  ;;  %11262 = vmatpush3.bf16.msra.mxu0 %v11261_v24 }
0x2537   :  { %11269 = vmatprep.subr.bf16.mxu0 %v11774_v63 }
0x2539   :  { %10540 = vmatmul.mubr.msk.f32.gmra.mrb[66].mxu0 %vm288_vm1, %v11828_v7 }
0x253a   :  { %10567 = vmatprep.mubr.msk.f32.mxu0 %vm11775_vm0, %v11776_v30 }
0x253d   :  { %10568 = vmatmul.mubr.msk.f32.vlgmr.msra.gmra.mrb[68].mxu0 %vm390_vm3, %v12865_v51 }
0x253e   :  { %10570 = vmatprep.mubr.msk.f32.mxu0 %vm11775_vm0, %v11776_v30 }
0x2541   :  { %10571 = vmatmul.mubr.msk.f32.gmra.mrb[70].mxu0 %vm390_vm3, %v12874_v55 }
0x2542   :  { %10573 = vmatprep.mubr.msk.f32.mxu0 %vm11775_vm0, %v11776_v30 }
0x2545   :  { %10574 = vmatmul.mubr.msk.f32.gmra.mrb[72].mxu0 %vm390_vm3, %v12882_v27 }
0x2546   :  { %10601 = vmatprep.mubr.msk.f32.mxu0 %vm11775_vm0, %v11776_v30 }
0x255d   :  { %v6309_v23 = vpop.f32.mrb[60].mxu1 }
0x255e   :  { %v10552_v42 = vpop.f32.mrb[61].mxu1 }
0x2561   :  { %v6314_v38 = vpop.f32.mrb[62].mxu1 }
0x2562   :  { %v10555_v25 = vpop.f32.mrb[63].mxu1 }
0x2565   :  { %v6319_v26 = vpop.f32.mrb[64].mxu1 }
0x2566   :  { %v10558_v58 = vpop.f32.mrb[65].mxu1 }
0x25f8   :  { %v12996_v43 = vpop.f32.mrb[56].mxu0 }
0x25f9   :  { %v10511_v45 = vpop.f32.mrb[57].mxu0 }
0x25fc   :  { %v12998_v22 = vpop.f32.mrb[58].mxu0 }
0x25fd   :  { %v10514_v49 = vpop.f32.mrb[59].mxu0 }
0x2600   :  { %v13000_v44 = vpop.f32.mrb[60].mxu0 }
0x2601   :  { %v10517_v34 = vpop.f32.mrb[61].mxu0 }
0x2604   :  { %v6208_v46 = vpop.f32.mrb[62].mxu0 }
0x2605   :  { %v10535_v61 = vpop.f32.mrb[63].mxu0  ;;  %10585 = vmatmul.mubr.msk.f32.vlgmr.msra.gmra.mrb[66].mxu1 %vm390_vm3, %v6208_v46 }
0x2606   :  { %11278 = vmatpush3.bf16.msra.mxu1 %v12932_v48  ;;  %10587 = vmatprep.mubr.msk.f32.mxu1 %vm11775_vm0, %v11776_v30 }
0x2607   :  { %10614 = vmatprep.subr.mxu1 %v12882_v27 }
0x2608   :  { %v6213_v35 = vpop.f32.mrb[64].mxu0 }
0x2609   :  { %v10538_v54 = vpop.f32.mrb[65].mxu0  ;;  %10588 = vmatmul.mubr.msk.f32.gmra.mrb[68].mxu1 %vm390_vm3, %v6213_v35 }
0x260a   :  { %10615 = vmatpush3.msra.mxu1 %v12882_v27  ;;  %10590 = vmatprep.mubr.msk.f32.mxu1 %vm11775_vm0, %v11776_v30 }
0x260c   :  { %v6218_v36 = vpop.f32.mrb[66].mxu0 }
0x260d   :  { %10591 = vmatmul.mubr.msk.f32.gmra.mrb[70].mxu1 %vm390_vm3, %v6218_v36  ;;  %v10541_v60 = vpop.f32.mrb[67].mxu0  ;;  %v6531_v36 = vld [vmem:[%s11855_s26] sm:$0xff] }
0x260e   :  { %10616 = vmatprep.mubr.msk.f32.mxu1 %vm816_vm7, %v11817_v3 }
0x2610   :  { %v6389_v57 = vpop.f32.mrb[68].mxu0 }
0x2611   :  { %v6390_v53 = vadd.f32 %v6389_v57, %v6309_v23  ;;  %v10569_v62 = vpop.f32.mrb[69].mxu0  ;;  %10617 = vmatmul.mubr.msk.f32.vlgmr.msra.gmra.mrb[72].mxu1 %vm816_vm7, %v11819_v4  ;;  %v6533_v57 = vld [vmem:[%s11855_s26 + $0x10] sm:$0xff] }
0x2614   :  { %v6394_v29 = vpop.f32.mrb[70].mxu0 }
0x2615   :  { %v6395_v32 = vadd.f32 %v6394_v29, %v6314_v38  ;;  %v10572_v33 = vpop.f32.mrb[71].mxu0 }
0x2618   :  { %v6399_v39 = vpop.f32.mrb[72].mxu0 }
0x2619   :  { %v6400_v31 = vadd.f32 %v6399_v39, %v6319_v26  ;;  %v10575_v40 = vpop.f32.mrb[73].mxu0 }
0x26d8   :  { %v6478_v41 = vpop.f32.mrb[66].mxu1 }
0x26d9   :  { %v6492_v52 = vadd.f32 %v6478_v41, %v6390_v53  ;;  %v10586_v21 = vpop.f32.mrb[67].mxu1  ;;  %v6534_v53 = vld [vmem:[%s11855_s26 + $0x18] sm:$0xff] }
0x26da   :  { %v11273_v62 = vpack.c.bf16 %v6534_v53, %v6533_v57 }
0x26db   :  { %v6495_v24 = vadd.f32 %v6492_v52, %v11837_v9 }
0x26dc   :  { %v6483_v42 = vpop.f32.mrb[68].mxu1 }
0x26dd   :  { %v6493_v25 = vadd.f32 %v6483_v42, %v6395_v32  ;;  %v10589_v58 = vpop.f32.mrb[69].mxu1  ;;  %v6498_v23 = vmul.f32 %v6495_v24, %v6495_v24 }
0x26df   :  { %v6496_v45 = vadd.f32 %v6493_v25, %v11839_v10  ;;  %v6501_v38 = vsel %vm390_vm3, %v6498_v23, 0.0  ;;  %v6532_v10 = vld [vmem:[%s11855_s26 + $0x8] sm:$0xff] }
0x26e0   :  { %6502 = vadd.xlane.f32.xlu1 %v6501_v38  ;;  %v6488_v26 = vpop.f32.mrb[70].mxu1  ;;  %v11270_v60 = vpack.c.bf16 %v6532_v10, %v6531_v36  ;;  %v6806_v10 = vld [vmem:[%s11873_s4 + $0x38] sm:$0xff] }
0x26e1   :  { %v6494_v49 = vadd.f32 %v6488_v26, %v6400_v31  ;;  %v6499_v34 = vmul.f32 %v6496_v45, %v6496_v45  ;;  %v10592_v46 = vpop.f32.mrb[71].mxu1 }
0x26e2   :  { %11271 = vmatpush3.bf16.msra.mxu0 %v11270_v60  ;;  %v9139_v60 = vld [vmem:[%s11862_s30] ss:$0 sm:$0xff] }
0x26e3   :  { %v6497_v61 = vadd.f32 %v6494_v49, %v11841_v11  ;;  %v6504_v9 = vsel %vm390_vm3, %v6499_v34, 0.0  ;;  %11272 = vmatprep.subr.bf16.mxu0 %v11774_v63 }
0x26e4   :  { %6505 = vadd.xlane.f32.xlu1 %v6504_v9  ;;  %v6803_v9 = vld [vmem:[%s11873_s4 + $0x20] sm:$0xff] }
0x26e5   :  { %v6500_v35 = vmul.f32 %v6497_v61, %v6497_v61 }
0x26e6   :  { %11274 = vmatpush3.bf16.msra.mxu0 %v11273_v62 }
0x26e7   :  { %v6507_v54 = vsel %vm390_vm3, %v6500_v35, 0.0  ;;  %v6804_v35 = vld [vmem:[%s11873_s4 + $0x28] sm:$0xff] }
0x26e8   :  { %6508 = vadd.xlane.f32.xlu0 %v6507_v54  ;;  %v6805_v54 = vld [vmem:[%s11873_s4 + $0x30] sm:$0xff]  ;;  %v11283_v36 = vpack.c.bf16 %v6804_v35, %v6803_v9  ;;  %v10618_v9 = vpop.f32.mrb[72].mxu1 }
0x26e9   :  { %v6715_v35 = vpop.f32.mrb[73].mxu1 }
0x26ea   :  { %11284 = vmatprep.subr.bf16.mxu1 %v11283_v36 }
0x26eb   :  { %11286 = vmatpush3.bf16.msra.mxu1 %v11283_v36  ;;  %v6802_v36 = vld [vmem:[%s11873_s4 + $0x18] sm:$0xff] }
0x276d   :  { %v6503_v29 = vpop.xlane.xlu1 %6502 }
0x276e   :  { %v6510_v32 = vmul.f32 0.03125, %v6503_v29 }
0x2770   :  { %v6513_v11 = vadd.f32 1e-06, %v6510_v32 }
0x2771   :  { %v6506_v33 = vpop.xlane.xlu1 %6505 }
0x2772   :  { %11609 = vrsqrt.f32 %v6513_v11  ;;  %v6511_v39 = vmul.f32 0.03125, %v6506_v33 }
0x2774   :  { %v6514_v31 = vadd.f32 1e-06, %v6511_v39 }
0x2775   :  { %v6509_v40 = vpop.xlane.xlu0 %6508 }
0x2776   :  { %11611 = vrsqrt.f32 %v6514_v31  ;;  %v6512_v41 = vmul.f32 0.03125, %v6509_v40 }
0x2778   :  { %v6515_v52 = vadd.f32 1e-06, %v6512_v41 }
0x277a   :  { %11613 = vrsqrt.f32 %v6515_v52 }
0x277c   :  { %v11610_v21 = vpop.eup %11609 }
0x277d   :  { %v6519_v42 = vmul.f32 %v11610_v21, %v6495_v24 }
0x277f   :  { %vm6522_vm10 = vcmp.ge.f32.partialorder %v6519_v42, 0.0  ;;  %v6525_v25 = vmul.f32 0.01, %v6519_v42 }
0x2780   :  { %v11612_v58 = vpop.eup %11611 }
0x2781   :  { %v6528_v23 = vsel %vm6522_vm10, %v6519_v42, %v6525_v25  ;;  %v6520_v38 = vmul.f32 %v11612_v58, %v6496_v45 }
0x2782   :  { %10602 = vmatmul.mubr.msk.f32.vlgmr.msra.gmra.mrb[74].mxu0 %vm390_vm3, %v6528_v23 }
0x2783   :  { %10604 = vmatprep.mubr.msk.f32.mxu0 %vm11775_vm0, %v11776_v30  ;;  %vm6523_vm11 = vcmp.ge.f32.partialorder %v6520_v38, 0.0  ;;  %v6526_v26 = vmul.f32 0.01, %v6520_v38 }
0x2784   :  { %v11614_v49 = vpop.eup %11613 }
0x2785   :  { %v6529_v34 = vsel %vm6523_vm11, %v6520_v38, %v6526_v26  ;;  %v6521_v46 = vmul.f32 %v11614_v49, %v6497_v61  ;;  %v11287_v61 = vpack.c.bf16 %v6806_v10, %v6805_v54  ;;  %v6801_v54 = vld [vmem:[%s11873_s4 + $0x10] sm:$0xff] }
0x2786   :  { %10605 = vmatmul.mubr.msk.f32.gmra.mrb[76].mxu0 %vm390_vm3, %v6529_v34 }
0x2787   :  { %10607 = vmatprep.mubr.msk.f32.mxu0 %vm11775_vm0, %v11776_v30  ;;  %vm6524_vm12 = vcmp.ge.f32.partialorder %v6521_v46, 0.0  ;;  %v6527_v24 = vmul.f32 0.01, %v6521_v46  ;;  %11288 = vmatprep.subr.bf16.mxu1 %v11287_v61 }
0x2788   :  { %11290 = vmatpush3.bf16.msra.mxu1 %v11287_v61 }
0x2789   :  { %v6530_v45 = vsel %vm6524_vm12, %v6521_v46, %v6527_v24  ;;  %v6799_v46 = vld [vmem:[%s11873_s4] sm:$0xff]  ;;  %v6800_v24 = vld [vmem:[%s11873_s4 + $0x8] sm:$0xff] }
0x278a   :  { %10608 = vmatmul.mubr.msk.f32.gmra.mrb[78].mxu0 %vm390_vm3, %v6530_v45  ;;  %v11291_v45 = vpack.c.bf16 %v6800_v24, %v6799_v46 }
0x278b   :  { %10625 = vmatprep.mubr.msk.f32.mxu0 %vm816_vm7, %v11817_v3 }
0x278c   :  { %11292 = vmatprep.subr.bf16.mxu1 %v11291_v45 }
0x2855   :  { %v6617_v57 = vpop.f32.mrb[74].mxu0 }
0x2856   :  { %v6618_v53 = vadd.f32 %v9139_v60, %v6617_v57  ;;  %v10603_v62 = vpop.f32.mrb[75].mxu0 }
0x2858   :  { %v9143_v29 = vmul.f32 -1.442695, %v6618_v53 }
0x2859   :  { %v6622_v32 = vpop.f32.mrb[76].mxu0 }
0x285a   :  { %11615 = vpow2.f32 %v9143_v29  ;;  %v6623_v11 = vadd.f32 %v9139_v60, %v6622_v32  ;;  %v10606_v33 = vpop.f32.mrb[77].mxu0 }
0x285c   :  { %v9144_v3 = vmul.f32 -1.442695, %v6623_v11 }
0x285d   :  { %v6627_v39 = vpop.f32.mrb[78].mxu0 }
0x285e   :  { %11617 = vpow2.f32 %v9144_v3  ;;  %v6628_v31 = vadd.f32 %v9139_v60, %v6627_v39  ;;  %v10609_v40 = vpop.f32.mrb[79].mxu0  ;;  %v11295_v60 = vpack.c.bf16 %v6802_v36, %v6801_v54  ;;  %v7000_v39 = vld [vmem:[%s11895_s5] sm:$0xff] }
0x285f   :  { %v7002_v40 = vld [vmem:[%s11895_s5 + $0x10] sm:$0xff] }
0x2860   :  { %v9145_v41 = vmul.f32 -1.442695, %v6628_v31  ;;  %v7001_v31 = vld [vmem:[%s11895_s5 + $0x8] sm:$0xff] }
0x2862   :  { %11619 = vpow2.f32 %v9145_v41  ;;  %v11299_v41 = vpack.c.bf16 %v7001_v31, %v7000_v39  ;;  %v7094_v39 = vld [vmem:[%s11905_s23 + $0x10] sm:$0xff]  ;;  %v7095_v31 = vld [vmem:[%s11905_s23 + $0x18] sm:$0xff] }
0x2864   :  { %v11616_v52 = vpop.eup %11615 }
0x2865   :  { %v6640_v21 = vadd.f32 1.0, %v11616_v52  ;;  %v7003_v52 = vld [vmem:[%s11895_s5 + $0x18] sm:$0xff] }
0x2867   :  { %11621 = vrcp.f32 %v6640_v21  ;;  %v11303_v21 = vpack.c.bf16 %v7003_v52, %v7002_v40 }
0x2868   :  { %v11618_v42 = vpop.eup %11617 }
0x2869   :  { %v6641_v25 = vadd.f32 1.0, %v11618_v42  ;;  %v7096_v42 = vld [vmem:[%s11905_s23 + $0x20] sm:$0xff] }
0x286b   :  { %11623 = vrcp.f32 %v6641_v25  ;;  %v7097_v25 = vld [vmem:[%s11905_s23 + $0x28] sm:$0xff] }
0x286c   :  { %v11620_v58 = vpop.eup %11619 }
0x286d   :  { %v6642_v23 = vadd.f32 1.0, %v11620_v58  ;;  %v11307_v58 = vpack.c.bf16 %v7097_v25, %v7096_v42 }
0x286f   :  { %11625 = vrcp.f32 %v6642_v23 }
0x2871   :  { %v11622_v38 = vpop.eup %11621 }
0x2875   :  { %v11624_v26 = vpop.eup %11623 }
0x2876   :  { %v13041_v49 = vpack.c.bf16 %v11624_v26, %v11622_v38 }
0x2878   :  { %11280 = vmatprep.subr.bf16.mxu0 %v13041_v49 }
0x2879   :  { %v13044_v34 = vpop.eup %11625  ;;  %11282 = vmatpush3.bf16.msra.mxu0 %v13041_v49 }
0x287a   :  { %10623 = vmatprep.subr.mxu0 %v13044_v34 }
0x287d   :  { %10624 = vmatpush3.msra.mxu0 %v13044_v34 }
0x287e   :  { %10626 = vmatmul.mubr.msk.f32.vlgmr.msra.gmra.mrb[80].mxu0 %vm816_vm7, %v11819_v4  ;;  %v9154_v4 = vld [vmem:[%s11884_s10] ss:$0 sm:$0xff]  ;;  %11300 = vmatprep.subr.bf16.mxu0 %v11299_v41 }
0x287f   :  { %11302 = vmatpush3.bf16.msra.mxu0 %v11299_v41 }
0x2880   :  { %11304 = vmatprep.subr.bf16.mxu0 %v11303_v21 }
0x2883   :  { %11306 = vmatpush3.bf16.msra.mxu0 %v11303_v21  ;;  %v11319_v21 = vpack.c.bf16 %v7095_v31, %v7094_v39 }
0x2884   :  { %11308 = vmatprep.subr.bf16.mxu0 %v11307_v58 }
0x2951   :  { %v10627_v10 = vpop.f32.mrb[80].mxu0 }
0x2952   :  { %v6790_v61 = vpop.f32.mrb[81].mxu0 }
0x2953   :  { %10636 = vmatprep.mubr.msk.f32.mxu1 %vm390_vm3, %v6790_v61 }
0x2954   :  { %10637 = vmatmul.mubr.msk.f32.vlgmr.msra.gmra.mrb[74].mxu1 %vm390_vm3, %v10627_v10 }
0x2955   :  { %11294 = vmatpush3.bf16.msra.mxu1 %v11291_v45  ;;  %10647 = vmatprep.mubr.msk.f32.mxu1 %vm390_vm3, %v6715_v35 }
0x2956   :  { %11296 = vmatprep.subr.bf16.mxu1 %v11295_v60 }
0x2959   :  { %11298 = vmatpush3.bf16.msra.mxu1 %v11295_v60 }
0x295c   :  { %10648 = vmatmul.mubr.msk.f32.vlgmr.msra.gmra.mrb[74].mxu1 %vm390_vm3, %v10618_v9 }
0x2a2f   :  { %v10649_v57 = vpop.f32.mrb[74].mxu1 }
0x2a30   :  { %v6977_v53 = vadd.f32 %v10649_v57, %v9154_v4  ;;  %v6960_v62 = vpop.f32.mrb[75].mxu1  ;;  %v7098_v57 = vld [vmem:[%s11905_s23 + $0x30] sm:$0xff] }
0x2a31   :  { %v6976_v29 = vadd.f32 %v9154_v4, %v6960_v62  ;;  %v7099_v62 = vld [vmem:[%s11905_s23 + $0x38] sm:$0xff] }
0x2a32   :  { %v6979_v32 = vmul.f32 %v6977_v53, %v6977_v53 }
0x2a33   :  { %v6978_v11 = vmul.f32 %v6976_v29, %v6976_v29 }
0x2a34   :  { %v6983_v33 = vsel %vm390_vm3, %v6979_v32, 0.0  ;;  %v7093_v32 = vld [vmem:[%s11905_s23 + $0x8] sm:$0xff] }
0x2a35   :  { %6984 = vadd.xlane.f32.xlu0 %v6983_v33  ;;  %v6980_v3 = vsel %vm390_vm3, %v6978_v11, 0.0  ;;  %v9155_v33 = vld [vmem:[%s11900_s9] ss:$0 sm:$0xff] }
0x2a36   :  { %6981 = vadd.xlane.f32.xlu1 %v6980_v3 }
0x2ac2   :  { %v6985_v23 = vpop.xlane.xlu0 %6984 }
0x2ac3   :  { %v6987_v38 = vmul.f32 0.03125, %v6985_v23  ;;  %v6982_v26 = vpop.xlane.xlu1 %6981  ;;  %v7287_v23 = vld [vmem:[%s11920_s3 + $0x8] sm:$0xff] }
0x2ac4   :  { %v6986_v46 = vmul.f32 0.03125, %v6982_v26 }
0x2ac5   :  { %v6989_v24 = vadd.f32 1e-06, %v6987_v38  ;;  %v7288_v38 = vld [vmem:[%s11920_s3 + $0x10] sm:$0xff] }
0x2ac6   :  { %v6988_v45 = vadd.f32 1e-06, %v6986_v46  ;;  %v7289_v46 = vld [vmem:[%s11920_s3 + $0x18] sm:$0xff] }
0x2ac7   :  { %11627 = vrsqrt.f32 %v6989_v24  ;;  %v11327_v24 = vpack.c.bf16 %v7289_v46, %v7288_v38 }
0x2ac8   :  { %11629 = vrsqrt.f32 %v6988_v45 }
0x2ad1   :  { %v11628_v9 = vpop.eup %11627 }
0x2ad2   :  { %v11630_v35 = vpop.eup %11629  ;;  %v6993_v54 = vmul.f32 %v11628_v9, %v6977_v53  ;;  %v11311_v53 = vpack.c.bf16 %v7099_v62, %v7098_v57 }
0x2ad3   :  { %v6992_v36 = vmul.f32 %v11630_v35, %v6976_v29  ;;  %v7092_v29 = vld [vmem:[%s11905_s23] sm:$0xff] }
0x2ad4   :  { %v6997_v10 = vmul.f32 0.01, %v6993_v54  ;;  %vm6995_vm14 = vcmp.ge.f32.partialorder %v6993_v54, 0.0  ;;  %v11315_v11 = vpack.c.bf16 %v7093_v32, %v7092_v29  ;;  %v7601_v29 = vld [vmem:[%s11930_s17] sm:$0xff]  ;;  %v7602_v32 = vld [vmem:[%s11930_s17 + $0x8] sm:$0xff] }
0x2ad5   :  { %vm6994_vm13 = vcmp.ge.f32.partialorder %v6992_v36, 0.0  ;;  %v6996_v61 = vmul.f32 0.01, %v6992_v36 }
0x2ad6   :  { %v6999_v4 = vsel %vm6995_vm14, %v6993_v54, %v6997_v10 }
0x2ad7   :  { %v6998_v60 = vsel %vm6994_vm13, %v6992_v36, %v6996_v61 }
0x2ad8   :  { %10658 = vmatprep.mubr.msk.f32.mxu0 %vm390_vm3, %v6998_v60 }
0x2ad9   :  { %10659 = vmatmul.mubr.msk.f32.vlgmr.msra.gmra.mrb[82].mxu0 %vm390_vm3, %v6999_v4 }
0x2ada   :  { %11310 = vmatpush3.bf16.msra.mxu0 %v11307_v58 }
0x2adb   :  { %11312 = vmatprep.subr.bf16.mxu0 %v11311_v53 }
0x2ade   :  { %11314 = vmatpush3.bf16.msra.mxu0 %v11311_v53 }
0x2adf   :  { %11316 = vmatprep.subr.bf16.mxu0 %v11315_v11 }
0x2bac   :  { %v10660_v3 = vpop.f32.mrb[82].mxu0 }
0x2bad   :  { %v7083_v40 = vpop.f32.mrb[83].mxu0  ;;  %v7089_v52 = vadd.f32 %v10660_v3, %v9155_v33  ;;  %v7604_v3 = vld [vmem:[%s11930_s17 + $0x18] sm:$0xff] }
0x2bae   :  { %v7084_v41 = vadd.f32 %v9155_v33, %v7083_v40  ;;  %v7603_v33 = vld [vmem:[%s11930_s17 + $0x10] sm:$0xff] }
0x2baf   :  { %v11350_v39 = vpack.c.bf16 %v7604_v3, %v7603_v33 }
0x2bb0   :  { %10669 = vmatprep.mubr.msk.f32.mxu0 %vm390_vm3, %v7084_v41 }
0x2bb1   :  { %10670 = vmatmul.mubr.msk.f32.vlgmr.msra.gmra.mrb[84].mxu0 %vm390_vm3, %v7089_v52 }
0x2bb2   :  { %11318 = vmatpush3.bf16.msra.mxu0 %v11315_v11  ;;  %10680 = vmatprep.mubr.msk.f32.mxu0 %vm390_vm3, %v12863_v37  ;;  %v11347_v11 = vpack.c.bf16 %v7602_v32, %v7601_v29  ;;  %v7862_v32 = vld [vmem:[%s13452_s20 + $0x20] sm:$0xff] }
0x2bb3   :  { %11320 = vmatprep.subr.bf16.mxu0 %v11319_v21 }
0x2bb6   :  { %11322 = vmatpush3.bf16.msra.mxu0 %v11319_v21  ;;  %v9162_v21 = vld [vmem:[%s11925_s15] ss:$0 sm:$0xff] }
0x2bb7   :  { %11334 = vmatprep.subr.bf16.mxu0 %v11774_v63 }
0x2bb9   :  { %10681 = vmatmul.mubr.msk.f32.vlgmr.msra.gmra.mrb[84].mxu0 %vm390_vm3, %v12861_v47 }
0x2bba   :  { %11336 = vmatpush3.bf16.msra.mxu0 %v12932_v48  ;;  %10713 = vmatprep.mubr.msk.f32.mxu0 %vm11775_vm0, %v11776_v30 }
0x2bbb   :  { %10711 = vmatprep.subr.mxu0 %v11776_v30 }
0x2bbe   :  { %10712 = vmatpush3.msra.mxu0 %v12882_v27 }
0x2bbf   :  { %11337 = vmatprep.subr.bf16.mxu0 %v11774_v63  ;;  %10714 = vmatmul.mubr.msk.f32.vlgmr.msra.gmra.mrb[86].mxu0 %vm816_vm7, %v11830_v8 }
0x2bc0   :  { %11339 = vmatpush3.bf16.msra.mxu0 %v13041_v49  ;;  %10722 = vmatprep.mubr.msk.f32.mxu0 %vm11775_vm0, %v11776_v30 }
0x2bc1   :  { %10720 = vmatprep.subr.mxu0 %v11776_v30 }
0x2bc4   :  { %10721 = vmatpush3.msra.mxu0 %v13044_v34 }
0x2bc5   :  { %10723 = vmatmul.mubr.msk.f32.vlgmr.msra.gmra.mrb[88].mxu0 %vm816_vm7, %v11830_v8  ;;  %11346 = vmatprep.subr.bf16.mxu0 %v11774_v63  ;;  %v7286_v8 = vld [vmem:[%s11920_s3] sm:$0xff] }
0x2bc6   :  { %10744 = vmatprep.mubr.msk.f32.mxu0 %vm11775_vm0, %v11776_v30  ;;  %v11323_v26 = vpack.c.bf16 %v7287_v23, %v7286_v8  ;;  %11348 = vmatpush3.bf16.msra.mxu0 %v11347_v11  ;;  %v7607_v8 = vld [vmem:[%s11930_s17 + $0x30] sm:$0xff]  ;;  %v7608_v23 = vld [vmem:[%s11930_s17 + $0x38] sm:$0xff]  ;;  %v7863_v11 = vld [vmem:[%s13452_s20 + $0x28] sm:$0xff] }
0x2bc7   :  { %11349 = vmatprep.subr.bf16.mxu0 %v11774_v63  ;;  %v11344_v38 = vpack.c.bf16 %v7608_v23, %v7607_v8  ;;  %v11359_v33 = vpack.c.bf16 %v7863_v11, %v7862_v32  ;;  %v9173_v23 = vld [vmem:[%s13453_s22] ss:$0 sm:$0xff] }
0x2bc8   :  { %11324 = vmatprep.subr.bf16.mxu1 %v11323_v26 }
0x2bc9   :  { %11326 = vmatpush3.bf16.msra.mxu1 %v11323_v26 }
0x2bca   :  { %11328 = vmatprep.subr.bf16.mxu1 %v11327_v24  ;;  %11351 = vmatpush3.bf16.msra.mxu0 %v11350_v39 }
0x2bcb   :  { %11358 = vmatprep.subr.bf16.mxu0 %v11774_v63 }
0x2bcd   :  { %11330 = vmatpush3.bf16.msra.mxu1 %v11327_v24 }
0x2bce   :  { %11331 = vmatprep.subr.bf16.mxu1 %v11774_v63 }
0x2c8c   :  { %v10682_v47 = vpop.f32.mrb[84].mxu0 }
0x2c8d   :  { %v7263_v37 = vadd.f32 %v10682_v47, %v11850_v13  ;;  %v7253_v48 = vpop.f32.mrb[85].mxu0 }
0x2c8e   :  { %v7262_v49 = vadd.f32 %v7253_v48, %v11848_v12 }
0x2c8f   :  { %v7265_v42 = vmul.f32 %v7263_v37, %v7263_v37 }
0x2c90   :  { %v7264_v25 = vmul.f32 %v7262_v49, %v7262_v49 }
0x2c91   :  { %v7269_v34 = vsel %vm390_vm3, %v7265_v42, 0.0  ;;  %v7605_v42 = vld [vmem:[%s11930_s17 + $0x20] sm:$0xff] }
0x2c92   :  { %7270 = vadd.xlane.f32.xlu0 %v7269_v34  ;;  %v7266_v58 = vsel %vm390_vm3, %v7264_v25, 0.0  ;;  %v7527_v31 = vpop.f32.mrb[86].mxu0  ;;  %v7606_v25 = vld [vmem:[%s11930_s17 + $0x28] sm:$0xff] }
0x2c93   :  { %7267 = vadd.xlane.f32.xlu1 %v7266_v58  ;;  %v10715_v40 = vpop.f32.mrb[87].mxu0  ;;  %10745 = vmatmul.mubr.msk.f32.vlgmr.msra.gmra.mrb[90].mxu0 %vm390_vm3, %v7527_v31  ;;  %v11341_v58 = vpack.c.bf16 %v7606_v25, %v7605_v42 }
0x2c94   :  { %10766 = vmatprep.mubr.msk.f32.mxu0 %vm11775_vm0, %v11776_v30  ;;  %11360 = vmatpush3.bf16.msra.mxu0 %v11359_v33 }
0x2c95   :  { %11361 = vmatprep.subr.bf16.mxu0 %v11774_v63 }
0x2c98   :  { %v7597_v41 = vpop.f32.mrb[88].mxu0 }
0x2c99   :  { %v10724_v52 = vpop.f32.mrb[89].mxu0 }
0x2c9a   :  { %v7859_v52 = vld [vmem:[%s13452_s20 + $0x8] sm:$0xff] }
0x2d1f   :  { %v7271_v12 = vpop.xlane.xlu0 %7270 }
0x2d20   :  { %v7273_v13 = vmul.f32 0.03125, %v7271_v12  ;;  %v7268_v45 = vpop.xlane.xlu1 %7267 }
0x2d21   :  { %v7272_v9 = vmul.f32 0.03125, %v7268_v45 }
0x2d22   :  { %v7275_v35 = vadd.f32 1e-06, %v7273_v13 }
0x2d23   :  { %v7274_v54 = vadd.f32 1e-06, %v7272_v9  ;;  %v9172_v9 = vld [vmem:[%s11935_s28] ss:$0 sm:$0xff] }
0x2d24   :  { %11631 = vrsqrt.f32 %v7275_v35 }
0x2d25   :  { %11633 = vrsqrt.f32 %v7274_v54 }
0x2d2e   :  { %v11632_v36 = vpop.eup %11631 }
0x2d2f   :  { %v11634_v10 = vpop.eup %11633  ;;  %v7279_v61 = vmul.f32 %v11632_v36, %v7263_v37 }
0x2d30   :  { %v7278_v60 = vmul.f32 %v11634_v10, %v7262_v49 }
0x2d31   :  { %v7283_v4 = vmul.f32 0.01, %v7279_v61  ;;  %vm7281_vm15 = vcmp.ge.f32.partialorder %v7279_v61, 0.0 }
0x2d32   :  { %vm7280_vm7 = vcmp.ge.f32.partialorder %v7278_v60, 0.0  ;;  %v7282_v57 = vmul.f32 0.01, %v7278_v60 }
0x2d33   :  { %v7285_v53 = vsel %vm7281_vm15, %v7279_v61, %v7283_v4  ;;  %v7775_v4 = vld [vmem:[%s13451_s27 + $0x8] sm:$0xff] }
0x2d34   :  { %v7284_v62 = vsel %vm7280_vm7, %v7278_v60, %v7282_v57  ;;  %v7774_v60 = vld [vmem:[%s13451_s27] sm:$0xff]  ;;  %v7776_v57 = vld [vmem:[%s13451_s27 + $0x10] sm:$0xff] }
0x2d35   :  { %10691 = vmatprep.mubr.msk.f32.mxu1 %vm390_vm3, %v7284_v62  ;;  %v11353_v62 = vpack.c.bf16 %v7775_v4, %v7774_v60  ;;  %v8027_v4 = vld [vmem:[%s13455_s0 + $0x18] sm:$0xff] }
0x2d36   :  { %10692 = vmatmul.mubr.msk.f32.vlgmr.msra.gmra.mrb[76].mxu1 %vm390_vm3, %v7285_v53  ;;  %v7777_v53 = vld [vmem:[%s13451_s27 + $0x18] sm:$0xff] }
0x2d37   :  { %10698 = vmatprep.mubr.msk.f32.mxu1 %vm11775_vm0, %v11776_v30  ;;  %v11356_v29 = vpack.c.bf16 %v7777_v53, %v7776_v57 }
0x2e09   :  { %v10693_v47 = vpop.f32.mrb[76].mxu1 }
0x2e0a   :  { %v7375_v37 = vadd.f32 %v10693_v47, %v9162_v21  ;;  %v7369_v48 = vpop.f32.mrb[77].mxu1 }
0x2e0b   :  { %v7370_v49 = vadd.f32 %v9162_v21, %v7369_v48  ;;  %v7860_v48 = vld [vmem:[%s13452_s20 + $0x10] sm:$0xff] }
0x2e0d   :  { %v11332_v34 = vpack.c.bf16 %v7375_v37, %v7370_v49  ;;  %v7861_v49 = vld [vmem:[%s13452_s20 + $0x18] sm:$0xff] }
0x2e0e   :  { %v11368_v25 = vpack.c.bf16 %v7861_v49, %v7860_v48 }
0x2e0f   :  { %11333 = vmatpush3.bf16.msra.mxu1 %v11332_v34  ;;  %v7864_v34 = vld [vmem:[%s13452_s20 + $0x30] sm:$0xff] }
0x2e10   :  { %11340 = vmatprep.subr.bf16.mxu1 %v11774_v63 }
0x2e12   :  { %10699 = vmatmul.mubr.msk.f32.vlgmr.msra.gmra.mrb[78].mxu1 %vm198_vm2, %v11808_v0  ;;  %v7751_v0 = vpop.f32.mrb[90].mxu0 }
0x2e13   :  { %10701 = vmatprep.mubr.msk.f32.mxu1 %vm11775_vm0, %v11776_v30  ;;  %11342 = vmatpush3.bf16.msra.mxu1 %v11341_v58  ;;  %v7865_v58 = vld [vmem:[%s13452_s20 + $0x38] sm:$0xff] }
0x2e14   :  { %11343 = vmatprep.subr.bf16.mxu1 %v11774_v63  ;;  %v11362_v8 = vpack.c.bf16 %v7865_v58, %v7864_v34  ;;  %v8190_v34 = vld [vmem:[%s13456_s24 + $0x10] sm:$0xff]  ;;  %v8191_v58 = vld [vmem:[%s13456_s24 + $0x18] sm:$0xff] }
0x2e16   :  { %10702 = vmatmul.mubr.msk.f32.gmra.mrb[80].mxu1 %vm198_vm2, %v11810_v1  ;;  %v10746_v1 = vpop.f32.mrb[91].mxu0  ;;  %11363 = vmatpush3.bf16.msra.mxu0 %v11362_v8  ;;  %v11386_v8 = vpack.c.bf16 %v8191_v58, %v8190_v34  ;;  %v8498_v34 = vld [vmem:[%s13458_s25 + $0x8] sm:$0xff] }
0x2e17   :  { %10704 = vmatprep.mubr.msk.f32.mxu1 %vm11775_vm0, %v11776_v30  ;;  %11345 = vmatpush3.bf16.msra.mxu1 %v11344_v38 }
0x2e18   :  { %11352 = vmatprep.subr.bf16.mxu1 %v11774_v63  ;;  %11370 = vmatprep.subr.bf16.mxu0 %v11774_v63 }
0x2e1a   :  { %10705 = vmatmul.mubr.msk.f32.gmra.mrb[82].mxu1 %vm198_vm2, %v11812_v2 }
0x2e1b   :  { %10733 = vmatprep.mubr.msk.f32.mxu1 %vm11775_vm0, %v11776_v30 }
0x2e1e   :  { %10734 = vmatmul.mubr.msk.f32.vlgmr.msra.gmra.mrb[84].mxu1 %vm390_vm3, %v7597_v41  ;;  %v7858_v41 = vld [vmem:[%s13452_s20] sm:$0xff] }
0x2e1f   :  { %10755 = vmatprep.mubr.msk.f32.mxu1 %vm11775_vm0, %v11776_v30  ;;  %11354 = vmatpush3.bf16.msra.mxu1 %v11353_v62  ;;  %v11365_v37 = vpack.c.bf16 %v7859_v52, %v7858_v41  ;;  %v8195_v41 = vld [vmem:[%s13456_s24 + $0x38] sm:$0xff] }
0x2e20   :  { %11355 = vmatprep.subr.bf16.mxu1 %v11774_v63 }
0x2e23   :  { %11357 = vmatpush3.bf16.msra.mxu1 %v11356_v29 }
0x2e24   :  { %11364 = vmatprep.subr.bf16.mxu1 %v11774_v63 }
0x2ee5   :  { %v13147_v26 = vpop.f32.mrb[78].mxu1 }
0x2ee6   :  { %v10700_v46 = vpop.f32.mrb[79].mxu1 }
0x2ee9   :  { %v13149_v24 = vpop.f32.mrb[80].mxu1 }
0x2eea   :  { %v10703_v2 = vpop.f32.mrb[81].mxu1 }
0x2eed   :  { %v13151_v12 = vpop.f32.mrb[82].mxu1 }
0x2eee   :  { %v10706_v13 = vpop.f32.mrb[83].mxu1 }
0x2ef1   :  { %v7678_v45 = vpop.f32.mrb[84].mxu1 }
0x2ef2   :  { %v7752_v35 = vadd.f32 %v7751_v0, %v7678_v45  ;;  %v10735_v54 = vpop.f32.mrb[85].mxu1 }
0x2ef4   :  { %v7762_v36 = vadd.f32 %v9172_v9, %v7752_v35 }
0x2ef6   :  { %v7763_v10 = vmul.f32 %v7762_v36, %v7762_v36 }
0x2ef8   :  { %v7764_v61 = vsel %vm390_vm3, %v7763_v10, 0.0  ;;  %v8025_v10 = vld [vmem:[%s13455_s0 + $0x8] sm:$0xff] }
0x2ef9   :  { %7765 = vadd.xlane.f32.xlu1 %v7764_v61  ;;  %v8026_v61 = vld [vmem:[%s13455_s0 + $0x10] sm:$0xff] }
0x2efa   :  { %v11374_v57 = vpack.c.bf16 %v8027_v4, %v8026_v61 }
0x2f86   :  { %v7766_v3 = vpop.xlane.xlu1 %7765 }
0x2f87   :  { %v7767_v39 = vmul.f32 0.03125, %v7766_v3  ;;  %v8192_v3 = vld [vmem:[%s13456_s24 + $0x20] sm:$0xff] }
0x2f89   :  { %v7768_v31 = vadd.f32 1e-06, %v7767_v39  ;;  %v8193_v39 = vld [vmem:[%s13456_s24 + $0x28] sm:$0xff] }
0x2f8b   :  { %11635 = vrsqrt.f32 %v7768_v31  ;;  %v8194_v31 = vld [vmem:[%s13456_s24 + $0x30] sm:$0xff] }
0x2f8c   :  { %v11380_v52 = vpack.c.bf16 %v8195_v41, %v8194_v31 }
0x2f95   :  { %v11636_v40 = vpop.eup %11635 }
0x2f96   :  { %v7770_v21 = vmul.f32 %v11636_v40, %v7762_v36  ;;  %v8024_v36 = vld [vmem:[%s13455_s0] sm:$0xff]  ;;  %v11377_v40 = vpack.c.bf16 %v8193_v39, %v8192_v3 }
0x2f97   :  { %v11371_v60 = vpack.c.bf16 %v8025_v10, %v8024_v36  ;;  %v7459_v36 = vmul.f32 %v13149_v24, %v12810_v50 }
0x2f98   :  { %vm7771_vm2 = vcmp.ge.f32.partialorder %v7770_v21, 0.0  ;;  %v7772_v47 = vmul.f32 0.01, %v7770_v21 }
0x2f9a   :  { %v7773_v42 = vsel %vm7771_vm2, %v7770_v21, %v7772_v47  ;;  %v9177_v21 = vld [vmem:[%s13457_s21] ss:$0 sm:$0xff] }
0x2f9b   :  { %10756 = vmatmul.mubr.msk.f32.vlgmr.msra.gmra.mrb[86].mxu1 %vm390_vm3, %v7773_v42  ;;  %v8188_v47 = vld [vmem:[%s13456_s24] sm:$0xff] }
0x2f9c   :  { %11366 = vmatpush3.bf16.msra.mxu1 %v11365_v37  ;;  %10777 = vmatprep.mubr.msk.f32.mxu1 %vm11775_vm0, %v11776_v30  ;;  %v8189_v37 = vld [vmem:[%s13456_s24 + $0x8] sm:$0xff] }
0x2f9d   :  { %11367 = vmatprep.subr.bf16.mxu1 %v11774_v63 }
0x2fa0   :  { %11369 = vmatpush3.bf16.msra.mxu1 %v11368_v25  ;;  %v11383_v25 = vpack.c.bf16 %v8189_v37, %v8188_v47 }
0x2fa1   :  { %10791 = vmatprep.subr.mxu1 %v11776_v30 }
0x2fa3   :  { %10778 = vmatmul.mubr.msk.f32.vlgmr.msra.gmra.mrb[88].mxu1 %vm390_vm3, %v12951_v59 }
0x2fa4   :  { %10793 = vmatprep.mubr.msk.f32.mxu1 %vm11775_vm0, %v11776_v30 }
0x306e   :  { %v7854_v38 = vpop.f32.mrb[86].mxu1 }
0x306f   :  { %v7855_v0 = vadd.f32 %v9173_v23, %v7854_v38  ;;  %v10757_v1 = vpop.f32.mrb[87].mxu1  ;;  %v8198_v23 = vld [vmem:[%s13456_s24 + $0x50] sm:$0xff]  ;;  %v8199_v38 = vld [vmem:[%s13456_s24 + $0x58] sm:$0xff] }
0x3071   :  { %10767 = vmatmul.mubr.msk.f32.vlgmr.msra.gmra.mrb[92].mxu0 %vm390_vm3, %v7855_v0 }
0x3072   :  { %10788 = vmatprep.mubr.msk.f32.mxu0 %vm11775_vm0, %v11776_v30  ;;  %11372 = vmatpush3.bf16.msra.mxu0 %v11371_v60 }
0x3073   :  { %11373 = vmatprep.subr.bf16.mxu0 %v11774_v63 }
0x3076   :  { %v8008_v59 = vpop.f32.mrb[88].mxu1  ;;  %11375 = vmatpush3.bf16.msra.mxu0 %v11374_v57 }
0x3077   :  { %v10779_v46 = vpop.f32.mrb[89].mxu1  ;;  %11376 = vmatprep.subr.bf16.mxu0 %v11774_v63 }
0x3144   :  { %v7935_v2 = vpop.f32.mrb[92].mxu0 }
0x3145   :  { %v8009_v13 = vadd.f32 %v8008_v59, %v7935_v2  ;;  %v10768_v45 = vpop.f32.mrb[93].mxu0  ;;  %v11392_v59 = vpack.c.bf16 %v8199_v38, %v8198_v23 }
0x3147   :  { %v8012_v9 = vadd.f32 %v8009_v13, %v11857_v14 }
0x3149   :  { %v8013_v35 = vmul.f32 %v8012_v9, %v8012_v9 }
0x314b   :  { %v8014_v54 = vsel %vm390_vm3, %v8013_v35, 0.0 }
0x314c   :  { %8015 = vadd.xlane.f32.xlu0 %v8014_v54 }
0x31d9   :  { %v8016_v14 = vpop.xlane.xlu0 %8015 }
0x31da   :  { %v8017_v62 = vmul.f32 0.03125, %v8016_v14 }
0x31dc   :  { %v8018_v53 = vadd.f32 1e-06, %v8017_v62 }
0x31de   :  { %11637 = vrsqrt.f32 %v8018_v53 }
0x31e8   :  { %v11638_v29 = vpop.eup %11637 }
0x31e9   :  { %v8020_v32 = vmul.f32 %v11638_v29, %v8012_v9  ;;  %v7458_v9 = vmul.f32 %v13147_v26, %v12803_v56  ;;  %v7460_v56 = vmul.f32 %v13151_v12, %v12817_v28 }
0x31eb   :  { %vm8021_vm4 = vcmp.ge.f32.partialorder %v8020_v32, 0.0  ;;  %v8022_v11 = vmul.f32 0.01, %v8020_v32 }
0x31ed   :  { %v8023_v33 = vsel %vm8021_vm4, %v8020_v32, %v8022_v11 }
0x31ee   :  { %10789 = vmatmul.mubr.msk.f32.vlgmr.msra.gmra.mrb[94].mxu0 %vm390_vm3, %v8023_v33 }
0x31ef   :  { %10810 = vmatprep.mubr.msk.f32.mxu0 %vm11775_vm0, %v11776_v30  ;;  %11378 = vmatpush3.bf16.msra.mxu0 %v11377_v40 }
0x31f0   :  { %11379 = vmatprep.subr.bf16.mxu0 %v11774_v63 }
0x31f3   :  { %11381 = vmatpush3.bf16.msra.mxu0 %v11380_v52 }
0x31f4   :  { %11388 = vmatprep.subr.bf16.mxu0 %v11774_v63 }
0x32c1   :  { %v8104_v48 = vpop.f32.mrb[94].mxu0 }
0x32c2   :  { %v8105_v49 = vadd.f32 %v9177_v21, %v8104_v48  ;;  %v10790_v42 = vpop.f32.mrb[95].mxu0 }
0x32c4   :  { %10792 = vmatpush3.msra.mxu1 %v8105_v49 }
0x32c5   :  { %10794 = vmatmul.mubr.msk.f32.vlgmr.msra.gmra.mrb[90].mxu1 %vm288_vm1, %v11821_v5  ;;  %11382 = vmatprep.subr.bf16.mxu1 %v11774_v63  ;;  %v8196_v5 = vld [vmem:[%s13456_s24 + $0x40] sm:$0xff] }
0x32c6   :  { %10796 = vmatprep.mubr.msk.f32.mxu1 %vm11775_vm0, %v11776_v30  ;;  %11384 = vmatpush3.bf16.msra.mxu1 %v11383_v25 }
0x32c7   :  { %11385 = vmatprep.subr.bf16.mxu1 %v11774_v63 }
0x32c9   :  { %10797 = vmatmul.mubr.msk.f32.gmra.mrb[92].mxu1 %vm288_vm1, %v11826_v6  ;;  %v8197_v6 = vld [vmem:[%s13456_s24 + $0x48] sm:$0xff] }
0x32ca   :  { %10799 = vmatprep.mubr.msk.f32.mxu1 %vm11775_vm0, %v11776_v30  ;;  %11387 = vmatpush3.bf16.msra.mxu1 %v11386_v8  ;;  %v8499_v8 = vld [vmem:[%s13458_s25 + $0x10] sm:$0xff] }
0x32cb   :  { %11394 = vmatprep.subr.bf16.mxu1 %v11774_v63 }
0x32cd   :  { %10800 = vmatmul.mubr.msk.f32.gmra.mrb[94].mxu1 %vm288_vm1, %v11828_v7  ;;  %v11389_v7 = vpack.c.bf16 %v8197_v6, %v8196_v5  ;;  %v8500_v5 = vld [vmem:[%s13458_s25 + $0x18] sm:$0xff] }
0x32ce   :  { %10827 = vmatprep.mubr.msk.f32.mxu1 %vm11775_vm0, %v11776_v30  ;;  %v11398_v6 = vpack.c.bf16 %v8500_v5, %v8499_v8 }
0x32d1   :  { %10828 = vmatmul.mubr.msk.f32.vlgmr.msra.gmra.mrb[96].mxu1 %vm390_vm3, %v12865_v51 }
0x32d2   :  { %10830 = vmatprep.mubr.msk.f32.mxu1 %vm11775_vm0, %v11776_v30 }
0x32d5   :  { %10831 = vmatmul.mubr.msk.f32.gmra.mrb[98].mxu1 %vm390_vm3, %v12874_v55 }
0x32d6   :  { %10833 = vmatprep.mubr.msk.f32.mxu1 %vm11775_vm0, %v11776_v30 }
0x32d9   :  { %10834 = vmatmul.mubr.msk.f32.gmra.mrb[100].mxu1 %vm390_vm3, %v12882_v27 }
0x32da   :  { %10861 = vmatprep.mubr.msk.f32.mxu1 %vm11775_vm0, %v11776_v30 }
0x3398   :  { %v8174_v0 = vpop.f32.mrb[90].mxu1 }
0x3399   :  { %10811 = vmatmul.mubr.msk.f32.vlgmr.msra.gmra.mrb[96].mxu0 %vm390_vm3, %v8174_v0  ;;  %v10795_v1 = vpop.f32.mrb[91].mxu1 }
0x339a   :  { %10813 = vmatprep.mubr.msk.f32.mxu0 %vm11775_vm0, %v11776_v30  ;;  %11390 = vmatpush3.bf16.msra.mxu0 %v11389_v7  ;;  %v8604_v7 = vld [vmem:[%s13459_s1 + $0x8] sm:$0xff] }
0x339b   :  { %11391 = vmatprep.subr.bf16.mxu0 %v11774_v63 }
0x339c   :  { %v8179_v46 = vpop.f32.mrb[92].mxu1 }
0x339d   :  { %10814 = vmatmul.mubr.msk.f32.gmra.mrb[98].mxu0 %vm390_vm3, %v8179_v46  ;;  %v10798_v2 = vpop.f32.mrb[93].mxu1 }
0x339e   :  { %10816 = vmatprep.mubr.msk.f32.mxu0 %vm11775_vm0, %v11776_v30  ;;  %11393 = vmatpush3.bf16.msra.mxu0 %v11392_v59 }
0x339f   :  { %11400 = vmatprep.subr.bf16.mxu0 %v11774_v63 }
0x33a0   :  { %v8184_v13 = vpop.f32.mrb[94].mxu1 }
0x33a1   :  { %10817 = vmatmul.mubr.msk.f32.gmra.mrb[100].mxu0 %vm390_vm3, %v8184_v13  ;;  %v10801_v45 = vpop.f32.mrb[95].mxu1 }
0x33a2   :  { %10844 = vmatprep.mubr.msk.f32.mxu0 %vm11775_vm0, %v11776_v30 }
0x33a4   :  { %v8355_v35 = vpop.f32.mrb[96].mxu1 }
0x33a5   :  { %v10829_v54 = vpop.f32.mrb[97].mxu1  ;;  %10845 = vmatmul.mubr.msk.f32.vlgmr.msra.gmra.mrb[102].mxu0 %vm390_vm3, %v7458_v9 }
0x33a6   :  { %10847 = vmatprep.mubr.msk.f32.mxu0 %vm11775_vm0, %v11776_v30 }
0x33a8   :  { %v8360_v10 = vpop.f32.mrb[98].mxu1 }
0x33a9   :  { %v10832_v61 = vpop.f32.mrb[99].mxu1  ;;  %10848 = vmatmul.mubr.msk.f32.gmra.mrb[104].mxu0 %vm390_vm3, %v7459_v36 }
0x33aa   :  { %10850 = vmatprep.mubr.msk.f32.mxu0 %vm11775_vm0, %v11776_v30 }
0x33ac   :  { %v8365_v26 = vpop.f32.mrb[100].mxu1 }
0x33ad   :  { %v10835_v60 = vpop.f32.mrb[101].mxu1  ;;  %10851 = vmatmul.mubr.msk.f32.gmra.mrb[106].mxu0 %vm390_vm3, %v7460_v56 }
0x33ae   :  { %10878 = vmatprep.mubr.msk.f32.mxu0 %vm11775_vm0, %v11776_v30 }
0x346c   :  { %v8275_v4 = vpop.f32.mrb[96].mxu0 }
0x346d   :  { %v8356_v57 = vadd.f32 %v8355_v35, %v8275_v4  ;;  %v10812_v50 = vpop.f32.mrb[97].mxu0 }
0x3470   :  { %v8280_v24 = vpop.f32.mrb[98].mxu0 }
0x3471   :  { %v8361_v14 = vadd.f32 %v8360_v10, %v8280_v24  ;;  %v10815_v62 = vpop.f32.mrb[99].mxu0 }
0x3472   :  { %v8606_v62 = vld [vmem:[%s13459_s1 + $0x18] sm:$0xff] }
0x3474   :  { %v8285_v53 = vpop.f32.mrb[100].mxu0 }
0x3475   :  { %v8366_v29 = vadd.f32 %v8365_v26, %v8285_v53  ;;  %v10818_v32 = vpop.f32.mrb[101].mxu0 }
0x3478   :  { %v8444_v11 = vpop.f32.mrb[102].mxu0 }
0x3479   :  { %v8458_v33 = vadd.f32 %v8444_v11, %v8356_v57  ;;  %v10846_v3 = vpop.f32.mrb[103].mxu0 }
0x347b   :  { %v8461_v28 = vadd.f32 %v8458_v33, %v11864_v15  ;;  %v8597_v33 = vmul.f32 0.5, %v12865_v51 }
0x347c   :  { %v8449_v12 = vpop.f32.mrb[104].mxu0 }
0x347d   :  { %v8459_v39 = vadd.f32 %v8449_v12, %v8361_v14  ;;  %v10849_v31 = vpop.f32.mrb[105].mxu0  ;;  %v8464_v40 = vmul.f32 %v8461_v28, %v8461_v28  ;;  %v8605_v14 = vld [vmem:[%s13459_s1 + $0x10] sm:$0xff] }
0x347e   :  { %v11404_v53 = vpack.c.bf16 %v8606_v62, %v8605_v14  ;;  %v8598_v31 = vmul.f32 0.5, %v12874_v55  ;;  %v9195_v55 = vld [vmem:[%s11995_s19] ss:$0 sm:$0xff]  ;;  %s13462_s19 = sld [smem:[#allocation2_spill]] }
0x347f   :  { %v8462_v41 = vadd.f32 %v8459_v39, %v11866_v16  ;;  %v8467_v52 = vsel %vm390_vm3, %v8464_v40, 0.0  ;;  %v8497_v16 = vld [vmem:[%s13458_s25] sm:$0xff] }
0x3480   :  { %v8454_v21 = vpop.f32.mrb[106].mxu0  ;;  %8468 = vadd.xlane.f32.xlu1 %v8467_v52  ;;  %v11395_v58 = vpack.c.bf16 %v8498_v34, %v8497_v16 }
0x3481   :  { %v8460_v47 = vadd.f32 %v8454_v21, %v8366_v29  ;;  %v10852_v37 = vpop.f32.mrb[107].mxu0  ;;  %v8465_v48 = vmul.f32 %v8462_v41, %v8462_v41  ;;  %v9191_v29 = vld [vmem:[%s13460_s29] ss:$0 sm:$0xff] }
0x3482   :  { %11396 = vmatpush3.bf16.msra.mxu1 %v11395_v58 }
0x3483   :  { %v8463_v49 = vadd.f32 %v8460_v47, %v11868_v17  ;;  %v8470_v15 = vsel %vm390_vm3, %v8465_v48, 0.0  ;;  %11397 = vmatprep.subr.bf16.mxu1 %v11774_v63  ;;  %v8603_v17 = vld [vmem:[%s13459_s1] sm:$0xff]  ;;  %v8599_v47 = vmul.f32 0.5, %v12882_v27 }
0x3484   :  { %8471 = vadd.xlane.f32.xlu0 %v8470_v15  ;;  %v11401_v23 = vpack.c.bf16 %v8604_v7, %v8603_v17 }
0x3485   :  { %v8466_v42 = vmul.f32 %v8463_v49, %v8463_v49 }
0x3486   :  { %11399 = vmatpush3.bf16.msra.mxu1 %v11398_v6  ;;  %11402 = vmatpush3.bf16.msra.mxu0 %v11401_v23 }
0x3487   :  { %v8473_v25 = vsel %vm390_vm3, %v8466_v42, 0.0  ;;  %11406 = vmatprep.subr.bf16.mxu1 %v11774_v63  ;;  %11403 = vmatprep.subr.bf16.mxu0 %v11774_v63 }
0x3488   :  { %8474 = vadd.xlane.f32.xlu1 %v8473_v25 }
0x348a   :  { %11405 = vmatpush3.bf16.msra.mxu0 %v11404_v53 }
0x350d   :  { %v8469_v38 = vpop.xlane.xlu1 %8468 }
0x350e   :  { %v8476_v0 = vmul.f32 0.03125, %v8469_v38  ;;  %v6016_v38 = vsub.f32 1.0, %v11875_v18 }
0x3510   :  { %v8479_v1 = vadd.f32 1e-06, %v8476_v0  ;;  %v8736_v0 = vld [vmem:[%s12000_s6] sm:$0xff] }
0x3511   :  { %v8472_v59 = vpop.xlane.xlu0 %8471 }
0x3512   :  { %11639 = vrsqrt.f32 %v8479_v1  ;;  %v8477_v46 = vmul.f32 0.03125, %v8472_v59  ;;  %v8737_v1 = vld [vmem:[%s12000_s6 + $0x8] sm:$0xff] }
0x3513   :  { %v11407_v59 = vpack.c.bf16 %v8737_v1, %v8736_v0 }
0x3514   :  { %v8480_v2 = vadd.f32 1e-06, %v8477_v46  ;;  %v6018_v46 = vsub.f32 1.0, %v11879_v20 }
0x3515   :  { %v8475_v13 = vpop.xlane.xlu1 %8474 }
0x3516   :  { %11641 = vrsqrt.f32 %v8480_v2  ;;  %v8478_v45 = vmul.f32 0.03125, %v8475_v13  ;;  %v8738_v2 = vld [vmem:[%s12000_s6 + $0x10] sm:$0xff]  ;;  %v8739_v13 = vld [vmem:[%s12000_s6 + $0x18] sm:$0xff] }
0x3518   :  { %v8481_v9 = vadd.f32 1e-06, %v8478_v45  ;;  %v6017_v45 = vsub.f32 1.0, %v11877_v19 }
0x351a   :  { %11643 = vrsqrt.f32 %v8481_v9  ;;  %v11410_v9 = vpack.c.bf16 %v8739_v13, %v8738_v2 }
0x351c   :  { %v11640_v35 = vpop.eup %11639 }
0x351d   :  { %v8485_v54 = vmul.f32 %v11640_v35, %v8461_v28 }
0x351f   :  { %vm8488_vm5 = vcmp.ge.f32.partialorder %v8485_v54, 0.0  ;;  %v8491_v36 = vmul.f32 0.01, %v8485_v54 }
0x3520   :  { %v11642_v10 = vpop.eup %11641 }
0x3521   :  { %v8494_v61 = vsel %vm8488_vm5, %v8485_v54, %v8491_v36  ;;  %v8486_v56 = vmul.f32 %v11642_v10, %v8462_v41  ;;  %v9117_v10 = vld [vmem:[%s12005_s8] ss:$0 sm:$0xff] }
0x3522   :  { %10862 = vmatmul.mubr.msk.f32.vlgmr.msra.gmra.mrb[102].mxu1 %vm390_vm3, %v8494_v61  ;;  %v5968_v62 = vadd.f32 %v9117_v10, %v13000_v44 }
0x3523   :  { %10864 = vmatprep.mubr.msk.f32.mxu1 %vm11775_vm0, %v11776_v30  ;;  %vm8489_vm6 = vcmp.ge.f32.partialorder %v8486_v56, 0.0  ;;  %v8492_v26 = vmul.f32 0.01, %v8486_v56  ;;  %11408 = vmatpush3.bf16.msra.mxu1 %v11407_v59 }
0x3524   :  { %v11644_v60 = vpop.eup %11643  ;;  %11409 = vmatprep.subr.bf16.mxu1 %v11774_v63  ;;  %v5971_v63 = vld [vmem:[%s13462_s19] sm:$0xff] }
0x3525   :  { %v8495_v4 = vsel %vm8489_vm6, %v8486_v56, %v8492_v26  ;;  %v8487_v57 = vmul.f32 %v11644_v60, %v8463_v49 }
0x3526   :  { %10865 = vmatmul.mubr.msk.f32.gmra.mrb[104].mxu1 %vm390_vm3, %v8495_v4 }
0x3527   :  { %10867 = vmatprep.mubr.msk.f32.mxu1 %vm11775_vm0, %v11776_v30  ;;  %vm8490_vm8 = vcmp.ge.f32.partialorder %v8487_v57, 0.0  ;;  %v8493_v50 = vmul.f32 0.01, %v8487_v57  ;;  %11411 = vmatpush3.bf16.msra.mxu1 %v11410_v9 }
0x3529   :  { %v8496_v24 = vsel %vm8490_vm8, %v8487_v57, %v8493_v50  ;;  %v5973_v57 = vld [vmem:[%s13462_s19 + $0x10] sm:$0xff] }
0x352a   :  { %10868 = vmatmul.mubr.msk.f32.gmra.mrb[106].mxu1 %vm390_vm3, %v8496_v24 }
0x352b   :  { %10895 = vmatprep.mubr.msk.f32.mxu1 %vm11775_vm0, %v11776_v30 }
0x35f5   :  { %v8583_v32 = vpop.f32.mrb[102].mxu1 }
0x35f6   :  { %v8584_v11 = vadd.f32 %v9191_v29, %v8583_v32  ;;  %v10863_v3 = vpop.f32.mrb[103].mxu1 }
0x35f7   :  { %v5963_v3 = vadd.f32 %v9117_v10, %v12998_v22 }
0x35f8   :  { %v8600_v28 = vadd.f32 %v8597_v33, %v8584_v11 }
0x35f9   :  { %v8588_v12 = vpop.f32.mrb[104].mxu1 }
0x35fa   :  { %v8589_v39 = vadd.f32 %v9191_v29, %v8588_v12  ;;  %v10866_v40 = vpop.f32.mrb[105].mxu1  ;;  %10879 = vmatmul.mubr.msk.f32.vlgmr.msra.gmra.mrb[108].mxu0 %vm390_vm3, %v8600_v28 }
0x35fb   :  { %10881 = vmatprep.mubr.msk.f32.mxu0 %vm11775_vm0, %v11776_v30 }
0x35fc   :  { %v8601_v41 = vadd.f32 %v8598_v31, %v8589_v39 }
0x35fd   :  { %v8593_v52 = vpop.f32.mrb[106].mxu1 }
0x35fe   :  { %v8594_v21 = vadd.f32 %v9191_v29, %v8593_v52  ;;  %v10869_v37 = vpop.f32.mrb[107].mxu1  ;;  %10882 = vmatmul.mubr.msk.f32.gmra.mrb[110].mxu0 %vm390_vm3, %v8601_v41  ;;  %v5972_v29 = vld [vmem:[%s13462_s19 + $0x8] sm:$0xff] }
0x35ff   :  { %10884 = vmatprep.mubr.msk.f32.mxu0 %vm11775_vm0, %v11776_v30 }
0x3600   :  { %v8602_v51 = vadd.f32 %v8599_v47, %v8594_v21 }
0x3602   :  { %10885 = vmatmul.mubr.msk.f32.gmra.mrb[112].mxu0 %vm390_vm3, %v8602_v51 }
0x36cd   :  { %v8689_v48 = vpop.f32.mrb[108].mxu0 }
0x36ce   :  { %v8690_v49 = vadd.f32 %v9195_v55, %v8689_v48  ;;  %v10880_v15 = vpop.f32.mrb[109].mxu0 }
0x36d0   :  { %v8703_v42 = vmul.f32 %v8690_v49, %v8690_v49 }
0x36d1   :  { %v8694_v25 = vpop.f32.mrb[110].mxu0 }
0x36d2   :  { %v13301_v16 = vadd.f32 %v9195_v55, %v8694_v25  ;;  %v10883_v34 = vpop.f32.mrb[111].mxu0  ;;  %v8706_v27 = vsel %vm390_vm3, %v8703_v42, 0.0 }
0x36d3   :  { %8707 = vadd.xlane.f32.xlu0 %v8706_v27 }
0x36d4   :  { %v8704_v58 = vmul.f32 %v13301_v16, %v13301_v16 }
0x36d5   :  { %v8699_v8 = vpop.f32.mrb[112].mxu0 }
0x36d6   :  { %v13306_v5 = vadd.f32 %v9195_v55, %v8699_v8  ;;  %v10886_v6 = vpop.f32.mrb[113].mxu0  ;;  %v8709_v17 = vsel %vm390_vm3, %v8704_v58, 0.0 }
0x36d7   :  { %8710 = vadd.xlane.f32.xlu1 %v8709_v17 }
0x36d8   :  { %v8705_v7 = vmul.f32 %v13306_v5, %v13306_v5 }
0x36da   :  { %v8712_v23 = vsel %vm390_vm3, %v8705_v7, 0.0 }
0x36db   :  { %8713 = vadd.xlane.f32.xlu0 %v8712_v23 }
0x36e8   :  { %5976 = vperm.xlu1 %11565, %v11875_v18  }
0x36ec   :  { %5986 = vperm.xlu1 %11565, %v11879_v20  }
0x36f0   :  { %6021 = vperm.xlu1 %11565, %v6016_v38  }
0x36f1   :  { %5981 = vperm.xlu0 %11566, %v11877_v19   ;;  %v5958_v19 = vadd.f32 %v9117_v10, %v12996_v43 }
0x36f4   :  { %6031 = vperm.xlu1 %11565, %v6018_v46  }
0x36f5   :  { %6026 = vperm.xlu0 %11566, %v6017_v45  }
0x3760   :  { %v8708_v18 = vpop.xlane.xlu0 %8707 }
0x3761   :  { %v8715_v35 = vmul.f32 0.03125, %v8708_v18 }
0x3763   :  { %v8718_v54 = vadd.f32 1e-06, %v8715_v35 }
0x3764   :  { %v8711_v36 = vpop.xlane.xlu1 %8710 }
0x3765   :  { %11645 = vrsqrt.f32 %v8718_v54  ;;  %v8716_v20 = vmul.f32 0.03125, %v8711_v36 }
0x3767   :  { %v8719_v61 = vadd.f32 1e-06, %v8716_v20 }
0x3768   :  { %v13325_v56 = vpop.permute.xlu1 %5976  ;;  %v8714_v26 = vpop.xlane.xlu0 %8713 }
0x3769   :  { %11647 = vrsqrt.f32 %v8719_v61  ;;  %v5989_v60 = vmul.f32 %v13325_v56, %v5971_v63  ;;  %v8717_v4 = vmul.f32 0.03125, %v8714_v26  ;;  %v9199_v63 = vld [vmem:[%s12005_s8] ss:$0 sm:$0xff]  ;;  %v9203_v61 = vld [vmem:[%s13462_s19 + $0x18] sm:$0xff] }
0x376b   :  { %v8720_v50 = vadd.f32 1e-06, %v8717_v4  ;;  %v5992_v24 = vadd.f32 %v5989_v60, %v5958_v19  ;;  %v8840_v60 = vmul.f32 %v9203_v61, %v13325_v56 }
0x376c   :  { %v13330_v14 = vpop.permute.xlu1 %5986 }
0x376d   :  { %11649 = vrsqrt.f32 %v8720_v50  ;;  %v5991_v53 = vmul.f32 %v13330_v14, %v5973_v57  ;;  %6046 = vrot.lane.b32.xlu0 %v5992_v24, %s13463_s13  ;;  %v9121_v51 = vmul.f32 -1.442695, %v5992_v24  ;;  %v9204_v57 = vld [vmem:[%s13462_s19 + $0x20] sm:$0xff] }
0x376f   :  { %v11646_v32 = vpop.eup %11645  ;;  %v5994_v11 = vadd.f32 %v5991_v53, %v5968_v62  ;;  %11651 = vpow2.f32 %v9121_v51 }
0x3770   :  { %v13336_v43 = vpop.permute.xlu0 %5981  ;;  %v8724_v33 = vmul.f32 %v11646_v32, %v8690_v49  ;;  %v9205_v32 = vld [vmem:[%s13462_s19 + $0x28] sm:$0xff] }
0x3771   :  { %v5990_v28 = vmul.f32 %v13336_v43, %v5972_v29  ;;  %6050 = vrot.lane.b32.xlu0 %v5994_v11, %s13463_s13  ;;  %v9123_v55 = vmul.f32 -1.442695, %v5994_v11  ;;  %v8841_v53 = vmul.f32 %v9204_v57, %v13336_v43 }
0x3772   :  { %vm8727_vm9 = vcmp.ge.f32.partialorder %v8724_v33, 0.0  ;;  %v8730_v12 = vmul.f32 0.01, %v8724_v33 }
0x3773   :  { %v11648_v44 = vpop.eup %11647  ;;  %v5993_v39 = vadd.f32 %v5990_v28, %v5963_v3  ;;  %11653 = vpow2.f32 %v9123_v55  ;;  %v8842_v28 = vmul.f32 %v9205_v32, %v13330_v14 }
0x3774   :  { %v8733_v31 = vsel %vm8727_vm9, %v8724_v33, %v8730_v12  ;;  %v8725_v40 = vmul.f32 %v11648_v44, %v13301_v16  ;;  %v13357_v17 = vpop.permute.xlu0 %6026 }
0x3775   :  { %10896 = vmatmul.mubr.msk.f32.vlgmr.msra.gmra.mrb[108].mxu1 %vm390_vm3, %v8733_v31  ;;  %6048 = vrot.lane.b32.xlu1 %v5993_v39, %s13463_s13  ;;  %v9122_v48 = vmul.f32 -1.442695, %v5993_v39  ;;  %v6035_v2 = vmul.f32 %v13357_v17, %v5993_v39 }
0x3776   :  { %10898 = vmatprep.mubr.msk.f32.mxu1 %vm11775_vm0, %v11776_v30  ;;  %vm8728_vm10 = vcmp.ge.f32.partialorder %v8725_v40, 0.0  ;;  %v8731_v22 = vmul.f32 0.01, %v8725_v40 }
0x3777   :  { %v11650_v41 = vpop.eup %11649  ;;  %11655 = vpow2.f32 %v9122_v48  ;;  %v6038_v35 = vmul.f32 0.1, %v6035_v2 }
0x3778   :  { %v8734_v52 = vsel %vm8728_vm10, %v8725_v40, %v8731_v22  ;;  %v8726_v21 = vmul.f32 %v11650_v41, %v13306_v5 }
0x3779   :  { %10899 = vmatmul.mubr.msk.f32.gmra.mrb[110].mxu1 %vm390_vm3, %v8734_v52  ;;  %v11652_v49 = vpop.eup %11651 }
0x377a   :  { %10901 = vmatprep.mubr.msk.f32.mxu1 %vm11775_vm0, %v11776_v30  ;;  %vm8729_vm11 = vcmp.ge.f32.partialorder %v8726_v21, 0.0  ;;  %v8732_v47 = vmul.f32 0.01, %v8726_v21  ;;  %v6004_v15 = vadd.f32 1.0, %v11652_v49  ;;  %v13351_v30 = vpop.permute.xlu1 %6021 }
0x377b   :  { %v6034_v58 = vmul.f32 %v13351_v30, %v5992_v24 }
0x377c   :  { %v8735_v37 = vsel %vm8729_vm11, %v8726_v21, %v8732_v47  ;;  %11657 = vrcp.f32 %v6004_v15 }
0x377d   :  { %10902 = vmatmul.mubr.msk.f32.gmra.mrb[112].mxu1 %vm390_vm3, %v8735_v37  ;;  %v11654_v42 = vpop.eup %11653  ;;  %v6037_v7 = vmul.f32 0.1, %v6034_v58  ;;  %vm6055_vm3 = vcmask 31744  }
0x377e   :  { %v6006_v25 = vadd.f32 1.0, %v11654_v42  ;;  %v13354_v8 = vpop.permute.xlu1 %6031 }
0x377f   :  { %v6036_v23 = vmul.f32 %v13354_v8, %v5994_v11 }
0x3780   :  { %11659 = vrcp.f32 %v6006_v25 }
0x3781   :  { %v11656_v16 = vpop.eup %11655  ;;  %v6039_v46 = vmul.f32 0.1, %v6036_v23 }
0x3782   :  { %v6005_v34 = vadd.f32 1.0, %v11656_v16 }
0x3784   :  { %11661 = vrcp.f32 %v6005_v34 }
0x3786   :  { %v11658_v27 = vpop.eup %11657 }
0x3787   :  { %v6013_v5 = vmul.f32 %v11658_v27, %v13325_v56 }
0x3789   :  { %v6040_v38 = vadd.f32 %v6037_v7, %v6013_v5 }
0x378a   :  { %v11660_v6 = vpop.eup %11659 }
0x378b   :  { %v6015_v0 = vmul.f32 %v11660_v6, %v13330_v14 }
0x378d   :  { %v6042_v45 = vadd.f32 %v6039_v46, %v6015_v0 }
0x378e   :  { %v11662_v1 = vpop.eup %11661 }
0x378f   :  { %v6014_v9 = vmul.f32 %v11662_v1, %v13336_v43 }
0x3791   :  { %v6041_v36 = vadd.f32 %v6038_v35, %v6014_v9 }
0x37df   :  { %v6047_v59 = vpop.permute.xlu0 %6046 }
0x37e0   :  { %v6056_v13 = vsel %vm6055_vm3, %v6040_v38, %v6047_v59 }
0x37e1   :  { %6059 = vst.msk [vmem:[%s12010_s18] sm:$0xff] %vm288_vm1, %v6056_v13 }
0x37e3   :  { %v6051_v18 = vpop.permute.xlu0 %6050 }
0x37e4   :  { %v6058_v54 = vsel %vm6055_vm3, %v6042_v45, %v6051_v18 }
0x37e5   :  { %6061 = vst.msk [vmem:[%s12010_s18 + $0x10] sm:$0xff] %vm288_vm1, %v6058_v54 }
0x37e7   :  { %v6049_v20 = vpop.permute.xlu1 %6048 }
0x37e8   :  { %v6057_v10 = vsel %vm6055_vm3, %v6041_v36, %v6049_v20 }
0x37e9   :  { %6060 = vst.msk [vmem:[%s12010_s18 + $0x8] sm:$0xff] %vm288_vm1, %v6057_v10 }
0x3848   :  { %v8822_v26 = vpop.f32.mrb[108].mxu1 }
0x3849   :  { %v8823_v19 = vadd.f32 %v9199_v63, %v8822_v26  ;;  %v10897_v4 = vpop.f32.mrb[109].mxu1 }
0x384b   :  { %v8843_v50 = vadd.f32 %v8840_v60, %v8823_v19 }
0x384c   :  { %v8827_v24 = vpop.f32.mrb[110].mxu1 }
0x384d   :  { %v8828_v62 = vadd.f32 %v9199_v63, %v8827_v24  ;;  %8879 = vrot.lane.b32.xlu1 %v8843_v50, %s13463_s13  ;;  %v10900_v29 = vpop.f32.mrb[111].mxu1  ;;  %v9206_v39 = vmul.f32 -1.442695, %v8843_v50  ;;  %v8867_v55 = vmul.f32 %v8843_v50, %v13351_v30 }
0x384f   :  { %v8844_v11 = vadd.f32 %v8841_v53, %v8828_v62  ;;  %11663 = vpow2.f32 %v9206_v39  ;;  %v8870_v15 = vmul.f32 0.1, %v8867_v55 }
0x3850   :  { %v8832_v33 = vpop.f32.mrb[112].mxu1 }
0x3851   :  { %v8833_v3 = vadd.f32 %v9199_v63, %v8832_v33  ;;  %8881 = vrot.lane.b32.xlu0 %v8844_v11, %s13463_s13  ;;  %v10903_v12 = vpop.f32.mrb[113].mxu1  ;;  %v9207_v31 = vmul.f32 -1.442695, %v8844_v11  ;;  %v8868_v42 = vmul.f32 %v8844_v11, %v13357_v17 }
0x3853   :  { %v8845_v44 = vadd.f32 %v8842_v28, %v8833_v3  ;;  %11665 = vpow2.f32 %v9207_v31  ;;  %v8871_v58 = vmul.f32 0.1, %v8868_v42 }
0x3855   :  { %8883 = vrot.lane.b32.xlu1 %v8845_v44, %s13463_s13  ;;  %v9208_v40 = vmul.f32 -1.442695, %v8845_v44  ;;  %v8869_v5 = vmul.f32 %v8845_v44, %v13354_v8 }
0x3857   :  { %11667 = vpow2.f32 %v9208_v40  ;;  %v8872_v23 = vmul.f32 0.1, %v8869_v5 }
0x3859   :  { %v11664_v22 = vpop.eup %11663 }
0x385a   :  { %v8855_v41 = vadd.f32 1.0, %v11664_v22 }
0x385c   :  { %11669 = vrcp.f32 %v8855_v41 }
0x385d   :  { %v11666_v52 = vpop.eup %11665 }
0x385e   :  { %v8856_v21 = vadd.f32 1.0, %v11666_v52 }
0x3860   :  { %11671 = vrcp.f32 %v8856_v21 }
0x3861   :  { %v11668_v47 = vpop.eup %11667 }
0x3862   :  { %v8857_v37 = vadd.f32 1.0, %v11668_v47 }
0x3864   :  { %11673 = vrcp.f32 %v8857_v37 }
0x3866   :  { %v11670_v51 = vpop.eup %11669 }
0x3867   :  { %v8864_v48 = vmul.f32 %v11670_v51, %v13325_v56 }
0x3869   :  { %v8873_v25 = vadd.f32 %v8870_v15, %v8864_v48 }
0x386a   :  { %v11672_v49 = vpop.eup %11671 }
0x386b   :  { %v8865_v16 = vmul.f32 %v11672_v49, %v13336_v43 }
0x386d   :  { %v8874_v30 = vadd.f32 %v8871_v58, %v8865_v16 }
0x386e   :  { %v11674_v34 = vpop.eup %11673 }
0x386f   :  { %v8866_v56 = vmul.f32 %v11674_v34, %v13330_v14 }
0x3871   :  { %v8875_v43 = vadd.f32 %v8872_v23, %v8866_v56 }
0x38bf   :  { %v8880_v27 = vpop.permute.xlu1 %8879 }
0x38c0   :  { %v8888_v6 = vsel %vm6055_vm3, %v8873_v25, %v8880_v27 }
0x38c1   :  { %9209 = vst.msk [vmem:[%s12010_s18 + $0x18] sm:$0xff] %vm288_vm1, %v8888_v6 }
0x38c3   :  { %v8882_v7 = vpop.permute.xlu0 %8881 }
0x38c4   :  { %v8889_v17 = vsel %vm6055_vm3, %v8874_v30, %v8882_v7 }
0x38c5   :  { %9210 = vst.msk [vmem:[%s12010_s18 + $0x20] sm:$0xff] %vm288_vm1, %v8889_v17 }
0x38c7   :  { %v8884_v38 = vpop.permute.xlu1 %8883 }
0x38c8   :  { %v8890_v0 = vsel %vm6055_vm3, %v8875_v43, %v8884_v38 }
0x38c9   :  { %9211 = vst.msk [vmem:[%s12010_s18 + $0x28] sm:$0xff] %vm288_vm1, %v8890_v0 }

</bundles_post_ra>
